<compile_context>
chip_gen: v5e
topology: v5e:2x2
jax: 0.10.0
libtpu: 0.0.40
codegen_flags: <defaults>
</compile_context>

<pallas_src>
import numpy as np
import jax
import jax.numpy as jnp
from jax.experimental import pallas as pl
from jax.experimental.pallas import tpu as pltpu  # noqa: F401  (TPU backend)

# ---------------- problem sizes (small, consistent with the module) ----------
BATCH = 2
MOL_LEN = 8          # mol_length; index MOL_LEN-1 is the "padding atom"
MAX_NBR = 4          # max_neighbor_num
ATOM_FEAT = 16       # input_feature_dim
BOND_FEAT = 8        # input_bond_dim
FP_DIM = 32          # fingerprint_dim
RADIUS = 2
T_STEPS = 2
NUM_BONDS = 12
NEG_BIG = -9e8


# ---------------- shared activation helpers (kernel AND reference) -----------
def _leaky_relu(x):
    return jnp.where(x > 0, x, 0.01 * x)


def _elu(x):
    return jnp.where(x > 0, x, jnp.exp(x) - 1.0)


def _sigmoid(x):
    return 1.0 / (1.0 + jnp.exp(-x))


# ---------------------------- the Pallas kernel ------------------------------
def _fingerprint_kernel(
    # batched data (whole arrays resident in VMEM, single invocation)
    atom_ref, nbraw_ref, onehot_ref, attm_ref, sfm_ref,
    sel_ref, amask_ref, msfm_ref,
    # fused / packed parameters
    w_atom_ref, b_atom_ref, w_nb_ref, b_nb_ref,
    w_att_ref, b_att_ref, w_alg_ref,
    w_gru_ref, b_gru_ref,
    w_matt_ref, b_matt_ref, w_malg_ref,
    w_mgru_ref, b_mgru_ref,
    # outputs
    out_act_ref, out_mol_ref,
):
    B, L, N, F = BATCH, MOL_LEN, MAX_NBR, FP_DIM
    BL = B * L

    def dot(a, b):
        return jnp.dot(a, b, preferred_element_type=jnp.float32)

    def gru(x, h, w, b):
        # fused-gate torch.nn.GRUCell: w is (2, F, 3F), b is (2, 1, 3F),
        # index 0 = input->hidden, 1 = hidden->hidden, gate order (r, z, n).
        gi = dot(x, w[0]) + b[0]            # (M, 3F)
        gh = dot(h, w[1]) + b[1]            # (M, 3F)
        r = _sigmoid(gi[:, :F] + gh[:, :F])
        z = _sigmoid(gi[:, F:2 * F] + gh[:, F:2 * F])
        n = jnp.tanh(gi[:, 2 * F:] + r * gh[:, 2 * F:])
        return (1.0 - z) * n + z * h

    def masked_softmax(score, mask):
        # softmax over axis=1 with multiplicative attend-mask applied after
        m = jnp.max(score, axis=1, keepdims=True)
        e = jnp.exp(score - m)
        denom = jnp.sum(e, axis=1, keepdims=True)
        return e * pl.reciprocal(denom, approx=True) * mask

    atom_x = atom_ref[...]                  # (BL, Fa)
    nbraw = nbraw_ref[...]                  # (BL*N, Fa+Fb)
    onehot = onehot_ref[...]                # (BL*N, BL)  global-index one-hot
    attm = attm_ref[...]                    # (BL, N, 1)
    sfm = sfm_ref[...]                      # (BL, N, 1)
    sel = sel_ref[...]                      # (B, BL)     block mask * atom_mask
    amask = amask_ref[...]                  # (B, L, 1)
    msfm = msfm_ref[...]                    # (B, L, 1)

    # input FCs (batched over all atoms / all neighbor slots)
    atom_feature = _leaky_relu(dot(atom_x, w_atom_ref[...]) + b_atom_ref[...])   # (BL, F)
    nb0 = _leaky_relu(dot(nbraw, w_nb_ref[...]) + b_nb_ref[...])                 # (BL*N, F)

    h = atom_feature
    for r in range(RADIUS):
        if r == 0:
            atom_src, nb_flat = atom_feature, nb0
        else:
            act = jnp.maximum(h, 0.0)
            atom_src = act
            nb_flat = dot(onehot, act)       # gather activated[atom_degree] via MXU

        # fused attend + neighbor-side align column: one (.,F)x(F,F+1) matmul
        nbt3 = (dot(nb_flat, w_att_ref[r]) + b_att_ref[r]).reshape(BL, N, F + 1)
        nbT = nbt3[:, :, :F]                 # (BL, N, F)  attend transform
        s_nb = nbt3[:, :, F:]                # (BL, N, 1)  neighbor align score

        # atom-side align score + bias on the VPU (mul + lane reduce)
        alg = w_alg_ref[r]                   # (1, F+1): [w_align_atom | b_align]
        s_atom = (jnp.sum(atom_src * alg[:, :F], axis=-1, keepdims=True)
                  + alg[:, F:])              # (BL, 1)

        score = _leaky_relu(s_atom.reshape(BL, 1, 1) + s_nb) + sfm
        attn = masked_softmax(score, attm)   # (BL, N, 1)
        ctx = _elu(jnp.sum(attn * nbT, axis=1))                                   # (BL, F)
        h = gru(ctx, h, w_gru_ref[r], b_gru_ref[r])

    activated = jnp.maximum(h, 0.0)          # (BL, F)

    # molecule readout: masked sum over atoms as a matmul
    mol = dot(sel, activated)                # (B, F)
    act_mol = jnp.maximum(mol, 0.0)

    # hoisted out of the T loop (activated is constant across T):
    # mol_attend transform + neighbor-side mol-align column in one matmul
    actt3 = (dot(activated, w_matt_ref[...]) + b_matt_ref[...]).reshape(B, L, F + 1)
    actT = actt3[:, :, :F]                   # (B, L, F)
    s_nb_mol = actt3[:, :, F:]               # (B, L, 1)
    malg = w_malg_ref[...]                   # (1, F+1): [w_mol_align_atom | b_mol_align]

    for _ in range(T_STEPS):
        s_mol = (jnp.sum(act_mol * malg[:, :F], axis=-1, keepdims=True)
                 + malg[:, F:])              # (B, 1)
        score = _leaky_relu(s_mol.reshape(B, 1, 1) + s_nb_mol) + msfm
        attn = masked_softmax(score, amask)  # (B, L, 1)
        mctx = _elu(jnp.sum(attn * actT, axis=1))                                 # (B, F)
        mol = gru(mctx, mol, w_mgru_ref[...], b_mgru_ref[...])
        act_mol = jnp.maximum(mol, 0.0)

    out_act_ref[...] = activated
    out_mol_ref[...] = mol


# ------------------------------ wrapper ---------------------------------------
def fingerprint_pallas(atom_list, bond_list, atom_degree_list, bond_degree_list,
                       atom_mask, p):
    f32 = jnp.float32
    B, L, Fa = atom_list.shape
    Fb = bond_list.shape[-1]
    N = atom_degree_list.shape[-1]
    F = FP_DIM
    BL = B * L

    atom_list = atom_list.astype(f32)
    bond_list = bond_list.astype(f32)

    # ---- glue: gathers of raw inputs, masks, index matrices (plain JAX) ----
    atom_nbr = jax.vmap(lambda a, i: a[i])(atom_list, atom_degree_list)      # (B,L,N,Fa)
    bond_nbr = jax.vmap(lambda b_, i: b_[i])(bond_list, bond_degree_list)    # (B,L,N,Fb)
    nbraw = jnp.concatenate([atom_nbr, bond_nbr], -1).reshape(BL * N, Fa + Fb)
    gidx = (atom_degree_list + (jnp.arange(B) * L)[:, None, None]).reshape(BL * N)
    onehot = jax.nn.one_hot(gidx, BL, dtype=f32)                             # (BL*N, BL)
    attm = (atom_degree_list != L - 1).astype(f32).reshape(BL, N, 1)
    sfm = jnp.where(atom_degree_list == L - 1, NEG_BIG, 0.0).astype(f32).reshape(BL, N, 1)
    amask = atom_mask.astype(f32)                                            # (B, L)
    sel = jnp.repeat(jnp.eye(B, dtype=f32), L, axis=1) * amask.reshape(1, BL)  # (B, BL)
    amask3 = amask.reshape(B, L, 1)
    msfm3 = jnp.where(amask3 == 0.0, NEG_BIG, 0.0).astype(f32)
    atom_flat = atom_list.reshape(BL, Fa)

    # ---- fuse / pack parameters into 14 buffers ----
    zR = jnp.zeros((RADIUS, 1, 1), f32)
    w_att_ext = jnp.concatenate([p["w_attend"], p["w_align"][:, 1]], axis=-1)      # (R,F,F+1)
    b_att_ext = jnp.concatenate([p["b_attend"], zR], axis=-1)                      # (R,1,F+1)
    w_alg = jnp.concatenate([p["w_align"][:, 0, :, 0][:, None, :], p["b_align"]],
                            axis=-1)                                               # (R,1,F+1)
    w_gih = jnp.concatenate([p["w_gih"][:, g] for g in range(3)], axis=-1)         # (R,F,3F)
    w_ghh = jnp.concatenate([p["w_ghh"][:, g] for g in range(3)], axis=-1)
    b_gih = jnp.concatenate([p["b_gih"][:, g] for g in range(3)], axis=-1)         # (R,1,3F)
    b_ghh = jnp.concatenate([p["b_ghh"][:, g] for g in range(3)], axis=-1)
    w_gru = jnp.stack([w_gih, w_ghh], axis=1)                                      # (R,2,F,3F)
    b_gru = jnp.stack([b_gih, b_ghh], axis=1)                                      # (R,2,1,3F)
    w_matt_ext = jnp.concatenate([p["w_matt"], p["w_mal"][1]], axis=-1)            # (F,F+1)
    b_matt_ext = jnp.concatenate([p["b_matt"], jnp.zeros((1, 1), f32)], axis=-1)   # (1,F+1)
    w_malg = jnp.concatenate([p["w_mal"][0, :, 0][None, :], p["b_mal"]], axis=-1)  # (1,F+1)
    w_mih = jnp.concatenate([p["w_mih"][g] for g in range(3)], axis=-1)            # (F,3F)
    w_mhh = jnp.concatenate([p["w_mhh"][g] for g in range(3)], axis=-1)
    b_mih = jnp.concatenate([p["b_mih"][g] for g in range(3)], axis=-1)            # (1,3F)
    b_mhh = jnp.concatenate([p["b_mhh"][g] for g in range(3)], axis=-1)
    w_mgru = jnp.stack([w_mih, w_mhh], axis=0)                                     # (2,F,3F)
    b_mgru = jnp.stack([b_mih, b_mhh], axis=0)                                     # (2,1,3F)

    inputs = (atom_flat, nbraw, onehot, attm, sfm, sel, amask3, msfm3,
              p["w_atom"], p["b_atom"], p["w_nb"], p["b_nb"],
              w_att_ext, b_att_ext, w_alg, w_gru, b_gru,
              w_matt_ext, b_matt_ext, w_malg, w_mgru, b_mgru)

    out_shape = (jax.ShapeDtypeStruct((BL, F), f32),
                 jax.ShapeDtypeStruct((B, F), f32))

    # Single invocation, no grid: every operand fits in VMEM as a whole block,
    # so there is nothing to pipeline and no per-step overhead.
    activated_flat, mol = pl.pallas_call(
        _fingerprint_kernel,
        out_shape=out_shape,
    )(*inputs)

    # dropout on mol_feature is identity at inference
    return activated_flat.reshape(B, L, F), mol


# ------------------------- pure-JAX reference ---------------------------------
def fingerprint_reference(atom_list, bond_list, atom_degree_list, bond_degree_list,
                          atom_mask, p):
    f32 = jnp.float32
    L = atom_list.shape[1]

    def gru(x, h, wih, whh, bih, bhh):
        r = _sigmoid(x @ wih[0] + bih[0] + h @ whh[0] + bhh[0])
        z = _sigmoid(x @ wih[1] + bih[1] + h @ whh[1] + bhh[1])
        n = jnp.tanh(x @ wih[2] + bih[2] + r * (h @ whh[2] + bhh[2]))
        return (1.0 - z) * n + z * h

    def single(atom, bond, ad, bd, am):
        atom = atom.astype(f32)
        bond = bond.astype(f32)
        am2 = am.astype(f32)[:, None]                                    # (L,1)
        atom_feature = _leaky_relu(atom @ p["w_atom"] + p["b_atom"])     # (L,F)
        nbr = jnp.concatenate([atom[ad], bond[bd]], axis=-1)
        nbr_feature = _leaky_relu(nbr @ p["w_nb"] + p["b_nb"])           # (L,N,F)
        attm = (ad != L - 1).astype(f32)[..., None]
        sfm = jnp.where(ad == L - 1, NEG_BIG, 0.0).astype(f32)[..., None]

        h = atom_feature
        for r in range(RADIUS):
            if r == 0:
                atom_src, nb = atom_feature, nbr_feature
            else:
                act = jnp.maximum(h, 0.0)
                atom_src, nb = act, act[ad]
            s = (jnp.einsum("lf,fo->lo", atom_src, p["w_align"][r, 0])[:, None, :]
                 + jnp.einsum("lnf,fo->lno", nb, p["w_align"][r, 1])
                 + p["b_align"][r])
            s = _leaky_relu(s) + sfm
            attn = jax.nn.softmax(s, axis=-2) * attm
            nbT = jnp.einsum("lnf,fg->lng", nb, p["w_attend"][r]) + p["b_attend"][r]
            ctx = _elu(jnp.sum(attn * nbT, axis=-2))
            h = gru(ctx, h, p["w_gih"][r], p["w_ghh"][r], p["b_gih"][r], p["b_ghh"][r])
        activated = jnp.maximum(h, 0.0)

        mol = jnp.sum(activated * am2, axis=0, keepdims=True)            # (1,F)
        act_mol = jnp.maximum(mol, 0.0)
        msfm = jnp.where(am2 == 0.0, NEG_BIG, 0.0)
        for _ in range(T_STEPS):
            s = act_mol @ p["w_mal"][0] + activated @ p["w_mal"][1] + p["b_mal"]
            s = _leaky_relu(s) + msfm
            attn = jax.nn.softmax(s, axis=-2) * am2
            actT = activated @ p["w_matt"] + p["b_matt"]
            mctx = _elu(jnp.sum(attn * actT, axis=0, keepdims=True))
            mol = gru(mctx, mol, p["w_mih"], p["w_mhh"], p["b_mih"], p["b_mhh"])
            act_mol = jnp.maximum(mol, 0.0)
        return activated, mol[0]

    return jax.vmap(single)(atom_list, bond_list, atom_degree_list,
                            bond_degree_list, atom_mask)


# --------------------------- deterministic params ------------------------------
def init_params(key):
    shapes = {
        "w_atom": (ATOM_FEAT, FP_DIM), "b_atom": (1, FP_DIM),
        "w_nb": (ATOM_FEAT + BOND_FEAT, FP_DIM), "b_nb": (1, FP_DIM),
        "w_align": (RADIUS, 2, FP_DIM, 1), "b_align": (RADIUS, 1, 1),
        "w_attend": (RADIUS, FP_DIM, FP_DIM), "b_attend": (RADIUS, 1, FP_DIM),
        "w_gih": (RADIUS, 3, FP_DIM, FP_DIM), "w_ghh": (RADIUS, 3, FP_DIM, FP_DIM),
        "b_gih": (RADIUS, 3, 1, FP_DIM), "b_ghh": (RADIUS, 3, 1, FP_DIM),
        "w_mal": (2, FP_DIM, 1), "b_mal": (1, 1),
        "w_matt": (FP_DIM, FP_DIM), "b_matt": (1, FP_DIM),
        "w_mih": (3, FP_DIM, FP_DIM), "w_mhh": (3, FP_DIM, FP_DIM),
        "b_mih": (3, 1, FP_DIM), "b_mhh": (3, 1, FP_DIM),
    }
    keys = jax.random.split(key, len(shapes))
    return {name: (0.1 * jax.random.normal(k, shp)).astype(jnp.float32)
            for (name, shp), k in zip(shapes.items(), keys)}


# ----------------------------------- main --------------------------------------
if __name__ == "__main__":
    key = jax.random.PRNGKey(0)
    k_par, k_atom, k_bond, k_ad, k_bd = jax.random.split(key, 5)
    params = init_params(k_par)

    atom_list = jax.random.normal(k_atom, (BATCH, MOL_LEN, ATOM_FEAT), dtype=jnp.float32)
    bond_list = jax.random.normal(k_bond, (BATCH, NUM_BONDS, BOND_FEAT), dtype=jnp.float32)
    atom_degree_list = jax.random.randint(k_ad, (BATCH, MOL_LEN, MAX_NBR), 0, MOL_LEN)
    bond_degree_list = jax.random.randint(k_bd, (BATCH, MOL_LEN, MAX_NBR), 0, NUM_BONDS)
    atom_mask = (jnp.arange(MOL_LEN)[None, :]
                 < jnp.array([MOL_LEN - 2, MOL_LEN - 1])[:, None]).astype(jnp.float32)

    fp_fn = jax.jit(fingerprint_pallas)
    activated, mol_pred = fp_fn(atom_list, bond_list, atom_degree_list,
                                bond_degree_list, atom_mask, params)
    jax.block_until_ready((activated, mol_pred))

    ref_act, ref_mol = fingerprint_reference(
        atom_list, bond_list, atom_degree_list, bond_degree_list, atom_mask, params)

    # 1e-2 tolerance: the kernel uses the approximate EUP reciprocal for softmax
    # denominators (pl.reciprocal(approx=True)); everything else is exact f32.
    np.testing.assert_allclose(np.asarray(activated), np.asarray(ref_act),
                               rtol=1e-2, atol=1e-2)
    np.testing.assert_allclose(np.asarray(mol_pred), np.asarray(ref_mol),
                               rtol=1e-2, atol=1e-2)

    print("KERNEL_OK")
</pallas_src>

<mosaic_0001>
module attributes {stable_mosaic.version = 11 : i64} {
  func.func @_fingerprint_kernel(%arg0: memref<16x16xf32, #tpu.memory_space<vmem>>, %arg1: memref<64x24xf32, #tpu.memory_space<vmem>>, %arg2: memref<64x16xf32, #tpu.memory_space<vmem>>, %arg3: memref<16x4x1xf32, #tpu.memory_space<vmem>>, %arg4: memref<16x4x1xf32, #tpu.memory_space<vmem>>, %arg5: memref<2x16xf32, #tpu.memory_space<vmem>>, %arg6: memref<2x8x1xf32, #tpu.memory_space<vmem>>, %arg7: memref<2x8x1xf32, #tpu.memory_space<vmem>>, %arg8: memref<16x32xf32, #tpu.memory_space<vmem>>, %arg9: memref<1x32xf32, #tpu.memory_space<vmem>>, %arg10: memref<24x32xf32, #tpu.memory_space<vmem>>, %arg11: memref<1x32xf32, #tpu.memory_space<vmem>>, %arg12: memref<2x32x33xf32, #tpu.memory_space<vmem>>, %arg13: memref<2x1x33xf32, #tpu.memory_space<vmem>>, %arg14: memref<2x1x33xf32, #tpu.memory_space<vmem>>, %arg15: memref<2x2x32x96xf32, #tpu.memory_space<vmem>>, %arg16: memref<2x2x1x96xf32, #tpu.memory_space<vmem>>, %arg17: memref<32x33xf32, #tpu.memory_space<vmem>>, %arg18: memref<1x33xf32, #tpu.memory_space<vmem>>, %arg19: memref<1x33xf32, #tpu.memory_space<vmem>>, %arg20: memref<2x32x96xf32, #tpu.memory_space<vmem>>, %arg21: memref<2x1x96xf32, #tpu.memory_space<vmem>>, %arg22: memref<16x32xf32, #tpu.memory_space<vmem>>, %arg23: memref<2x32xf32, #tpu.memory_space<vmem>>) attributes {dimension_semantics = [], scalar_prefetch = 0 : i64, scratch_operands = 0 : i64, tpu.core_type = #tpu.core_type<tc>} {
    %c0 = arith.constant 0 : index
    %c0_0 = arith.constant 0 : index
    %0 = vector.load %arg0[%c0, %c0_0] : memref<16x16xf32, #tpu.memory_space<vmem>>, vector<16x16xf32>
    %c0_1 = arith.constant 0 : index
    %c0_2 = arith.constant 0 : index
    %1 = vector.load %arg1[%c0_1, %c0_2] : memref<64x24xf32, #tpu.memory_space<vmem>>, vector<64x24xf32>
    %c0_3 = arith.constant 0 : index
    %c0_4 = arith.constant 0 : index
    %2 = vector.load %arg2[%c0_3, %c0_4] : memref<64x16xf32, #tpu.memory_space<vmem>>, vector<64x16xf32>
    %c0_5 = arith.constant 0 : index
    %c0_6 = arith.constant 0 : index
    %c0_7 = arith.constant 0 : index
    %3 = vector.load %arg3[%c0_5, %c0_6, %c0_7] : memref<16x4x1xf32, #tpu.memory_space<vmem>>, vector<16x4x1xf32>
    %c0_8 = arith.constant 0 : index
    %c0_9 = arith.constant 0 : index
    %c0_10 = arith.constant 0 : index
    %4 = vector.load %arg4[%c0_8, %c0_9, %c0_10] : memref<16x4x1xf32, #tpu.memory_space<vmem>>, vector<16x4x1xf32>
    %c0_11 = arith.constant 0 : index
    %c0_12 = arith.constant 0 : index
    %5 = vector.load %arg5[%c0_11, %c0_12] : memref<2x16xf32, #tpu.memory_space<vmem>>, vector<2x16xf32>
    %c0_13 = arith.constant 0 : index
    %c0_14 = arith.constant 0 : index
    %c0_15 = arith.constant 0 : index
    %6 = vector.load %arg6[%c0_13, %c0_14, %c0_15] : memref<2x8x1xf32, #tpu.memory_space<vmem>>, vector<2x8x1xf32>
    %c0_16 = arith.constant 0 : index
    %c0_17 = arith.constant 0 : index
    %c0_18 = arith.constant 0 : index
    %7 = vector.load %arg7[%c0_16, %c0_17, %c0_18] : memref<2x8x1xf32, #tpu.memory_space<vmem>>, vector<2x8x1xf32>
    %c0_19 = arith.constant 0 : index
    %c0_20 = arith.constant 0 : index
    %8 = vector.load %arg8[%c0_19, %c0_20] : memref<16x32xf32, #tpu.memory_space<vmem>>, vector<16x32xf32>
    %cst = arith.constant dense<0.000000e+00> : vector<16x32xf32>
    %9 = tpu.matmul %0, %8, %cst {dimension_numbers = #tpu.dot_dimension_numbers<[1], [0], [0], [1], [0, 0, 1, 1], [], []>} : vector<16x16xf32>, vector<16x32xf32>, vector<16x32xf32> -> vector<16x32xf32>
    %c0_21 = arith.constant 0 : index
    %c0_22 = arith.constant 0 : index
    %10 = vector.load %arg9[%c0_21, %c0_22] : memref<1x32xf32, #tpu.memory_space<vmem>>, vector<1x32xf32>
    %11 = vector.broadcast %10 : vector<1x32xf32> to vector<16x32xf32>
    %12 = arith.addf %9, %11 : vector<16x32xf32>
    %cst_23 = arith.constant 0.000000e+00 : f32
    %13 = vector.broadcast %cst_23 : f32 to vector<16x32xf32>
    %14 = arith.cmpf ogt, %12, %13 : vector<16x32xf32>
    %cst_24 = arith.constant 0.00999999977 : f32
    %15 = vector.broadcast %cst_24 : f32 to vector<16x32xf32>
    %16 = arith.mulf %15, %12 : vector<16x32xf32>
    %17 = arith.select %14, %12, %16 : vector<16x32xi1>, vector<16x32xf32>
    %c0_25 = arith.constant 0 : index
    %c0_26 = arith.constant 0 : index
    %18 = vector.load %arg10[%c0_25, %c0_26] : memref<24x32xf32, #tpu.memory_space<vmem>>, vector<24x32xf32>
    %cst_27 = arith.constant dense<0.000000e+00> : vector<64x32xf32>
    %19 = tpu.matmul %1, %18, %cst_27 {dimension_numbers = #tpu.dot_dimension_numbers<[1], [0], [0], [1], [0, 0, 1, 1], [], []>} : vector<64x24xf32>, vector<24x32xf32>, vector<64x32xf32> -> vector<64x32xf32>
    %c0_28 = arith.constant 0 : index
    %c0_29 = arith.constant 0 : index
    %20 = vector.load %arg11[%c0_28, %c0_29] : memref<1x32xf32, #tpu.memory_space<vmem>>, vector<1x32xf32>
    %21 = vector.broadcast %20 : vector<1x32xf32> to vector<64x32xf32>
    %22 = arith.addf %19, %21 : vector<64x32xf32>
    %cst_30 = arith.constant 0.000000e+00 : f32
    %23 = vector.broadcast %cst_30 : f32 to vector<64x32xf32>
    %24 = arith.cmpf ogt, %22, %23 : vector<64x32xf32>
    %cst_31 = arith.constant 0.00999999977 : f32
    %25 = vector.broadcast %cst_31 : f32 to vector<64x32xf32>
    %26 = arith.mulf %25, %22 : vector<64x32xf32>
    %27 = arith.select %24, %22, %26 : vector<64x32xi1>, vector<64x32xf32>
    %c0_32 = arith.constant 0 : index
    %c0_33 = arith.constant 0 : index
    %c0_34 = arith.constant 0 : index
    %28 = vector.load %arg12[%c0_32, %c0_33, %c0_34] : memref<2x32x33xf32, #tpu.memory_space<vmem>>, vector<1x32x33xf32>
    %29 = vector.shape_cast %28 : vector<1x32x33xf32> to vector<32x33xf32>
    %cst_35 = arith.constant dense<0.000000e+00> : vector<64x33xf32>
    %30 = tpu.matmul %27, %29, %cst_35 {dimension_numbers = #tpu.dot_dimension_numbers<[1], [0], [0], [1], [0, 0, 1, 1], [], []>} : vector<64x32xf32>, vector<32x33xf32>, vector<64x33xf32> -> vector<64x33xf32>
    %c0_36 = arith.constant 0 : index
    %c0_37 = arith.constant 0 : index
    %c0_38 = arith.constant 0 : index
    %31 = vector.load %arg13[%c0_36, %c0_37, %c0_38] : memref<2x1x33xf32, #tpu.memory_space<vmem>>, vector<1x1x33xf32>
    %32 = vector.shape_cast %31 : vector<1x1x33xf32> to vector<1x33xf32>
    %33 = vector.broadcast %32 : vector<1x33xf32> to vector<64x33xf32>
    %34 = arith.addf %30, %33 : vector<64x33xf32>
    %35 = vector.shape_cast %34 : vector<64x33xf32> to vector<16x4x33xf32>
    %36 = vector.extract_strided_slice %35 {offsets = [0, 0, 0], sizes = [16, 4, 32], strides = [1, 1, 1]} : vector<16x4x33xf32> to vector<16x4x32xf32>
    %37 = vector.extract_strided_slice %35 {offsets = [0, 0, 32], sizes = [16, 4, 1], strides = [1, 1, 1]} : vector<16x4x33xf32> to vector<16x4x1xf32>
    %c0_39 = arith.constant 0 : index
    %c0_40 = arith.constant 0 : index
    %c0_41 = arith.constant 0 : index
    %38 = vector.load %arg14[%c0_39, %c0_40, %c0_41] : memref<2x1x33xf32, #tpu.memory_space<vmem>>, vector<1x1x33xf32>
    %39 = vector.shape_cast %38 : vector<1x1x33xf32> to vector<1x33xf32>
    %40 = vector.extract_strided_slice %39 {offsets = [0, 0], sizes = [1, 32], strides = [1, 1]} : vector<1x33xf32> to vector<1x32xf32>
    %41 = vector.broadcast %40 : vector<1x32xf32> to vector<16x32xf32>
    %42 = arith.mulf %17, %41 : vector<16x32xf32>
    %cst_42 = arith.constant dense<0.000000e+00> : vector<16xf32>
    %43 = vector.multi_reduction <add>, %42, %cst_42 [1] : vector<16x32xf32> to vector<16xf32>
    %44 = vector.shape_cast %43 : vector<16xf32> to vector<16x1xf32>
    %45 = vector.extract_strided_slice %39 {offsets = [0, 32], sizes = [1, 1], strides = [1, 1]} : vector<1x33xf32> to vector<1x1xf32>
    %46 = vector.broadcast %45 : vector<1x1xf32> to vector<16x1xf32>
    %47 = arith.addf %44, %46 : vector<16x1xf32>
    %48 = vector.shape_cast %47 : vector<16x1xf32> to vector<16x1x1xf32>
    %49 = vector.broadcast %48 : vector<16x1x1xf32> to vector<16x4x1xf32>
    %50 = arith.addf %49, %37 : vector<16x4x1xf32>
    %cst_43 = arith.constant 0.000000e+00 : f32
    %51 = vector.broadcast %cst_43 : f32 to vector<16x4x1xf32>
    %52 = arith.cmpf ogt, %50, %51 : vector<16x4x1xf32>
    %cst_44 = arith.constant 0.00999999977 : f32
    %53 = vector.broadcast %cst_44 : f32 to vector<16x4x1xf32>
    %54 = arith.mulf %53, %50 : vector<16x4x1xf32>
    %55 = arith.select %52, %50, %54 : vector<16x4x1xi1>, vector<16x4x1xf32>
    %56 = arith.addf %55, %4 : vector<16x4x1xf32>
    %cst_45 = arith.constant dense<0xFF800000> : vector<16x1xf32>
    %57 = vector.multi_reduction <maximumf>, %56, %cst_45 [1] : vector<16x4x1xf32> to vector<16x1xf32>
    %58 = vector.shape_cast %57 : vector<16x1xf32> to vector<16x1x1xf32>
    %59 = vector.broadcast %58 : vector<16x1x1xf32> to vector<16x4x1xf32>
    %60 = arith.subf %56, %59 : vector<16x4x1xf32>
    %61 = math.exp %60 : vector<16x4x1xf32>
    %cst_46 = arith.constant dense<0.000000e+00> : vector<16x1xf32>
    %62 = vector.multi_reduction <add>, %61, %cst_46 [1] : vector<16x4x1xf32> to vector<16x1xf32>
    %63 = vector.shape_cast %62 : vector<16x1xf32> to vector<16x1x1xf32>
    %64 = tpu.reciprocal %63 {approx = true} : vector<16x1x1xf32> -> vector<16x1x1xf32>
    %65 = vector.broadcast %64 : vector<16x1x1xf32> to vector<16x4x1xf32>
    %66 = arith.mulf %61, %65 : vector<16x4x1xf32>
    %67 = arith.mulf %66, %3 : vector<16x4x1xf32>
    %68 = vector.broadcast %67 : vector<16x4x1xf32> to vector<16x4x32xf32>
    %69 = arith.mulf %68, %36 : vector<16x4x32xf32>
    %cst_47 = arith.constant dense<0.000000e+00> : vector<16x32xf32>
    %70 = vector.multi_reduction <add>, %69, %cst_47 [1] : vector<16x4x32xf32> to vector<16x32xf32>
    %cst_48 = arith.constant 0.000000e+00 : f32
    %71 = vector.broadcast %cst_48 : f32 to vector<16x32xf32>
    %72 = arith.cmpf ogt, %70, %71 : vector<16x32xf32>
    %73 = math.exp %70 : vector<16x32xf32>
    %cst_49 = arith.constant 1.000000e+00 : f32
    %74 = vector.broadcast %cst_49 : f32 to vector<16x32xf32>
    %75 = arith.subf %73, %74 : vector<16x32xf32>
    %76 = arith.select %72, %70, %75 : vector<16x32xi1>, vector<16x32xf32>
    %c0_50 = arith.constant 0 : index
    %c0_51 = arith.constant 0 : index
    %c0_52 = arith.constant 0 : index
    %c0_53 = arith.constant 0 : index
    %77 = vector.load %arg15[%c0_50, %c0_51, %c0_52, %c0_53] : memref<2x2x32x96xf32, #tpu.memory_space<vmem>>, vector<1x2x32x96xf32>
    %78 = vector.shape_cast %77 : vector<1x2x32x96xf32> to vector<2x32x96xf32>
    %c0_54 = arith.constant 0 : index
    %c0_55 = arith.constant 0 : index
    %c0_56 = arith.constant 0 : index
    %c0_57 = arith.constant 0 : index
    %79 = vector.load %arg16[%c0_54, %c0_55, %c0_56, %c0_57] : memref<2x2x1x96xf32, #tpu.memory_space<vmem>>, vector<1x2x1x96xf32>
    %80 = vector.shape_cast %79 : vector<1x2x1x96xf32> to vector<2x1x96xf32>
    %81 = vector.extract_strided_slice %78 {offsets = [0, 0, 0], sizes = [1, 32, 96], strides = [1, 1, 1]} : vector<2x32x96xf32> to vector<1x32x96xf32>
    %82 = vector.shape_cast %81 : vector<1x32x96xf32> to vector<32x96xf32>
    %cst_58 = arith.constant dense<0.000000e+00> : vector<16x96xf32>
    %83 = tpu.matmul %76, %82, %cst_58 {dimension_numbers = #tpu.dot_dimension_numbers<[1], [0], [0], [1], [0, 0, 1, 1], [], []>} : vector<16x32xf32>, vector<32x96xf32>, vector<16x96xf32> -> vector<16x96xf32>
    %84 = vector.extract_strided_slice %80 {offsets = [0, 0, 0], sizes = [1, 1, 96], strides = [1, 1, 1]} : vector<2x1x96xf32> to vector<1x1x96xf32>
    %85 = vector.shape_cast %84 : vector<1x1x96xf32> to vector<1x96xf32>
    %86 = vector.broadcast %85 : vector<1x96xf32> to vector<16x96xf32>
    %87 = arith.addf %83, %86 : vector<16x96xf32>
    %88 = vector.extract_strided_slice %78 {offsets = [1, 0, 0], sizes = [1, 32, 96], strides = [1, 1, 1]} : vector<2x32x96xf32> to vector<1x32x96xf32>
    %89 = vector.shape_cast %88 : vector<1x32x96xf32> to vector<32x96xf32>
    %cst_59 = arith.constant dense<0.000000e+00> : vector<16x96xf32>
    %90 = tpu.matmul %17, %89, %cst_59 {dimension_numbers = #tpu.dot_dimension_numbers<[1], [0], [0], [1], [0, 0, 1, 1], [], []>} : vector<16x32xf32>, vector<32x96xf32>, vector<16x96xf32> -> vector<16x96xf32>
    %91 = vector.extract_strided_slice %80 {offsets = [1, 0, 0], sizes = [1, 1, 96], strides = [1, 1, 1]} : vector<2x1x96xf32> to vector<1x1x96xf32>
    %92 = vector.shape_cast %91 : vector<1x1x96xf32> to vector<1x96xf32>
    %93 = vector.broadcast %92 : vector<1x96xf32> to vector<16x96xf32>
    %94 = arith.addf %90, %93 : vector<16x96xf32>
    %95 = vector.extract_strided_slice %87 {offsets = [0, 0], sizes = [16, 32], strides = [1, 1]} : vector<16x96xf32> to vector<16x32xf32>
    %96 = vector.extract_strided_slice %94 {offsets = [0, 0], sizes = [16, 32], strides = [1, 1]} : vector<16x96xf32> to vector<16x32xf32>
    %97 = arith.addf %95, %96 : vector<16x32xf32>
    %cst_60 = arith.constant 0.000000e+00 : f32
    %98 = vector.broadcast %cst_60 : f32 to vector<16x32xf32>
    %99 = arith.subf %98, %97 : vector<16x32xf32>
    %100 = math.exp %99 : vector<16x32xf32>
    %cst_61 = arith.constant 1.000000e+00 : f32
    %101 = vector.broadcast %cst_61 : f32 to vector<16x32xf32>
    %102 = arith.addf %101, %100 : vector<16x32xf32>
    %cst_62 = arith.constant 1.000000e+00 : f32
    %103 = vector.broadcast %cst_62 : f32 to vector<16x32xf32>
    %104 = arith.divf %103, %102 : vector<16x32xf32>
    %105 = vector.extract_strided_slice %87 {offsets = [0, 32], sizes = [16, 32], strides = [1, 1]} : vector<16x96xf32> to vector<16x32xf32>
    %106 = vector.extract_strided_slice %94 {offsets = [0, 32], sizes = [16, 32], strides = [1, 1]} : vector<16x96xf32> to vector<16x32xf32>
    %107 = arith.addf %105, %106 : vector<16x32xf32>
    %cst_63 = arith.constant 0.000000e+00 : f32
    %108 = vector.broadcast %cst_63 : f32 to vector<16x32xf32>
    %109 = arith.subf %108, %107 : vector<16x32xf32>
    %110 = math.exp %109 : vector<16x32xf32>
    %cst_64 = arith.constant 1.000000e+00 : f32
    %111 = vector.broadcast %cst_64 : f32 to vector<16x32xf32>
    %112 = arith.addf %111, %110 : vector<16x32xf32>
    %cst_65 = arith.constant 1.000000e+00 : f32
    %113 = vector.broadcast %cst_65 : f32 to vector<16x32xf32>
    %114 = arith.divf %113, %112 : vector<16x32xf32>
    %115 = vector.extract_strided_slice %87 {offsets = [0, 64], sizes = [16, 32], strides = [1, 1]} : vector<16x96xf32> to vector<16x32xf32>
    %116 = vector.extract_strided_slice %94 {offsets = [0, 64], sizes = [16, 32], strides = [1, 1]} : vector<16x96xf32> to vector<16x32xf32>
    %117 = arith.mulf %104, %116 : vector<16x32xf32>
    %118 = arith.addf %115, %117 : vector<16x32xf32>
    %119 = math.tanh %118 : vector<16x32xf32>
    %cst_66 = arith.constant 1.000000e+00 : f32
    %120 = vector.broadcast %cst_66 : f32 to vector<16x32xf32>
    %121 = arith.subf %120, %114 : vector<16x32xf32>
    %122 = arith.mulf %121, %119 : vector<16x32xf32>
    %123 = arith.mulf %114, %17 : vector<16x32xf32>
    %124 = arith.addf %122, %123 : vector<16x32xf32>
    %cst_67 = arith.constant 0.000000e+00 : f32
    %125 = vector.broadcast %cst_67 : f32 to vector<16x32xf32>
    %126 = arith.maximumf %124, %125 : vector<16x32xf32>
    %cst_68 = arith.constant dense<0.000000e+00> : vector<64x32xf32>
    %127 = tpu.matmul %2, %126, %cst_68 {dimension_numbers = #tpu.dot_dimension_numbers<[1], [0], [0], [1], [0, 0, 1, 1], [], []>} : vector<64x16xf32>, vector<16x32xf32>, vector<64x32xf32> -> vector<64x32xf32>
    %c1 = arith.constant 1 : index
    %c0_69 = arith.constant 0 : index
    %c0_70 = arith.constant 0 : index
    %128 = vector.load %arg12[%c1, %c0_69, %c0_70] : memref<2x32x33xf32, #tpu.memory_space<vmem>>, vector<1x32x33xf32>
    %129 = vector.shape_cast %128 : vector<1x32x33xf32> to vector<32x33xf32>
    %cst_71 = arith.constant dense<0.000000e+00> : vector<64x33xf32>
    %130 = tpu.matmul %127, %129, %cst_71 {dimension_numbers = #tpu.dot_dimension_numbers<[1], [0], [0], [1], [0, 0, 1, 1], [], []>} : vector<64x32xf32>, vector<32x33xf32>, vector<64x33xf32> -> vector<64x33xf32>
    %c1_72 = arith.constant 1 : index
    %c0_73 = arith.constant 0 : index
    %c0_74 = arith.constant 0 : index
    %131 = vector.load %arg13[%c1_72, %c0_73, %c0_74] : memref<2x1x33xf32, #tpu.memory_space<vmem>>, vector<1x1x33xf32>
    %132 = vector.shape_cast %131 : vector<1x1x33xf32> to vector<1x33xf32>
    %133 = vector.broadcast %132 : vector<1x33xf32> to vector<64x33xf32>
    %134 = arith.addf %130, %133 : vector<64x33xf32>
    %135 = vector.shape_cast %134 : vector<64x33xf32> to vector<16x4x33xf32>
    %136 = vector.extract_strided_slice %135 {offsets = [0, 0, 0], sizes = [16, 4, 32], strides = [1, 1, 1]} : vector<16x4x33xf32> to vector<16x4x32xf32>
    %137 = vector.extract_strided_slice %135 {offsets = [0, 0, 32], sizes = [16, 4, 1], strides = [1, 1, 1]} : vector<16x4x33xf32> to vector<16x4x1xf32>
    %c1_75 = arith.constant 1 : index
    %c0_76 = arith.constant 0 : index
    %c0_77 = arith.constant 0 : index
    %138 = vector.load %arg14[%c1_75, %c0_76, %c0_77] : memref<2x1x33xf32, #tpu.memory_space<vmem>>, vector<1x1x33xf32>
    %139 = vector.shape_cast %138 : vector<1x1x33xf32> to vector<1x33xf32>
    %140 = vector.extract_strided_slice %139 {offsets = [0, 0], sizes = [1, 32], strides = [1, 1]} : vector<1x33xf32> to vector<1x32xf32>
    %141 = vector.broadcast %140 : vector<1x32xf32> to vector<16x32xf32>
    %142 = arith.mulf %126, %141 : vector<16x32xf32>
    %cst_78 = arith.constant dense<0.000000e+00> : vector<16xf32>
    %143 = vector.multi_reduction <add>, %142, %cst_78 [1] : vector<16x32xf32> to vector<16xf32>
    %144 = vector.shape_cast %143 : vector<16xf32> to vector<16x1xf32>
    %145 = vector.extract_strided_slice %139 {offsets = [0, 32], sizes = [1, 1], strides = [1, 1]} : vector<1x33xf32> to vector<1x1xf32>
    %146 = vector.broadcast %145 : vector<1x1xf32> to vector<16x1xf32>
    %147 = arith.addf %144, %146 : vector<16x1xf32>
    %148 = vector.shape_cast %147 : vector<16x1xf32> to vector<16x1x1xf32>
    %149 = vector.broadcast %148 : vector<16x1x1xf32> to vector<16x4x1xf32>
    %150 = arith.addf %149, %137 : vector<16x4x1xf32>
    %cst_79 = arith.constant 0.000000e+00 : f32
    %151 = vector.broadcast %cst_79 : f32 to vector<16x4x1xf32>
    %152 = arith.cmpf ogt, %150, %151 : vector<16x4x1xf32>
    %cst_80 = arith.constant 0.00999999977 : f32
    %153 = vector.broadcast %cst_80 : f32 to vector<16x4x1xf32>
    %154 = arith.mulf %153, %150 : vector<16x4x1xf32>
    %155 = arith.select %152, %150, %154 : vector<16x4x1xi1>, vector<16x4x1xf32>
    %156 = arith.addf %155, %4 : vector<16x4x1xf32>
    %cst_81 = arith.constant dense<0xFF800000> : vector<16x1xf32>
    %157 = vector.multi_reduction <maximumf>, %156, %cst_81 [1] : vector<16x4x1xf32> to vector<16x1xf32>
    %158 = vector.shape_cast %157 : vector<16x1xf32> to vector<16x1x1xf32>
    %159 = vector.broadcast %158 : vector<16x1x1xf32> to vector<16x4x1xf32>
    %160 = arith.subf %156, %159 : vector<16x4x1xf32>
    %161 = math.exp %160 : vector<16x4x1xf32>
    %cst_82 = arith.constant dense<0.000000e+00> : vector<16x1xf32>
    %162 = vector.multi_reduction <add>, %161, %cst_82 [1] : vector<16x4x1xf32> to vector<16x1xf32>
    %163 = vector.shape_cast %162 : vector<16x1xf32> to vector<16x1x1xf32>
    %164 = tpu.reciprocal %163 {approx = true} : vector<16x1x1xf32> -> vector<16x1x1xf32>
    %165 = vector.broadcast %164 : vector<16x1x1xf32> to vector<16x4x1xf32>
    %166 = arith.mulf %161, %165 : vector<16x4x1xf32>
    %167 = arith.mulf %166, %3 : vector<16x4x1xf32>
    %168 = vector.broadcast %167 : vector<16x4x1xf32> to vector<16x4x32xf32>
    %169 = arith.mulf %168, %136 : vector<16x4x32xf32>
    %cst_83 = arith.constant dense<0.000000e+00> : vector<16x32xf32>
    %170 = vector.multi_reduction <add>, %169, %cst_83 [1] : vector<16x4x32xf32> to vector<16x32xf32>
    %cst_84 = arith.constant 0.000000e+00 : f32
    %171 = vector.broadcast %cst_84 : f32 to vector<16x32xf32>
    %172 = arith.cmpf ogt, %170, %171 : vector<16x32xf32>
    %173 = math.exp %170 : vector<16x32xf32>
    %cst_85 = arith.constant 1.000000e+00 : f32
    %174 = vector.broadcast %cst_85 : f32 to vector<16x32xf32>
    %175 = arith.subf %173, %174 : vector<16x32xf32>
    %176 = arith.select %172, %170, %175 : vector<16x32xi1>, vector<16x32xf32>
    %c1_86 = arith.constant 1 : index
    %c0_87 = arith.constant 0 : index
    %c0_88 = arith.constant 0 : index
    %c0_89 = arith.constant 0 : index
    %177 = vector.load %arg15[%c1_86, %c0_87, %c0_88, %c0_89] : memref<2x2x32x96xf32, #tpu.memory_space<vmem>>, vector<1x2x32x96xf32>
    %178 = vector.shape_cast %177 : vector<1x2x32x96xf32> to vector<2x32x96xf32>
    %c1_90 = arith.constant 1 : index
    %c0_91 = arith.constant 0 : index
    %c0_92 = arith.constant 0 : index
    %c0_93 = arith.constant 0 : index
    %179 = vector.load %arg16[%c1_90, %c0_91, %c0_92, %c0_93] : memref<2x2x1x96xf32, #tpu.memory_space<vmem>>, vector<1x2x1x96xf32>
    %180 = vector.shape_cast %179 : vector<1x2x1x96xf32> to vector<2x1x96xf32>
    %181 = vector.extract_strided_slice %178 {offsets = [0, 0, 0], sizes = [1, 32, 96], strides = [1, 1, 1]} : vector<2x32x96xf32> to vector<1x32x96xf32>
    %182 = vector.shape_cast %181 : vector<1x32x96xf32> to vector<32x96xf32>
    %cst_94 = arith.constant dense<0.000000e+00> : vector<16x96xf32>
    %183 = tpu.matmul %176, %182, %cst_94 {dimension_numbers = #tpu.dot_dimension_numbers<[1], [0], [0], [1], [0, 0, 1, 1], [], []>} : vector<16x32xf32>, vector<32x96xf32>, vector<16x96xf32> -> vector<16x96xf32>
    %184 = vector.extract_strided_slice %180 {offsets = [0, 0, 0], sizes = [1, 1, 96], strides = [1, 1, 1]} : vector<2x1x96xf32> to vector<1x1x96xf32>
    %185 = vector.shape_cast %184 : vector<1x1x96xf32> to vector<1x96xf32>
    %186 = vector.broadcast %185 : vector<1x96xf32> to vector<16x96xf32>
    %187 = arith.addf %183, %186 : vector<16x96xf32>
    %188 = vector.extract_strided_slice %178 {offsets = [1, 0, 0], sizes = [1, 32, 96], strides = [1, 1, 1]} : vector<2x32x96xf32> to vector<1x32x96xf32>
    %189 = vector.shape_cast %188 : vector<1x32x96xf32> to vector<32x96xf32>
    %cst_95 = arith.constant dense<0.000000e+00> : vector<16x96xf32>
    %190 = tpu.matmul %124, %189, %cst_95 {dimension_numbers = #tpu.dot_dimension_numbers<[1], [0], [0], [1], [0, 0, 1, 1], [], []>} : vector<16x32xf32>, vector<32x96xf32>, vector<16x96xf32> -> vector<16x96xf32>
    %191 = vector.extract_strided_slice %180 {offsets = [1, 0, 0], sizes = [1, 1, 96], strides = [1, 1, 1]} : vector<2x1x96xf32> to vector<1x1x96xf32>
    %192 = vector.shape_cast %191 : vector<1x1x96xf32> to vector<1x96xf32>
    %193 = vector.broadcast %192 : vector<1x96xf32> to vector<16x96xf32>
    %194 = arith.addf %190, %193 : vector<16x96xf32>
    %195 = vector.extract_strided_slice %187 {offsets = [0, 0], sizes = [16, 32], strides = [1, 1]} : vector<16x96xf32> to vector<16x32xf32>
    %196 = vector.extract_strided_slice %194 {offsets = [0, 0], sizes = [16, 32], strides = [1, 1]} : vector<16x96xf32> to vector<16x32xf32>
    %197 = arith.addf %195, %196 : vector<16x32xf32>
    %cst_96 = arith.constant 0.000000e+00 : f32
    %198 = vector.broadcast %cst_96 : f32 to vector<16x32xf32>
    %199 = arith.subf %198, %197 : vector<16x32xf32>
    %200 = math.exp %199 : vector<16x32xf32>
    %cst_97 = arith.constant 1.000000e+00 : f32
    %201 = vector.broadcast %cst_97 : f32 to vector<16x32xf32>
    %202 = arith.addf %201, %200 : vector<16x32xf32>
    %cst_98 = arith.constant 1.000000e+00 : f32
    %203 = vector.broadcast %cst_98 : f32 to vector<16x32xf32>
    %204 = arith.divf %203, %202 : vector<16x32xf32>
    %205 = vector.extract_strided_slice %187 {offsets = [0, 32], sizes = [16, 32], strides = [1, 1]} : vector<16x96xf32> to vector<16x32xf32>
    %206 = vector.extract_strided_slice %194 {offsets = [0, 32], sizes = [16, 32], strides = [1, 1]} : vector<16x96xf32> to vector<16x32xf32>
    %207 = arith.addf %205, %206 : vector<16x32xf32>
    %cst_99 = arith.constant 0.000000e+00 : f32
    %208 = vector.broadcast %cst_99 : f32 to vector<16x32xf32>
    %209 = arith.subf %208, %207 : vector<16x32xf32>
    %210 = math.exp %209 : vector<16x32xf32>
    %cst_100 = arith.constant 1.000000e+00 : f32
    %211 = vector.broadcast %cst_100 : f32 to vector<16x32xf32>
    %212 = arith.addf %211, %210 : vector<16x32xf32>
    %cst_101 = arith.constant 1.000000e+00 : f32
    %213 = vector.broadcast %cst_101 : f32 to vector<16x32xf32>
    %214 = arith.divf %213, %212 : vector<16x32xf32>
    %215 = vector.extract_strided_slice %187 {offsets = [0, 64], sizes = [16, 32], strides = [1, 1]} : vector<16x96xf32> to vector<16x32xf32>
    %216 = vector.extract_strided_slice %194 {offsets = [0, 64], sizes = [16, 32], strides = [1, 1]} : vector<16x96xf32> to vector<16x32xf32>
    %217 = arith.mulf %204, %216 : vector<16x32xf32>
    %218 = arith.addf %215, %217 : vector<16x32xf32>
    %219 = math.tanh %218 : vector<16x32xf32>
    %cst_102 = arith.constant 1.000000e+00 : f32
    %220 = vector.broadcast %cst_102 : f32 to vector<16x32xf32>
    %221 = arith.subf %220, %214 : vector<16x32xf32>
    %222 = arith.mulf %221, %219 : vector<16x32xf32>
    %223 = arith.mulf %214, %124 : vector<16x32xf32>
    %224 = arith.addf %222, %223 : vector<16x32xf32>
    %cst_103 = arith.constant 0.000000e+00 : f32
    %225 = vector.broadcast %cst_103 : f32 to vector<16x32xf32>
    %226 = arith.maximumf %224, %225 : vector<16x32xf32>
    %cst_104 = arith.constant dense<0.000000e+00> : vector<2x32xf32>
    %227 = tpu.matmul %5, %226, %cst_104 {dimension_numbers = #tpu.dot_dimension_numbers<[1], [0], [0], [1], [0, 0, 1, 1], [], []>} : vector<2x16xf32>, vector<16x32xf32>, vector<2x32xf32> -> vector<2x32xf32>
    %cst_105 = arith.constant 0.000000e+00 : f32
    %228 = vector.broadcast %cst_105 : f32 to vector<2x32xf32>
    %229 = arith.maximumf %227, %228 : vector<2x32xf32>
    %c0_106 = arith.constant 0 : index
    %c0_107 = arith.constant 0 : index
    %230 = vector.load %arg17[%c0_106, %c0_107] : memref<32x33xf32, #tpu.memory_space<vmem>>, vector<32x33xf32>
    %cst_108 = arith.constant dense<0.000000e+00> : vector<16x33xf32>
    %231 = tpu.matmul %226, %230, %cst_108 {dimension_numbers = #tpu.dot_dimension_numbers<[1], [0], [0], [1], [0, 0, 1, 1], [], []>} : vector<16x32xf32>, vector<32x33xf32>, vector<16x33xf32> -> vector<16x33xf32>
    %c0_109 = arith.constant 0 : index
    %c0_110 = arith.constant 0 : index
    %232 = vector.load %arg18[%c0_109, %c0_110] : memref<1x33xf32, #tpu.memory_space<vmem>>, vector<1x33xf32>
    %233 = vector.broadcast %232 : vector<1x33xf32> to vector<16x33xf32>
    %234 = arith.addf %231, %233 : vector<16x33xf32>
    %235 = vector.shape_cast %234 : vector<16x33xf32> to vector<2x8x33xf32>
    %236 = vector.extract_strided_slice %235 {offsets = [0, 0, 0], sizes = [2, 8, 32], strides = [1, 1, 1]} : vector<2x8x33xf32> to vector<2x8x32xf32>
    %237 = vector.extract_strided_slice %235 {offsets = [0, 0, 32], sizes = [2, 8, 1], strides = [1, 1, 1]} : vector<2x8x33xf32> to vector<2x8x1xf32>
    %c0_111 = arith.constant 0 : index
    %c0_112 = arith.constant 0 : index
    %238 = vector.load %arg19[%c0_111, %c0_112] : memref<1x33xf32, #tpu.memory_space<vmem>>, vector<1x33xf32>
    %239 = vector.extract_strided_slice %238 {offsets = [0, 0], sizes = [1, 32], strides = [1, 1]} : vector<1x33xf32> to vector<1x32xf32>
    %240 = vector.broadcast %239 : vector<1x32xf32> to vector<2x32xf32>
    %241 = arith.mulf %229, %240 : vector<2x32xf32>
    %cst_113 = arith.constant dense<0.000000e+00> : vector<2xf32>
    %242 = vector.multi_reduction <add>, %241, %cst_113 [1] : vector<2x32xf32> to vector<2xf32>
    %243 = vector.shape_cast %242 : vector<2xf32> to vector<2x1xf32>
    %244 = vector.extract_strided_slice %238 {offsets = [0, 32], sizes = [1, 1], strides = [1, 1]} : vector<1x33xf32> to vector<1x1xf32>
    %245 = vector.broadcast %244 : vector<1x1xf32> to vector<2x1xf32>
    %246 = arith.addf %243, %245 : vector<2x1xf32>
    %247 = vector.shape_cast %246 : vector<2x1xf32> to vector<2x1x1xf32>
    %248 = vector.broadcast %247 : vector<2x1x1xf32> to vector<2x8x1xf32>
    %249 = arith.addf %248, %237 : vector<2x8x1xf32>
    %cst_114 = arith.constant 0.000000e+00 : f32
    %250 = vector.broadcast %cst_114 : f32 to vector<2x8x1xf32>
    %251 = arith.cmpf ogt, %249, %250 : vector<2x8x1xf32>
    %cst_115 = arith.constant 0.00999999977 : f32
    %252 = vector.broadcast %cst_115 : f32 to vector<2x8x1xf32>
    %253 = arith.mulf %252, %249 : vector<2x8x1xf32>
    %254 = arith.select %251, %249, %253 : vector<2x8x1xi1>, vector<2x8x1xf32>
    %255 = arith.addf %254, %7 : vector<2x8x1xf32>
    %cst_116 = arith.constant dense<0xFF800000> : vector<2x1xf32>
    %256 = vector.multi_reduction <maximumf>, %255, %cst_116 [1] : vector<2x8x1xf32> to vector<2x1xf32>
    %257 = vector.shape_cast %256 : vector<2x1xf32> to vector<2x1x1xf32>
    %258 = vector.broadcast %257 : vector<2x1x1xf32> to vector<2x8x1xf32>
    %259 = arith.subf %255, %258 : vector<2x8x1xf32>
    %260 = math.exp %259 : vector<2x8x1xf32>
    %cst_117 = arith.constant dense<0.000000e+00> : vector<2x1xf32>
    %261 = vector.multi_reduction <add>, %260, %cst_117 [1] : vector<2x8x1xf32> to vector<2x1xf32>
    %262 = vector.shape_cast %261 : vector<2x1xf32> to vector<2x1x1xf32>
    %263 = tpu.reciprocal %262 {approx = true} : vector<2x1x1xf32> -> vector<2x1x1xf32>
    %264 = vector.broadcast %263 : vector<2x1x1xf32> to vector<2x8x1xf32>
    %265 = arith.mulf %260, %264 : vector<2x8x1xf32>
    %266 = arith.mulf %265, %6 : vector<2x8x1xf32>
    %267 = vector.broadcast %266 : vector<2x8x1xf32> to vector<2x8x32xf32>
    %268 = arith.mulf %267, %236 : vector<2x8x32xf32>
    %cst_118 = arith.constant dense<0.000000e+00> : vector<2x32xf32>
    %269 = vector.multi_reduction <add>, %268, %cst_118 [1] : vector<2x8x32xf32> to vector<2x32xf32>
    %cst_119 = arith.constant 0.000000e+00 : f32
    %270 = vector.broadcast %cst_119 : f32 to vector<2x32xf32>
    %271 = arith.cmpf ogt, %269, %270 : vector<2x32xf32>
    %272 = math.exp %269 : vector<2x32xf32>
    %cst_120 = arith.constant 1.000000e+00 : f32
    %273 = vector.broadcast %cst_120 : f32 to vector<2x32xf32>
    %274 = arith.subf %272, %273 : vector<2x32xf32>
    %275 = arith.select %271, %269, %274 : vector<2x32xi1>, vector<2x32xf32>
    %c0_121 = arith.constant 0 : index
    %c0_122 = arith.constant 0 : index
    %c0_123 = arith.constant 0 : index
    %276 = vector.load %arg20[%c0_121, %c0_122, %c0_123] : memref<2x32x96xf32, #tpu.memory_space<vmem>>, vector<2x32x96xf32>
    %c0_124 = arith.constant 0 : index
    %c0_125 = arith.constant 0 : index
    %c0_126 = arith.constant 0 : index
    %277 = vector.load %arg21[%c0_124, %c0_125, %c0_126] : memref<2x1x96xf32, #tpu.memory_space<vmem>>, vector<2x1x96xf32>
    %278 = vector.extract_strided_slice %276 {offsets = [0, 0, 0], sizes = [1, 32, 96], strides = [1, 1, 1]} : vector<2x32x96xf32> to vector<1x32x96xf32>
    %279 = vector.shape_cast %278 : vector<1x32x96xf32> to vector<32x96xf32>
    %cst_127 = arith.constant dense<0.000000e+00> : vector<2x96xf32>
    %280 = tpu.matmul %275, %279, %cst_127 {dimension_numbers = #tpu.dot_dimension_numbers<[1], [0], [0], [1], [0, 0, 1, 1], [], []>} : vector<2x32xf32>, vector<32x96xf32>, vector<2x96xf32> -> vector<2x96xf32>
    %281 = vector.extract_strided_slice %277 {offsets = [0, 0, 0], sizes = [1, 1, 96], strides = [1, 1, 1]} : vector<2x1x96xf32> to vector<1x1x96xf32>
    %282 = vector.shape_cast %281 : vector<1x1x96xf32> to vector<1x96xf32>
    %283 = vector.broadcast %282 : vector<1x96xf32> to vector<2x96xf32>
    %284 = arith.addf %280, %283 : vector<2x96xf32>
    %285 = vector.extract_strided_slice %276 {offsets = [1, 0, 0], sizes = [1, 32, 96], strides = [1, 1, 1]} : vector<2x32x96xf32> to vector<1x32x96xf32>
    %286 = vector.shape_cast %285 : vector<1x32x96xf32> to vector<32x96xf32>
    %cst_128 = arith.constant dense<0.000000e+00> : vector<2x96xf32>
    %287 = tpu.matmul %227, %286, %cst_128 {dimension_numbers = #tpu.dot_dimension_numbers<[1], [0], [0], [1], [0, 0, 1, 1], [], []>} : vector<2x32xf32>, vector<32x96xf32>, vector<2x96xf32> -> vector<2x96xf32>
    %288 = vector.extract_strided_slice %277 {offsets = [1, 0, 0], sizes = [1, 1, 96], strides = [1, 1, 1]} : vector<2x1x96xf32> to vector<1x1x96xf32>
    %289 = vector.shape_cast %288 : vector<1x1x96xf32> to vector<1x96xf32>
    %290 = vector.broadcast %289 : vector<1x96xf32> to vector<2x96xf32>
    %291 = arith.addf %287, %290 : vector<2x96xf32>
    %292 = vector.extract_strided_slice %284 {offsets = [0, 0], sizes = [2, 32], strides = [1, 1]} : vector<2x96xf32> to vector<2x32xf32>
    %293 = vector.extract_strided_slice %291 {offsets = [0, 0], sizes = [2, 32], strides = [1, 1]} : vector<2x96xf32> to vector<2x32xf32>
    %294 = arith.addf %292, %293 : vector<2x32xf32>
    %cst_129 = arith.constant 0.000000e+00 : f32
    %295 = vector.broadcast %cst_129 : f32 to vector<2x32xf32>
    %296 = arith.subf %295, %294 : vector<2x32xf32>
    %297 = math.exp %296 : vector<2x32xf32>
    %cst_130 = arith.constant 1.000000e+00 : f32
    %298 = vector.broadcast %cst_130 : f32 to vector<2x32xf32>
    %299 = arith.addf %298, %297 : vector<2x32xf32>
    %cst_131 = arith.constant 1.000000e+00 : f32
    %300 = vector.broadcast %cst_131 : f32 to vector<2x32xf32>
    %301 = arith.divf %300, %299 : vector<2x32xf32>
    %302 = vector.extract_strided_slice %284 {offsets = [0, 32], sizes = [2, 32], strides = [1, 1]} : vector<2x96xf32> to vector<2x32xf32>
    %303 = vector.extract_strided_slice %291 {offsets = [0, 32], sizes = [2, 32], strides = [1, 1]} : vector<2x96xf32> to vector<2x32xf32>
    %304 = arith.addf %302, %303 : vector<2x32xf32>
    %cst_132 = arith.constant 0.000000e+00 : f32
    %305 = vector.broadcast %cst_132 : f32 to vector<2x32xf32>
    %306 = arith.subf %305, %304 : vector<2x32xf32>
    %307 = math.exp %306 : vector<2x32xf32>
    %cst_133 = arith.constant 1.000000e+00 : f32
    %308 = vector.broadcast %cst_133 : f32 to vector<2x32xf32>
    %309 = arith.addf %308, %307 : vector<2x32xf32>
    %cst_134 = arith.constant 1.000000e+00 : f32
    %310 = vector.broadcast %cst_134 : f32 to vector<2x32xf32>
    %311 = arith.divf %310, %309 : vector<2x32xf32>
    %312 = vector.extract_strided_slice %284 {offsets = [0, 64], sizes = [2, 32], strides = [1, 1]} : vector<2x96xf32> to vector<2x32xf32>
    %313 = vector.extract_strided_slice %291 {offsets = [0, 64], sizes = [2, 32], strides = [1, 1]} : vector<2x96xf32> to vector<2x32xf32>
    %314 = arith.mulf %301, %313 : vector<2x32xf32>
    %315 = arith.addf %312, %314 : vector<2x32xf32>
    %316 = math.tanh %315 : vector<2x32xf32>
    %cst_135 = arith.constant 1.000000e+00 : f32
    %317 = vector.broadcast %cst_135 : f32 to vector<2x32xf32>
    %318 = arith.subf %317, %311 : vector<2x32xf32>
    %319 = arith.mulf %318, %316 : vector<2x32xf32>
    %320 = arith.mulf %311, %227 : vector<2x32xf32>
    %321 = arith.addf %319, %320 : vector<2x32xf32>
    %cst_136 = arith.constant 0.000000e+00 : f32
    %322 = vector.broadcast %cst_136 : f32 to vector<2x32xf32>
    %323 = arith.maximumf %321, %322 : vector<2x32xf32>
    %324 = vector.extract_strided_slice %238 {offsets = [0, 0], sizes = [1, 32], strides = [1, 1]} : vector<1x33xf32> to vector<1x32xf32>
    %325 = vector.broadcast %324 : vector<1x32xf32> to vector<2x32xf32>
    %326 = arith.mulf %323, %325 : vector<2x32xf32>
    %cst_137 = arith.constant dense<0.000000e+00> : vector<2xf32>
    %327 = vector.multi_reduction <add>, %326, %cst_137 [1] : vector<2x32xf32> to vector<2xf32>
    %328 = vector.shape_cast %327 : vector<2xf32> to vector<2x1xf32>
    %329 = vector.extract_strided_slice %238 {offsets = [0, 32], sizes = [1, 1], strides = [1, 1]} : vector<1x33xf32> to vector<1x1xf32>
    %330 = vector.broadcast %329 : vector<1x1xf32> to vector<2x1xf32>
    %331 = arith.addf %328, %330 : vector<2x1xf32>
    %332 = vector.shape_cast %331 : vector<2x1xf32> to vector<2x1x1xf32>
    %333 = vector.broadcast %332 : vector<2x1x1xf32> to vector<2x8x1xf32>
    %334 = arith.addf %333, %237 : vector<2x8x1xf32>
    %cst_138 = arith.constant 0.000000e+00 : f32
    %335 = vector.broadcast %cst_138 : f32 to vector<2x8x1xf32>
    %336 = arith.cmpf ogt, %334, %335 : vector<2x8x1xf32>
    %cst_139 = arith.constant 0.00999999977 : f32
    %337 = vector.broadcast %cst_139 : f32 to vector<2x8x1xf32>
    %338 = arith.mulf %337, %334 : vector<2x8x1xf32>
    %339 = arith.select %336, %334, %338 : vector<2x8x1xi1>, vector<2x8x1xf32>
    %340 = arith.addf %339, %7 : vector<2x8x1xf32>
    %cst_140 = arith.constant dense<0xFF800000> : vector<2x1xf32>
    %341 = vector.multi_reduction <maximumf>, %340, %cst_140 [1] : vector<2x8x1xf32> to vector<2x1xf32>
    %342 = vector.shape_cast %341 : vector<2x1xf32> to vector<2x1x1xf32>
    %343 = vector.broadcast %342 : vector<2x1x1xf32> to vector<2x8x1xf32>
    %344 = arith.subf %340, %343 : vector<2x8x1xf32>
    %345 = math.exp %344 : vector<2x8x1xf32>
    %cst_141 = arith.constant dense<0.000000e+00> : vector<2x1xf32>
    %346 = vector.multi_reduction <add>, %345, %cst_141 [1] : vector<2x8x1xf32> to vector<2x1xf32>
    %347 = vector.shape_cast %346 : vector<2x1xf32> to vector<2x1x1xf32>
    %348 = tpu.reciprocal %347 {approx = true} : vector<2x1x1xf32> -> vector<2x1x1xf32>
    %349 = vector.broadcast %348 : vector<2x1x1xf32> to vector<2x8x1xf32>
    %350 = arith.mulf %345, %349 : vector<2x8x1xf32>
    %351 = arith.mulf %350, %6 : vector<2x8x1xf32>
    %352 = vector.broadcast %351 : vector<2x8x1xf32> to vector<2x8x32xf32>
    %353 = arith.mulf %352, %236 : vector<2x8x32xf32>
    %cst_142 = arith.constant dense<0.000000e+00> : vector<2x32xf32>
    %354 = vector.multi_reduction <add>, %353, %cst_142 [1] : vector<2x8x32xf32> to vector<2x32xf32>
    %cst_143 = arith.constant 0.000000e+00 : f32
    %355 = vector.broadcast %cst_143 : f32 to vector<2x32xf32>
    %356 = arith.cmpf ogt, %354, %355 : vector<2x32xf32>
    %357 = math.exp %354 : vector<2x32xf32>
    %cst_144 = arith.constant 1.000000e+00 : f32
    %358 = vector.broadcast %cst_144 : f32 to vector<2x32xf32>
    %359 = arith.subf %357, %358 : vector<2x32xf32>
    %360 = arith.select %356, %354, %359 : vector<2x32xi1>, vector<2x32xf32>
    %c0_145 = arith.constant 0 : index
    %c0_146 = arith.constant 0 : index
    %c0_147 = arith.constant 0 : index
    %361 = vector.load %arg20[%c0_145, %c0_146, %c0_147] : memref<2x32x96xf32, #tpu.memory_space<vmem>>, vector<2x32x96xf32>
    %c0_148 = arith.constant 0 : index
    %c0_149 = arith.constant 0 : index
    %c0_150 = arith.constant 0 : index
    %362 = vector.load %arg21[%c0_148, %c0_149, %c0_150] : memref<2x1x96xf32, #tpu.memory_space<vmem>>, vector<2x1x96xf32>
    %363 = vector.extract_strided_slice %361 {offsets = [0, 0, 0], sizes = [1, 32, 96], strides = [1, 1, 1]} : vector<2x32x96xf32> to vector<1x32x96xf32>
    %364 = vector.shape_cast %363 : vector<1x32x96xf32> to vector<32x96xf32>
    %cst_151 = arith.constant dense<0.000000e+00> : vector<2x96xf32>
    %365 = tpu.matmul %360, %364, %cst_151 {dimension_numbers = #tpu.dot_dimension_numbers<[1], [0], [0], [1], [0, 0, 1, 1], [], []>} : vector<2x32xf32>, vector<32x96xf32>, vector<2x96xf32> -> vector<2x96xf32>
    %366 = vector.extract_strided_slice %362 {offsets = [0, 0, 0], sizes = [1, 1, 96], strides = [1, 1, 1]} : vector<2x1x96xf32> to vector<1x1x96xf32>
    %367 = vector.shape_cast %366 : vector<1x1x96xf32> to vector<1x96xf32>
    %368 = vector.broadcast %367 : vector<1x96xf32> to vector<2x96xf32>
    %369 = arith.addf %365, %368 : vector<2x96xf32>
    %370 = vector.extract_strided_slice %361 {offsets = [1, 0, 0], sizes = [1, 32, 96], strides = [1, 1, 1]} : vector<2x32x96xf32> to vector<1x32x96xf32>
    %371 = vector.shape_cast %370 : vector<1x32x96xf32> to vector<32x96xf32>
    %cst_152 = arith.constant dense<0.000000e+00> : vector<2x96xf32>
    %372 = tpu.matmul %321, %371, %cst_152 {dimension_numbers = #tpu.dot_dimension_numbers<[1], [0], [0], [1], [0, 0, 1, 1], [], []>} : vector<2x32xf32>, vector<32x96xf32>, vector<2x96xf32> -> vector<2x96xf32>
    %373 = vector.extract_strided_slice %362 {offsets = [1, 0, 0], sizes = [1, 1, 96], strides = [1, 1, 1]} : vector<2x1x96xf32> to vector<1x1x96xf32>
    %374 = vector.shape_cast %373 : vector<1x1x96xf32> to vector<1x96xf32>
    %375 = vector.broadcast %374 : vector<1x96xf32> to vector<2x96xf32>
    %376 = arith.addf %372, %375 : vector<2x96xf32>
    %377 = vector.extract_strided_slice %369 {offsets = [0, 0], sizes = [2, 32], strides = [1, 1]} : vector<2x96xf32> to vector<2x32xf32>
    %378 = vector.extract_strided_slice %376 {offsets = [0, 0], sizes = [2, 32], strides = [1, 1]} : vector<2x96xf32> to vector<2x32xf32>
    %379 = arith.addf %377, %378 : vector<2x32xf32>
    %cst_153 = arith.constant 0.000000e+00 : f32
    %380 = vector.broadcast %cst_153 : f32 to vector<2x32xf32>
    %381 = arith.subf %380, %379 : vector<2x32xf32>
    %382 = math.exp %381 : vector<2x32xf32>
    %cst_154 = arith.constant 1.000000e+00 : f32
    %383 = vector.broadcast %cst_154 : f32 to vector<2x32xf32>
    %384 = arith.addf %383, %382 : vector<2x32xf32>
    %cst_155 = arith.constant 1.000000e+00 : f32
    %385 = vector.broadcast %cst_155 : f32 to vector<2x32xf32>
    %386 = arith.divf %385, %384 : vector<2x32xf32>
    %387 = vector.extract_strided_slice %369 {offsets = [0, 32], sizes = [2, 32], strides = [1, 1]} : vector<2x96xf32> to vector<2x32xf32>
    %388 = vector.extract_strided_slice %376 {offsets = [0, 32], sizes = [2, 32], strides = [1, 1]} : vector<2x96xf32> to vector<2x32xf32>
    %389 = arith.addf %387, %388 : vector<2x32xf32>
    %cst_156 = arith.constant 0.000000e+00 : f32
    %390 = vector.broadcast %cst_156 : f32 to vector<2x32xf32>
    %391 = arith.subf %390, %389 : vector<2x32xf32>
    %392 = math.exp %391 : vector<2x32xf32>
    %cst_157 = arith.constant 1.000000e+00 : f32
    %393 = vector.broadcast %cst_157 : f32 to vector<2x32xf32>
    %394 = arith.addf %393, %392 : vector<2x32xf32>
    %cst_158 = arith.constant 1.000000e+00 : f32
    %395 = vector.broadcast %cst_158 : f32 to vector<2x32xf32>
    %396 = arith.divf %395, %394 : vector<2x32xf32>
    %397 = vector.extract_strided_slice %369 {offsets = [0, 64], sizes = [2, 32], strides = [1, 1]} : vector<2x96xf32> to vector<2x32xf32>
    %398 = vector.extract_strided_slice %376 {offsets = [0, 64], sizes = [2, 32], strides = [1, 1]} : vector<2x96xf32> to vector<2x32xf32>
    %399 = arith.mulf %386, %398 : vector<2x32xf32>
    %400 = arith.addf %397, %399 : vector<2x32xf32>
    %401 = math.tanh %400 : vector<2x32xf32>
    %cst_159 = arith.constant 1.000000e+00 : f32
    %402 = vector.broadcast %cst_159 : f32 to vector<2x32xf32>
    %403 = arith.subf %402, %396 : vector<2x32xf32>
    %404 = arith.mulf %403, %401 : vector<2x32xf32>
    %405 = arith.mulf %396, %321 : vector<2x32xf32>
    %406 = arith.addf %404, %405 : vector<2x32xf32>
    %c0_160 = arith.constant 0 : index
    %c0_161 = arith.constant 0 : index
    %407 = vector.load %arg22[%c0_160, %c0_161] : memref<16x32xf32, #tpu.memory_space<vmem>>, vector<16x32xf32>
    tpu.vector_store %arg22[%c0_160, %c0_161], %226 {strides = array<i32>} : memref<16x32xf32, #tpu.memory_space<vmem>>, vector<16x32xf32>,
    %c0_162 = arith.constant 0 : index
    %c0_163 = arith.constant 0 : index
    %408 = vector.load %arg23[%c0_162, %c0_163] : memref<2x32xf32, #tpu.memory_space<vmem>>, vector<2x32xf32>
    tpu.vector_store %arg23[%c0_162, %c0_163], %406 {strides = array<i32>} : memref<2x32xf32, #tpu.memory_space<vmem>>, vector<2x32xf32>,
    return
  }
}

</mosaic_0001>

<bundles_post_ra>
// kernel: eq.1
= control target key start
LH: loop header
LB: loop body
LE: loop exit
PB: predicated region body
PF: predicated region fallthrough
CT: control target
= control target key end

     0   :  { %s131_s10 = smov 60   ;;  %s132_s11 = smov 52   ;;  %vm3_vm0 = vcmask 31744   ;;  %vm9_vm1 = vcmask 523744   ;;  %vm15_vm2 = vcmask 490944   ;;  %vm21_vm3 = vcmask 458144   ;;  %s207_s0 = inlined_call_operand.vmem [shape: s32[2,8,4], index: 0, kind: input, shape index: {}]   ;;  %s208_s1 = inlined_call_operand.vmem [shape: s32[64], index: 1, kind: output, shape index: {}]  }
   0x1   :  { %v101_v0 = vld [vmem:[%s207_s0 + $0xf] sm:$0x1]   ;;  %v103_v1 = vld [vmem:[%s207_s0 + $0xd] sm:$0x1]   ;;  %v105_v2 = vld [vmem:[%s207_s0 + $0xb] sm:$0x1]  }
   0x2   :  { %7 = vrot.lane.b32.xlu0 %v101_v0, %s131_s10  ;;  %19 = vrot.lane.b32.xlu1 %v103_v1, %s132_s11  ;;  %s133_s14 = smov 44   ;;  %v102_v3 = vld [vmem:[%s207_s0 + $0xe] sm:$0x1]   ;;  %v104_v4 = vld [vmem:[%s207_s0 + $0xc] sm:$0x1]   ;;  %s134_s19 = smov 56  }
   0x3   :  { %31 = vrot.lane.b32.xlu2 %v105_v2, %s133_s14  ;;  %s135_s20 = smov 48   ;;  %v106_v5 = vld [vmem:[%s207_s0 + $0xa] sm:$0x1]   ;;  %s136_s23 = smov 40   ;;  %v107_v6 = vld [vmem:[%s207_s0 + $0x9] sm:$0x1]  }
   0x4   :  { %v108_v7 = vld [vmem:[%s207_s0 + $0x8] sm:$0x1]   ;;  %s137_s28 = smov 36   ;;  %s138_s29 = smov 32   ;;  %v109_v8 = vld [vmem:[%s207_s0 + $0x7] sm:$0x1]  }
   0x5   :  { %s139_s3 = smov 28   ;;  %v110_v9 = vld [vmem:[%s207_s0 + $0x6] sm:$0x1]   ;;  %v111_v10 = vld [vmem:[%s207_s0 + $0x5] sm:$0x1]   ;;  %s140_s8 = smov 24  }
   0x6   :  { %s141_s9 = smov 20   ;;  %v112_v11 = vld [vmem:[%s207_s0 + $0x4] sm:$0x1]   ;;  %s142_s12 = smov 16   ;;  %v113_v12 = vld [vmem:[%s207_s0 + $0x3] sm:$0x1]  }
   0x7   :  { %v114_v13 = vld [vmem:[%s207_s0 + $0x2] sm:$0x1]   ;;  %s143_s17 = smov 12   ;;  %s144_s18 = smov 8   ;;  %v115_v14 = vld [vmem:[%s207_s0 + $0x1] sm:$0x1]  }
   0x8   :  { %s145_s21 = smov 4   ;;  %v2_v15 = vld [vmem:[%s207_s0] sm:$0x1]   ;;  %vm27_vm4 = vcmask 425344   ;;  %vm33_vm5 = vcmask 392544   ;;  %vm39_vm6 = vcmask 359744  }
   0x9   :  { %4 = vst.msk [vmem:[#allocation0] sm:$0x1] %vm3_vm0, %v2_v15   ;;  %vm45_vm7 = vcmask 326944   ;;  %vm51_vm8 = vcmask 294144   ;;  %vm57_vm9 = vcmask 261344   ;;  %vm63_vm10 = vcmask 228544  }
   0xa   :  { %13 = vrot.lane.b32.xlu0 %v102_v3, %s134_s19  ;;  %25 = vrot.lane.b32.xlu1 %v104_v4, %s135_s20  ;;  %vm69_vm11 = vcmask 195744   ;;  %vm75_vm12 = vcmask 162944   ;;  %vm81_vm13 = vcmask 130144   ;;  %vm87_vm14 = vcmask 97344  }
   0xb   :  { %37 = vrot.lane.b32.xlu2 %v106_v5, %s136_s23  ;;  %vm93_vm15 = vcmask 64544  }
  0x12   :  { %43 = vrot.lane.b32.xlu0 %v107_v6, %s137_s28  ;;  %49 = vrot.lane.b32.xlu1 %v108_v7, %s138_s29 }
  0x13   :  { %55 = vrot.lane.b32.xlu2 %v109_v8, %s139_s3 }
  0x1a   :  { %61 = vrot.lane.b32.xlu0 %v110_v9, %s140_s8  ;;  %67 = vrot.lane.b32.xlu1 %v111_v10, %s141_s9 }
  0x1b   :  { %73 = vrot.lane.b32.xlu2 %v112_v11, %s142_s12 }
  0x22   :  { %79 = vrot.lane.b32.xlu0 %v113_v12, %s143_s17  ;;  %85 = vrot.lane.b32.xlu1 %v114_v13, %s144_s18 }
  0x23   :  { %91 = vrot.lane.b32.xlu2 %v115_v14, %s145_s21 }
  0x5d   :  { %v32_v16 = vpop.permute.xlu2 %31  }
  0x65   :  { %v38_v17 = vpop.permute.xlu2 %37  }
  0x6d   :  { %v56_v18 = vpop.permute.xlu2 %55  }
  0x74   :  { %v8_v19 = vpop.permute.xlu0 %7   ;;  %v20_v20 = vpop.permute.xlu1 %19  }
  0x75   :  { %10 = vst.msk [vmem:[#allocation0] sm:$0x1] %vm9_vm1, %v8_v19   ;;  %v74_v21 = vpop.permute.xlu2 %73  }
  0x7c   :  { %v14_v22 = vpop.permute.xlu0 %13   ;;  %v26_v23 = vpop.permute.xlu1 %25  }
  0x7d   :  { %16 = vst.msk [vmem:[#allocation0] sm:$0x1] %vm15_vm2, %v14_v22   ;;  %v92_v24 = vpop.permute.xlu2 %91  }
  0x7e   :  { %22 = vst.msk [vmem:[#allocation0] sm:$0x1] %vm21_vm3, %v20_v20  }
  0x7f   :  { %28 = vst.msk [vmem:[#allocation0] sm:$0x1] %vm27_vm4, %v26_v23  }
  0x80   :  { %34 = vst.msk [vmem:[#allocation0] sm:$0x1] %vm33_vm5, %v32_v16  }
  0x81   :  { %40 = vst.msk [vmem:[#allocation0] sm:$0x1] %vm39_vm6, %v38_v17  }
  0x84   :  { %v44_v25 = vpop.permute.xlu0 %43   ;;  %v50_v26 = vpop.permute.xlu1 %49  }
  0x85   :  { %46 = vst.msk [vmem:[#allocation0] sm:$0x1] %vm45_vm7, %v44_v25  }
  0x86   :  { %52 = vst.msk [vmem:[#allocation0] sm:$0x1] %vm51_vm8, %v50_v26  }
  0x87   :  { %58 = vst.msk [vmem:[#allocation0] sm:$0x1] %vm57_vm9, %v56_v18  }
  0x8c   :  { %v62_v27 = vpop.permute.xlu0 %61   ;;  %v68_v28 = vpop.permute.xlu1 %67  }
  0x8d   :  { %64 = vst.msk [vmem:[#allocation0] sm:$0x1] %vm63_vm10, %v62_v27  }
  0x8e   :  { %70 = vst.msk [vmem:[#allocation0] sm:$0x1] %vm69_vm11, %v68_v28  }
  0x8f   :  { %76 = vst.msk [vmem:[#allocation0] sm:$0x1] %vm75_vm12, %v74_v21  }
  0x94   :  { %v80_v29 = vpop.permute.xlu0 %79   ;;  %v86_v30 = vpop.permute.xlu1 %85  }
  0x95   :  { %82 = vst.msk [vmem:[#allocation0] sm:$0x1] %vm81_vm13, %v80_v29  }
  0x96   :  { %88 = vst.msk [vmem:[#allocation0] sm:$0x1] %vm87_vm14, %v86_v30  }
  0x97   :  { %94 = vst.msk [vmem:[#allocation0] sm:$0x1] %vm93_vm15, %v92_v24  }
  0x9e   :  { %v97_v31 = vld [vmem:[#allocation0] sm:$0x1] }
  0x9f   :  { %100 = vst [vmem:[%s208_s1] sm:$0x1] %v97_v31 }

// kernel: mul.7
= control target key start
LH: loop header
LB: loop body
LE: loop exit
PB: predicated region body
PF: predicated region fallthrough
CT: control target
= control target key end

     0   :  { %vm7_vm0 = vcmask 64512   ;;  %vm13_vm1 = vcmask 130112   ;;  %s39_s0 = inlined_call_operand.vmem [shape: f32[2,8], index: 0, kind: input, shape index: {}]   ;;  %s40_s1 = inlined_call_operand.vmem [shape: f32[16], index: 1, kind: output, shape index: {}]  }
   0x1   :  { %v4_v0 = vld [vmem:[%s39_s0] sm:$0x3]  ;;  %s22_s0 = smov 8  }
   0x2   :  { %5 = vst [vmem:[#allocation1] sm:$0x3] %v4_v0 }
   0x9   :  { %v10_v1 = vld [vmem:[#allocation1 + $0x1] sm:$0x1]   ;;  %v6_v2 = vld [vmem:[#allocation1] sm:$0x1]  }
   0xa   :  { %11 = vrot.lane.b32.xlu0 %v10_v1, %s22_s0  ;;  %8 = vst.msk [vmem:[#allocation0] sm:$0x1] %vm7_vm0, %v6_v2  }
  0x7c   :  { %v12_v3 = vpop.permute.xlu0 %11  }
  0x7d   :  { %14 = vst.msk [vmem:[#allocation0] sm:$0x1] %vm13_vm1, %v12_v3  }
  0x84   :  { %v17_v4 = vld [vmem:[#allocation0] sm:$0x1] }
  0x85   :  { %20 = vst [vmem:[%s40_s1] sm:$0x1] %v17_v4 }

// kernel: fingerprint_pallas.1
= control target key start
LH: loop header
LB: loop body
LE: loop exit
PB: predicated region body
PF: predicated region fallthrough
CT: control target
= control target key end

     0   :  { %s5123_s0 = inlined_call_operand.vmem [shape: f32[16,16], index: 0, kind: input, shape index: {}]   ;;  %s5124_s1 = inlined_call_operand.vmem [shape: f32[64,24], index: 1, kind: input, shape index: {}]   ;;  %s5125_s2 = inlined_call_operand.vmem [shape: f32[64,16], index: 2, kind: input, shape index: {}]   ;;  %s5126_s3 = inlined_call_operand.vmem [shape: f32[16,4,1], index: 3, kind: input, shape index: {}]   ;;  %s5127_s4 = inlined_call_operand.vmem [shape: f32[16,4,1], index: 4, kind: input, shape index: {}]   ;;  %s5128_s5 = inlined_call_operand.vmem [shape: f32[2,16], index: 5, kind: input, shape index: {}]   ;;  %s5129_s6 = inlined_call_operand.vmem [shape: f32[2,8,1], index: 6, kind: input, shape index: {}]   ;;  %s5130_s7 = inlined_call_operand.vmem [shape: f32[2,8,1], index: 7, kind: input, shape index: {}]   ;;  %s5131_s8 = inlined_call_operand.vmem [shape: f32[16,32], index: 8, kind: input, shape index: {}]   ;;  %s5132_s9 = inlined_call_operand.vmem [shape: f32[1,32], index: 9, kind: input, shape index: {}]   ;;  %s5133_s10 = inlined_call_operand.vmem [shape: f32[24,32], index: 10, kind: input, shape index: {}]   ;;  %s5134_s11 = inlined_call_operand.vmem [shape: f32[1,32], index: 11, kind: input, shape index: {}]   ;;  %s5135_s12 = inlined_call_operand.vmem [shape: f32[2,32,33], index: 12, kind: input, shape index: {}]   ;;  %s5136_s13 = inlined_call_operand.vmem [shape: f32[2,1,33], index: 13, kind: input, shape index: {}]   ;;  %s5137_s14 = inlined_call_operand.vmem [shape: f32[2,1,33], index: 14, kind: input, shape index: {}]   ;;  %s5138_s15 = inlined_call_operand.vmem [shape: f32[2,2,32,96], index: 15, kind: input, shape index: {}]   ;;  %s5139_s16 = inlined_call_operand.vmem [shape: f32[2,2,1,96], index: 16, kind: input, shape index: {}]   ;;  %s5140_s17 = inlined_call_operand.vmem [shape: f32[32,33], index: 17, kind: input, shape index: {}]   ;;  %s5141_s18 = inlined_call_operand.vmem [shape: f32[1,33], index: 18, kind: input, shape index: {}]   ;;  %s5142_s19 = inlined_call_operand.vmem [shape: f32[1,33], index: 19, kind: input, shape index: {}]   ;;  %s5143_s20 = inlined_call_operand.vmem [shape: f32[2,32,96], index: 20, kind: input, shape index: {}]   ;;  %s5144_s21 = inlined_call_operand.vmem [shape: f32[2,1,96], index: 21, kind: input, shape index: {}]   ;;  %s5145_s22 = inlined_call_operand.hbm [shape: f32[16,32], index: 22, kind: output, shape index: {0}]   ;;  %s5146_s23 = inlined_call_operand.hbm [shape: f32[2,32], index: 23, kind: output, shape index: {1}]  }
   0x1   :  { %5195 = sst [smem:[#allocation25_spill]] %s5123_s0 }
   0x2   :  { %5196 = sst [smem:[#allocation26_spill]] %s5124_s1 }
   0x3   :  { %5197 = sst [smem:[#allocation27_spill]] %s5125_s2 }
   0x4   :  { %5198 = sst [smem:[#allocation28_spill]] %s5126_s3 }
   0x5   :  { %5199 = sst [smem:[#allocation29_spill]] %s5127_s4 }
   0x6   :  { %5200 = sst [smem:[#allocation30_spill]] %s5128_s5 }
   0x7   :  { %5201 = sst [smem:[#allocation31_spill]] %s5129_s6 }
   0x8   :  { %5202 = sst [smem:[#allocation32_spill]] %s5130_s7 }
   0x9   :  { %29 = vsyncpa [#allocation3], 0  ;;  %v174_v0 = vld [vmem:[%s5133_s10 + $0x10] sm:$0xff]  ;;  %v173_v1 = vld [vmem:[%s5133_s10 + $0x8] sm:$0xff]  ;;  %s5203_s29 = sld [smem:[#allocation25_spill]]  ;;  %vm136_vm0 = vcmask 130048  }
   0xa   :  { %217 = vmatpush.msra.mxu1 %v174_v0  ;;  %v131_v2 = vld [vmem:[%s5131_s8 + $0x8] sm:$0xff]  ;;  %v172_v3 = vld [vmem:[%s5133_s10] sm:$0xff]  ;;  %s5204_s4 = sld [smem:[#allocation26_spill]]  ;;  %vm179_vm1 = vcmask 195584  }
   0xb   :  { %157 = vmatpush.msra.mxu0 %v131_v2  ;;  %v130_v4 = vld [vmem:[%s5131_s8] sm:$0xff] }
   0xc   :  { %218 = vmatpush.msra.mxu1 %v173_v1 }
   0xd   :  { %158 = vmatpush.msra.mxu0 %v130_v4 }
   0xe   :  { %219 = vmatpush.msra.mxu1 %v172_v3 }
   0xf   :  { %v75_v5 = vld [vmem:[%s5203_s29] sm:$0xff] }
  0x10   :  { %v77_v6 = vld [vmem:[%s5204_s4] sm:$0xff]  ;;  %3091 = vmatmul.msk.f32.vlgmr.msra.gmra.mxu0 %vm136_vm0, %v75_v5 }
  0x11   :  { %3093 = vmatmul.msk.f32.vlgmr.msra.gmra.mxu1 %vm179_vm1, %v77_v6 }
  0x12   :  { %30 = vsyncpa [#allocation5], 0  ;;  %v78_v7 = vld [vmem:[%s5204_s4 + $0x8] sm:$0xff]  ;;  %v79_v9 = vld [vmem:[%s5204_s4 + $0x10] sm:$0xff]  ;;  %s5205_s27 = sld [smem:[#allocation29_spill]]  ;;  %s3526_s7 = smov 32  }
  0x13   :  { %v76_v8 = vld [vmem:[%s5203_s29 + $0x8] sm:$0xff]  ;;  %v80_v10 = vld [vmem:[%s5204_s4 + $0x18] sm:$0xff]  ;;  %v81_v13 = vld [vmem:[%s5204_s4 + $0x20] sm:$0xff]  ;;  %s5206_s28 = sld [smem:[#allocation28_spill]]  ;;  %vm277_vm4 = vcmask 261120   ;;  %vm573_vm14 = vcmask 265472  }
  0x14   :  { %v272_v12 = vld [vmem:[%s5135_s12 + $0x18] sm:$0xff]  ;;  %v82_v15 = vld [vmem:[%s5204_s4 + $0x28] sm:$0xff]  ;;  %v83_v17 = vld [vmem:[%s5204_s4 + $0x30] sm:$0xff]  ;;  %s3528_s3 = smov 64   ;;  %s5231_s6 = sld [smem:[#allocation27_spill]] }
  0x15   :  { %314 = vmatpush.msra.mxu2 %v272_v12  ;;  %v84_v19 = vld [vmem:[%s5204_s4 + $0x38] sm:$0xff]  ;;  %v271_v20 = vld [vmem:[%s5135_s12 + $0x10] sm:$0xff]  ;;  %v270_v21 = vld [vmem:[%s5135_s12 + $0x8] sm:$0xff]  ;;  %s5266_s8 = sld [smem:[#allocation32_spill]]  ;;  %s3532_s24 = smov 8  }
  0x16   :  { %v269_v22 = vld [vmem:[%s5135_s12] sm:$0xff]  ;;  %v1254_v23 = vld [vmem:[%s5138_s15 + $0x38] sm:$0xff]  ;;  %v1253_v25 = vld [vmem:[%s5138_s15 + $0x30] sm:$0xff]  ;;  %s5267_s5 = sld [smem:[#allocation31_spill]] }
  0x17   :  { %315 = vmatpush.msra.mxu2 %v271_v20  ;;  %1345 = vmatpush.msrb.mxu0 %v1254_v23  ;;  %v1252_v26 = vld [vmem:[%s5138_s15 + $0x28] sm:$0xff]  ;;  %v3209_v27 = vld [vmem:[%s5132_s9] ss:$0 sm:$0xff] }
  0x18   :  { %3092 = vmatmul.msk.f32.gmra.mxu0 %vm136_vm0, %v76_v8  ;;  %v113_v11 = vld [vmem:[%s5205_s27 + $0x10] sm:$0xf]  ;;  %v120_v14 = vld [vmem:[%s5205_s27 + $0x2c] sm:$0xf]  ;;  %v123_v16 = vld [vmem:[%s5205_s27 + $0x38] sm:$0xf] }
  0x19   :  { %3094 = vmatmul.msk.f32.gmra.mxu1 %vm179_vm1, %v78_v7  ;;  %517 = vrot.lane.b32.xlu0 %v113_v11, %s3526_s7  ;;  %v94_v18 = vld [vmem:[%s5206_s28 + $0x4] sm:$0xf]  ;;  %v109_v24 = vld [vmem:[%s5205_s27] sm:$0xf]  ;;  %v114_v46 = vld [vmem:[%s5205_s27 + $0x14] sm:$0xf] }
  0x1a   :  { %316 = vmatpush.msra.mxu2 %v270_v21  ;;  %509 = vrot.lane.b32.xlu1 %v109_v24, %s3526_s7  ;;  %v3756_v28 = vld [vmem:[%s5134_s11] ss:$0 sm:$0xff]  ;;  %v110_v30 = vld [vmem:[%s5205_s27 + $0x4] sm:$0xf]  ;;  %v111_v56 = vld [vmem:[%s5205_s27 + $0x8] sm:$0xf] }
  0x1b   :  { %1346 = vmatpush.msrb.mxu0 %v1253_v25  ;;  %v1251_v29 = vld [vmem:[%s5138_s15 + $0x20] sm:$0xff]  ;;  %513 = vrot.lane.b32.xlu2 %v111_v56, %s3526_s7  ;;  %v116_v57 = vld [vmem:[%s5205_s27 + $0x1c] sm:$0xf]  ;;  %v112_v62 = vld [vmem:[%s5205_s27 + $0xc] sm:$0xf]  ;;  %s3529_s11 = smov 96  }
  0x1c   :  { %317 = vmatpush.msra.mxu2 %v269_v22  ;;  %v3769_v35 = vld [vmem:[%s5137_s14] ss:$0 sm:$0xff]  ;;  %v118_v63 = vld [vmem:[%s5205_s27 + $0x24] sm:$0xf]  ;;  %v115_v3 = vld [vmem:[%s5205_s27 + $0x18] sm:$0xf] }
  0x1d   :  { %1347 = vmatpush.msrb.mxu0 %v1252_v26  ;;  %v121_v4 = vld [vmem:[%s5205_s27 + $0x30] sm:$0xf]  ;;  %v124_v11 = vld [vmem:[%s5205_s27 + $0x3c] sm:$0xf]  ;;  %v103_v21 = vld [vmem:[%s5206_s28 + $0x28] sm:$0xf] }
  0x1e   :  { %v97_v7 = vld [vmem:[%s5206_s28 + $0x10] sm:$0xf]  ;;  %v122_v24 = vld [vmem:[%s5205_s27 + $0x34] sm:$0xf] }
  0x1f   :  { %1348 = vmatpush.msrb.mxu0 %v1251_v29  ;;  %v98_v25 = vld [vmem:[%s5206_s28 + $0x14] sm:$0xf] }
  0x20   :  { %v106_v29 = vld [vmem:[%s5206_s28 + $0x34] sm:$0xf] }
  0x21   :  { %3095 = vmatmul.msk.f32.gmra.mxu1 %vm179_vm1, %v79_v9  ;;  %531 = vrot.lane.b32.xlu0 %v120_v14, %s3526_s7  ;;  %v100_v14 = vld [vmem:[%s5206_s28 + $0x1c] sm:$0xf] }
  0x22   :  { %511 = vrot.lane.b32.xlu1 %v110_v30, %s3526_s7  ;;  %v101_v30 = vld [vmem:[%s5206_s28 + $0x20] sm:$0xf] }
  0x23   :  { %515 = vrot.lane.b32.xlu2 %v112_v62, %s3526_s7 }
  0x29   :  { %3096 = vmatmul.msk.f32.gmra.mxu1 %vm179_vm1, %v80_v10  ;;  %537 = vrot.lane.b32.xlu0 %v123_v16, %s3526_s7  ;;  %v117_v10 = vld [vmem:[%s5205_s27 + $0x20] sm:$0xf] }
  0x2a   :  { %519 = vrot.lane.b32.xlu1 %v114_v46, %s3526_s7  ;;  %v3916_v46 = vld [vmem:[%s5136_s13] ss:$0 sm:$0xff] }
  0x2b   :  { %521 = vrot.lane.b32.xlu2 %v115_v3, %s3526_s7 }
  0x31   :  { %3097 = vmatmul.msk.f32.gmra.mxu1 %vm179_vm1, %v81_v13  ;;  %896 = vrot.lane.b32.xlu0 %v94_v18, %s3526_s7  ;;  %v95_v18 = vld [vmem:[%s5206_s28 + $0x8] sm:$0xf] }
  0x32   :  { %523 = vrot.lane.b32.xlu1 %v116_v57, %s3526_s7 }
  0x33   :  { %525 = vrot.lane.b32.xlu2 %v117_v10, %s3526_s7 }
  0x39   :  { %3098 = vmatmul.msk.f32.gmra.mxu1 %vm179_vm1, %v82_v15 }
  0x3a   :  { %527 = vrot.lane.b32.xlu1 %v118_v63, %s3526_s7 }
  0x41   :  { %3099 = vmatmul.msk.f32.gmra.mxu1 %vm179_vm1, %v83_v17  ;;  %v119_v17 = vld [vmem:[%s5205_s27 + $0x28] sm:$0xf]  ;;  %s5265_s27 = sld [smem:[#allocation30_spill]] }
  0x42   :  { %533 = vrot.lane.b32.xlu1 %v121_v4, %s3526_s7  ;;  %529 = vrot.lane.b32.xlu2 %v119_v17, %s3526_s7 }
  0x49   :  { %3100 = vmatmul.msk.f32.gmra.mxu1 %vm179_vm1, %v84_v19 }
  0x4a   :  { %539 = vrot.lane.b32.xlu1 %v124_v11, %s3526_s7  ;;  %535 = vrot.lane.b32.xlu2 %v122_v24, %s3526_s7 }
  0x52   :  { %898 = vrot.lane.b32.xlu1 %v95_v18, %s3526_s7 }
  0x5a   :  { %904 = vrot.lane.b32.xlu1 %v98_v25, %s3526_s7 }
  0x62   :  { %910 = vrot.lane.b32.xlu1 %v101_v30, %s3526_s7 }
  0x75   :  { %v3925_v56 = vpop.permute.xlu2 %513 }
  0x8d   :  { %v160_v31 = vpop.f32.mrf.mxu0 }
  0x8e   :  { %v221_v32 = vpop.f32.mrf.mxu1  ;;  %v161_v33 = vadd.f32 %v3209_v27, %v160_v31  ;;  %v96_v31 = vld [vmem:[%s5206_s28 + $0xc] sm:$0xf] }
  0x8f   :  { %v222_v34 = vadd.f32 %v3756_v28, %v221_v32  ;;  %v104_v32 = vld [vmem:[%s5206_s28 + $0x2c] sm:$0xf] }
  0x90   :  { %vm166_vm2 = vcmp.gt.f32.partialorder %v161_v33, 0.0  ;;  %v168_v36 = vmul.f32 0.01, %v161_v33  ;;  %916 = vrot.lane.b32.xlu1 %v104_v32, %s3526_s7 }
  0x91   :  { %v253_v37 = vmul.f32 0.01, %v222_v34  ;;  %vm245_vm3 = vcmp.gt.f32.partialorder %v222_v34, 0.0 }
  0x92   :  { %v3771_v38 = vsel %vm166_vm2, %v161_v33, %v168_v36  ;;  %v99_v33 = vld [vmem:[%s5206_s28 + $0x18] sm:$0xf]  ;;  %v3892_v36 = vpop.permute.xlu0 %517 }
  0x93   :  { %v261_v39 = vsel %vm245_vm3, %v222_v34, %v253_v37  ;;  %v371_v40 = vmul.f32 %v3769_v35, %v3771_v38  ;;  %3127 = vmatmul.msk.f32.vlgmr.msrb.gmra.mxu0 %vm277_vm4, %v3771_v38  ;;  %v107_v34 = vld [vmem:[%s5206_s28 + $0x38] sm:$0xf]  ;;  %5207 = vst [vmem:[#allocation8_spill] sm:$0xff] %v3892_v36  ;;  %v102_v37 = vld [vmem:[%s5206_s28 + $0x24] sm:$0xf] }
  0x94   :  { %3101 = vmatmul.msk.f32.vlgmr.msra.gmra.mxu2 %vm277_vm4, %v261_v39 }
  0x95   :  { %v373_v41 = vsel %vm277_vm4, %v371_v40, 0.0  ;;  %v163_v45 = vpop.f32.mrf.mxu0 }
  0x96   :  { %v224_v42 = vpop.f32.mrf.mxu1  ;;  %374 = vadd.xlane.f32.xlu0 %v373_v41  ;;  %v164_v47 = vadd.f32 %v3209_v27, %v163_v45  ;;  %v105_v41 = vld [vmem:[%s5206_s28 + $0x30] sm:$0xf] }
  0x97   :  { %v225_v43 = vadd.f32 %v3756_v28, %v224_v42 }
  0x98   :  { %vm167_vm6 = vcmp.gt.f32.partialorder %v164_v47, 0.0  ;;  %v169_v49 = vmul.f32 0.01, %v164_v47  ;;  %922 = vrot.lane.b32.xlu1 %v107_v34, %s3526_s7 }
  0x99   :  { %v254_v44 = vmul.f32 0.01, %v225_v43  ;;  %vm246_vm5 = vcmp.gt.f32.partialorder %v225_v43, 0.0 }
  0x9a   :  { %v3785_v51 = vsel %vm167_vm6, %v164_v47, %v169_v49  ;;  %v3898_v39 = vpop.permute.xlu0 %531 }
  0x9b   :  { %v262_v48 = vsel %vm246_vm5, %v225_v43, %v254_v44  ;;  %v372_v53 = vmul.f32 %v3769_v35, %v3785_v51  ;;  %3128 = vmatmul.msk.f32.gmra.mxu0 %vm277_vm4, %v3785_v51  ;;  %5208 = vst [vmem:[#allocation9_spill] sm:$0xff] %v3898_v39  ;;  %v108_v44 = vld [vmem:[%s5206_s28 + $0x3c] sm:$0xf] }
  0x9c   :  { %3102 = vmatmul.msk.f32.gmra.mxu2 %vm277_vm4, %v262_v48  ;;  %v3918_v48 = vpop.permute.xlu1 %509 }
  0x9d   :  { %v376_v55 = vsel %vm277_vm4, %v372_v53, 0.0 }
  0x9e   :  { %v227_v50 = vpop.f32.mrf.mxu1  ;;  %377 = vadd.xlane.f32.xlu0 %v376_v55 }
  0x9f   :  { %v228_v52 = vadd.f32 %v3756_v28, %v227_v50 }
  0xa1   :  { %v255_v54 = vmul.f32 0.01, %v228_v52  ;;  %vm247_vm7 = vcmp.gt.f32.partialorder %v228_v52, 0.0 }
  0xa2   :  { %v3900_v40 = vpop.permute.xlu0 %537 }
  0xa3   :  { %v263_v58 = vsel %vm247_vm7, %v228_v52, %v255_v54 }
  0xa4   :  { %3103 = vmatmul.msk.f32.gmra.mxu2 %vm277_vm4, %v263_v58  ;;  %v3929_v63 = vpop.permute.xlu1 %511 }
  0xa6   :  { %v230_v59 = vpop.f32.mrf.mxu1 }
  0xa7   :  { %v231_v60 = vadd.f32 %v3756_v28, %v230_v59 }
  0xa9   :  { %v256_v61 = vmul.f32 0.01, %v231_v60  ;;  %vm248_vm8 = vcmp.gt.f32.partialorder %v231_v60, 0.0 }
  0xaa   :  { %v3905_v42 = vpop.permute.xlu0 %896 }
  0xab   :  { %v264_v0 = vsel %vm248_vm8, %v231_v60, %v256_v61 }
  0xac   :  { %3104 = vmatmul.msk.f32.gmra.mxu2 %vm277_vm4, %v264_v0 }
  0xae   :  { %v233_v1 = vpop.f32.mrf.mxu1 }
  0xaf   :  { %v234_v2 = vadd.f32 %v3756_v28, %v233_v1 }
  0xb1   :  { %v257_v5 = vmul.f32 0.01, %v234_v2  ;;  %vm249_vm9 = vcmp.gt.f32.partialorder %v234_v2, 0.0 }
  0xb2   :  { %902 = vrot.lane.b32.xlu0 %v97_v7, %s3526_s7 }
  0xb3   :  { %v265_v6 = vsel %vm249_vm9, %v234_v2, %v257_v5 }
  0xb4   :  { %3105 = vmatmul.msk.f32.gmra.mxu2 %vm277_vm4, %v265_v6 }
  0xb6   :  { %v236_v8 = vpop.f32.mrf.mxu1 }
  0xb7   :  { %v237_v9 = vadd.f32 %v3756_v28, %v236_v8 }
  0xb9   :  { %v258_v12 = vmul.f32 0.01, %v237_v9  ;;  %vm250_vm10 = vcmp.gt.f32.partialorder %v237_v9, 0.0 }
  0xba   :  { %908 = vrot.lane.b32.xlu0 %v100_v14, %s3526_s7 }
  0xbb   :  { %v266_v13 = vsel %vm250_vm10, %v237_v9, %v258_v12 }
  0xbc   :  { %3106 = vmatmul.msk.f32.gmra.mxu2 %vm277_vm4, %v266_v13 }
  0xbe   :  { %v239_v15 = vpop.f32.mrf.mxu1 }
  0xbf   :  { %v240_v16 = vadd.f32 %v3756_v28, %v239_v15 }
  0xc1   :  { %v259_v19 = vmul.f32 0.01, %v240_v16  ;;  %vm251_vm11 = vcmp.gt.f32.partialorder %v240_v16, 0.0 }
  0xc2   :  { %914 = vrot.lane.b32.xlu0 %v103_v21, %s3526_s7  ;;  %v3951_v21 = vpop.permute.xlu2 %515 }
  0xc3   :  { %v267_v20 = vsel %vm251_vm11, %v240_v16, %v259_v19  ;;  %5209 = vst [vmem:[#allocation10_spill] sm:$0xff] %v3951_v21 }
  0xc4   :  { %3107 = vmatmul.msk.f32.gmra.mxu2 %vm277_vm4, %v267_v20 }
  0xc6   :  { %v242_v22 = vpop.f32.mrf.mxu1 }
  0xc7   :  { %v243_v23 = vadd.f32 %v3756_v28, %v242_v22  ;;  %v93_v28 = vld [vmem:[%s5206_s28] sm:$0xf] }
  0xc8   :  { %894 = vrot.lane.b32.xlu2 %v93_v28, %s3526_s7 }
  0xc9   :  { %v260_v26 = vmul.f32 0.01, %v243_v23  ;;  %vm252_vm12 = vcmp.gt.f32.partialorder %v243_v23, 0.0 }
  0xca   :  { %920 = vrot.lane.b32.xlu0 %v106_v29, %s3526_s7 }
  0xcb   :  { %v268_v27 = vsel %vm252_vm12, %v243_v23, %v260_v26 }
  0xcc   :  { %3108 = vmatmul.msk.f32.gmra.mxu2 %vm277_vm4, %v268_v27 }
  0xd0   :  { %900 = vrot.lane.b32.xlu2 %v96_v31, %s3526_s7 }
  0xd8   :  { %906 = vrot.lane.b32.xlu2 %v99_v33, %s3526_s7 }
  0xe0   :  { %912 = vrot.lane.b32.xlu2 %v102_v37, %s3526_s7 }
  0xe8   :  { %918 = vrot.lane.b32.xlu2 %v105_v41, %s3526_s7 }
  0xf0   :  { %924 = vrot.lane.b32.xlu2 %v108_v44, %s3526_s7 }
 0x109   :  { %v375_v43 = vpop.xlane.xlu0 %374 }
 0x10a   :  { %v379_v45 = vadd.f32 %v3769_v35, %v375_v43 }
 0x10c   :  { %v383_v47 = vrot.slane %v379_v45, 1  ;;  %v397_v49 = vperm.slane %v379_v45, 0  ;;  %v384_v57 = vrot.slane %v379_v45, 2  ;;  %v385_v60 = vrot.slane %v379_v45, 3 }
 0x10d   :  { %v386_v9 = vrot.slane %v379_v45, 4  ;;  %v387_v10 = vrot.slane %v379_v45, 5  ;;  %v388_v15 = vrot.slane %v379_v45, 6  ;;  %v389_v16 = vrot.slane %v379_v45, 7 }
 0x10e   :  { %v398_v53 = vperm.slane %v383_v47, 0  ;;  %v399_v62 = vperm.slane %v384_v57, 0  ;;  %v400_v4 = vperm.slane %v385_v60, 0 }
 0x10f   :  { %v401_v23 = vperm.slane %v386_v9, 0  ;;  %v402_v24 = vperm.slane %v387_v10, 0  ;;  %v403_v30 = vperm.slane %v388_v15, 0  ;;  %v404_v37 = vperm.slane %v389_v16, 0  ;;  %v3977_v9 = vpop.permute.xlu2 %521  ;;  %v3979_v10 = vpop.permute.xlu1 %519 }
 0x110   :  { %5210 = vst [vmem:[#allocation11_spill] sm:$0xff] %v3977_v9 }
 0x111   :  { %v378_v6 = vpop.xlane.xlu0 %377  ;;  %5211 = vst [vmem:[#allocation12_spill] sm:$0xff] %v3979_v10 }
 0x112   :  { %v3947_v17 = vadd.f32 %v3769_v35, %v378_v6 }
 0x114   :  { %v390_v31 = vrot.slane %v3947_v17, 1  ;;  %v405_v45 = vperm.slane %v3947_v17, 0 }
 0x117   :  { %v319_v50 = vpop.f32.mrf.mxu2 }
 0x118   :  { %v3921_v52 = vadd.f32 %v3916_v46, %v319_v50 }
 0x11a   :  { %v5158_v54 = vrot.slane %v3921_v52, 4  ;;  %v429_v55 = vadd.f32 %v397_v49, %v3921_v52 }
 0x11c   :  { %v430_v58 = vadd.f32 %v398_v53, %v5158_v54  ;;  %vm445_vm13 = vcmp.gt.f32.partialorder %v429_v55, 0.0  ;;  %v461_v59 = vmul.f32 0.01, %v429_v55 }
 0x11e   :  { %v477_v61 = vsel %vm445_vm13, %v429_v55, %v461_v59  ;;  %vm446_vm15 = vcmp.gt.f32.partialorder %v430_v58, 0.0  ;;  %v462_v0 = vmul.f32 0.01, %v430_v58  ;;  %v391_v59 = vrot.slane %v3947_v17, 2 }
 0x11f   :  { %v3932_v1 = vadd.f32 %v3918_v48, %v477_v61  ;;  %v322_v2 = vpop.f32.mrf.mxu2 }
 0x120   :  { %v3935_v3 = vadd.f32 %v3916_v46, %v322_v2  ;;  %v478_v5 = vsel %vm446_vm15, %v430_v58, %v462_v0  ;;  %v3970_v58 = vperm.slane %v390_v31, 0 }
 0x121   :  { %v574_v7 = vsel %vm573_vm14, %v3932_v1, -inf  ;;  %v3940_v8 = vadd.f32 %v3929_v63, %v478_v5  ;;  %v392_v5 = vrot.slane %v3947_v17, 3 }
 0x122   :  { %v575_v11 = vrot.slane %v574_v7, 4  ;;  %v5156_v12 = vrot.slane %v3935_v3, 4  ;;  %v431_v13 = vadd.f32 %v399_v62, %v3935_v3 }
 0x123   :  { %v581_v14 = vsel %vm573_vm14, %v3940_v8, -inf }
 0x124   :  { %v576_v18 = vmax.f32 %v574_v7, %v575_v11  ;;  %v432_v19 = vadd.f32 %v400_v4, %v5156_v12  ;;  %vm447_vm1 = vcmp.gt.f32.partialorder %v431_v13, 0.0  ;;  %v463_v20 = vmul.f32 0.01, %v431_v13 }
 0x125   :  { %v582_v22 = vrot.slane %v581_v14, 4  ;;  %v393_v11 = vrot.slane %v3947_v17, 4 }
 0x126   :  { %v577_v25 = vrot.slane %v576_v18, 2  ;;  %v479_v26 = vsel %vm447_vm1, %v431_v13, %v463_v20  ;;  %vm448_vm2 = vcmp.gt.f32.partialorder %v432_v19, 0.0  ;;  %v464_v27 = vmul.f32 0.01, %v432_v19 }
 0x127   :  { %v3954_v29 = vadd.f32 %v3925_v56, %v479_v26  ;;  %v583_v35 = vmax.f32 %v581_v14, %v582_v22  ;;  %v325_v28 = vpop.f32.mrf.mxu2  ;;  %v394_v26 = vrot.slane %v3947_v17, 5 }
 0x128   :  { %v578_v32 = vmax.f32 %v576_v18, %v577_v25  ;;  %v480_v33 = vsel %vm448_vm2, %v432_v19, %v464_v27  ;;  %v3958_v34 = vadd.f32 %v3916_v46, %v325_v28  ;;  %v3982_v18 = vperm.slane %v391_v59, 0 }
 0x129   :  { %v588_v41 = vsel %vm573_vm14, %v3954_v29, -inf  ;;  %v584_v43 = vrot.slane %v583_v35, 2  ;;  %v3963_v44 = vadd.f32 %v3951_v21, %v480_v33  ;;  %vm1054_vm2 = vcmask 257024  }
 0x12a   :  { %v579_v47 = vrot.slane %v578_v32, 1  ;;  %v589_v49 = vrot.slane %v588_v41, 4  ;;  %v5157_v50 = vrot.slane %v3958_v34, 4  ;;  %v433_v53 = vadd.f32 %v401_v23, %v3958_v34 }
 0x12b   :  { %v585_v55 = vmax.f32 %v583_v35, %v584_v43  ;;  %v595_v57 = vsel %vm573_vm14, %v3963_v44, -inf }
 0x12c   :  { %v580_v60 = vmax.f32 %v578_v32, %v579_v47  ;;  %v590_v61 = vmax.f32 %v588_v41, %v589_v49  ;;  %v596_v62 = vrot.slane %v595_v57, 4  ;;  %v434_v0 = vadd.f32 %v402_v24, %v5157_v50 }
 0x12d   :  { %v586_v2 = vrot.slane %v585_v55, 1  ;;  %vm449_vm3 = vcmp.gt.f32.partialorder %v433_v53, 0.0  ;;  %v465_v4 = vmul.f32 0.01, %v433_v53  ;;  %v4003_v49 = vperm.slane %v393_v11, 0  ;;  %v4015_v11 = vpop.permute.xlu1 %523 }
 0x12e   :  { %v686_v6 = vsub.f32 %v3932_v1, %v580_v60  ;;  %v597_v7 = vmax.f32 %v595_v57, %v596_v62  ;;  %vm450_vm5 = vcmp.gt.f32.partialorder %v434_v0, 0.0  ;;  %v466_v15 = vmul.f32 0.01, %v434_v0  ;;  %5213 = vst [vmem:[#allocation14_spill] sm:$0xff] %v4015_v11 }
 0x12f   :  { %v587_v13 = vmax.f32 %v585_v55, %v586_v2  ;;  %v481_v14 = vsel %vm449_vm3, %v433_v53, %v465_v4  ;;  %v328_v16 = vpop.f32.mrf.mxu2  ;;  %v591_v20 = vrot.slane %v590_v61, 2  ;;  %v4007_v62 = vperm.slane %v394_v26, 0 }
 0x130   :  { %v702_v19 = vmul.f32 1.442695, %v686_v6  ;;  %v598_v22 = vrot.slane %v597_v7, 2  ;;  %v3985_v23 = vadd.f32 %v3892_v36, %v481_v14  ;;  %v482_v24 = vsel %vm450_vm5, %v434_v0, %v466_v15 }
 0x131   :  { %v687_v1 = vsub.f32 %v3940_v8, %v587_v13  ;;  %v3989_v25 = vadd.f32 %v3916_v46, %v328_v16  ;;  %v3995_v28 = vadd.f32 %v3979_v10, %v482_v24  ;;  %v3999_v8 = vperm.slane %v392_v5, 0 }
 0x132   :  { %3222 = vpow2.f32 %v702_v19  ;;  %v599_v27 = vmax.f32 %v597_v7, %v598_v22  ;;  %v602_v35 = vsel %vm573_vm14, %v3985_v23, -inf  ;;  %v592_v41 = vmax.f32 %v590_v61, %v591_v20  ;;  %v4013_v7 = vpop.permute.xlu2 %525 }
 0x133   :  { %v704_v31 = vmul.f32 1.442695, %v687_v1  ;;  %v5155_v32 = vrot.slane %v3989_v25, 4  ;;  %v435_v33 = vadd.f32 %v403_v30, %v3989_v25  ;;  %v609_v47 = vsel %vm573_vm14, %v3995_v28, -inf  ;;  %5212 = vst [vmem:[#allocation13_spill] sm:$0xff] %v4013_v7 }
 0x134   :  { %v600_v43 = vrot.slane %v599_v27, 1  ;;  %v603_v53 = vrot.slane %v602_v35, 4  ;;  %v610_v55 = vrot.slane %v609_v47, 4  ;;  %v395_v2 = vrot.slane %v3947_v17, 6 }
 0x135   :  { %3224 = vpow2.f32 %v704_v31  ;;  %v436_v57 = vadd.f32 %v404_v37, %v5155_v32  ;;  %vm451_vm6 = vcmp.gt.f32.partialorder %v435_v33, 0.0  ;;  %v467_v60 = vmul.f32 0.01, %v435_v33 }
 0x136   :  { %v601_v59 = vmax.f32 %v599_v27, %v600_v43  ;;  %v611_v30 = vmax.f32 %v609_v47, %v610_v55  ;;  %v593_v13 = vrot.slane %v592_v41, 1  ;;  %v604_v15 = vmax.f32 %v602_v35, %v603_v53 }
 0x137   :  { %vm452_vm7 = vcmp.gt.f32.partialorder %v436_v57, 0.0  ;;  %v468_v61 = vmul.f32 0.01, %v436_v57  ;;  %v331_v0 = vpop.f32.mrf.mxu2  ;;  %v483_v6 = vsel %vm451_vm6, %v435_v33, %v467_v60  ;;  %v396_v31 = vrot.slane %v3947_v17, 7 }
 0x138   :  { %v4010_v4 = vpop.eup %3222  ;;  %v689_v5 = vsub.f32 %v3963_v44, %v601_v59  ;;  %v4018_v37 = vadd.f32 %v3916_v46, %v331_v0  ;;  %v612_v16 = vrot.slane %v611_v30, 2  ;;  %v4023_v19 = vadd.f32 %v3977_v9, %v483_v6 }
 0x139   :  { %v734_v14 = vsel %vm573_vm14, %v4010_v4, 0.0  ;;  %v484_v44 = vsel %vm452_vm7, %v436_v57, %v468_v61  ;;  %v4038_v47 = vperm.slane %v395_v2, 0  ;;  %v4040_v53 = vmax.f32 %v592_v41, %v593_v13 }
 0x13a   :  { %v735_v20 = vrot.slane %v734_v14, 4  ;;  %v708_v22 = vmul.f32 1.442695, %v689_v5  ;;  %v5154_v1 = vrot.slane %v4018_v37, 4  ;;  %v613_v26 = vmax.f32 %v611_v30, %v612_v16 }
 0x13b   :  { %v4027_v24 = vpop.eup %3224  ;;  %v4030_v27 = vadd.f32 %v4015_v11, %v484_v44  ;;  %v437_v35 = vadd.f32 %v405_v45, %v4018_v37  ;;  %v616_v43 = vsel %vm573_vm14, %v4023_v19, -inf  ;;  %v605_v45 = vrot.slane %v604_v15, 2 }
 0x13c   :  { %v736_v33 = vadd.f32 %v735_v20, %v734_v14  ;;  %3226 = vpow2.f32 %v708_v22  ;;  %v614_v55 = vrot.slane %v613_v26, 1  ;;  %v438_v59 = vadd.f32 %v3970_v58, %v5154_v1 }
 0x13d   :  { %v623_v57 = vsel %vm573_vm14, %v4030_v27, -inf  ;;  %v741_v17 = vsel %vm573_vm14, %v4027_v24, 0.0  ;;  %vm453_vm8 = vcmp.gt.f32.partialorder %v437_v35, 0.0  ;;  %v617_v61 = vrot.slane %v616_v43, 4 }
 0x13e   :  { %v624_v60 = vrot.slane %v623_v57, 4  ;;  %v615_v30 = vmax.f32 %v613_v26, %v614_v55  ;;  %v469_v0 = vmul.f32 0.01, %v437_v35  ;;  %vm454_vm9 = vcmp.gt.f32.partialorder %v438_v59, 0.0  ;;  %v4058_v26 = vpop.permute.xlu2 %529  ;;  %v4060_v55 = vpop.permute.xlu1 %527 }
 0x13f   :  { %v334_v41 = vpop.f32.mrf.mxu2  ;;  %v737_v2 = vrot.slane %v736_v33, 2  ;;  %v470_v6 = vmul.f32 0.01, %v438_v59  ;;  %v742_v14 = vrot.slane %v741_v17, 4  ;;  %v4053_v20 = vperm.slane %v396_v31, 0  ;;  %5214 = vst [vmem:[#allocation15_spill] sm:$0xff] %v4058_v26 }
 0x140   :  { %v625_v5 = vmax.f32 %v623_v57, %v624_v60  ;;  %v4050_v13 = vadd.f32 %v3916_v46, %v334_v41  ;;  %v691_v58 = vsub.f32 %v3995_v28, %v615_v30  ;;  %v485_v16 = vsel %vm453_vm8, %v437_v35, %v469_v0  ;;  %5215 = vst [vmem:[#allocation16_spill] sm:$0xff] %v4060_v55 }
 0x141   :  { %v4056_v44 = vadd.f32 %v4013_v7, %v485_v16  ;;  %v486_v1 = vsel %vm454_vm9, %v438_v59, %v470_v6  ;;  %v4066_v41 = vmax.f32 %v604_v15, %v605_v45  ;;  %v618_v35 = vmax.f32 %v616_v43, %v617_v61 }
 0x142   :  { %v626_v22 = vrot.slane %v625_v5, 2  ;;  %v4064_v60 = vpop.eup %3226  ;;  %v712_v28 = vmul.f32 1.442695, %v691_v58  ;;  %v4069_v31 = vadd.f32 %v4060_v55, %v486_v1  ;;  %v5160_v16 = vrot.slane %v4050_v13, 4 }
 0x143   :  { %v630_v0 = vsel %vm573_vm14, %v4056_v44, -inf  ;;  %v738_v32 = vadd.f32 %v737_v2, %v736_v33  ;;  %v743_v59 = vadd.f32 %v742_v14, %v741_v17  ;;  %v439_v15 = vadd.f32 %v3982_v18, %v4050_v13 }
 0x144   :  { %v627_v30 = vmax.f32 %v625_v5, %v626_v22  ;;  %3228 = vpow2.f32 %v712_v28  ;;  %v637_v6 = vsel %vm573_vm14, %v4069_v31, -inf  ;;  %v755_v43 = vsel %vm573_vm14, %v4064_v60, 0.0 }
 0x145   :  { %v638_v45 = vrot.slane %v637_v6, 4  ;;  %v440_v61 = vadd.f32 %v3999_v8, %v5160_v16  ;;  %v619_v5 = vrot.slane %v618_v35, 2  ;;  %v631_v58 = vrot.slane %v630_v0, 4 }
 0x146   :  { %v628_v1 = vrot.slane %v627_v30, 1  ;;  %vm455_vm10 = vcmp.gt.f32.partialorder %v439_v15, 0.0  ;;  %v471_v33 = vmul.f32 0.01, %v439_v15  ;;  %v739_v22 = vrot.slane %v738_v32, 1 }
 0x147   :  { %v337_v17 = vpop.f32.mrf.mxu2  ;;  %v639_v14 = vmax.f32 %v637_v6, %v638_v45  ;;  %vm456_vm11 = vcmp.gt.f32.partialorder %v440_v61, 0.0  ;;  %v756_v28 = vrot.slane %v755_v43, 4  ;;  %v472_v18 = vmul.f32 0.01, %v440_v61 }
 0x148   :  { %v629_v2 = vmax.f32 %v627_v30, %v628_v1  ;;  %v487_v12 = vsel %vm455_vm10, %v439_v15, %v471_v33  ;;  %v4084_v50 = vadd.f32 %v3916_v46, %v337_v17  ;;  %v744_v54 = vrot.slane %v743_v59, 2  ;;  %v4097_v17 = vpop.permute.xlu2 %535 }
 0x149   :  { %v640_v55 = vrot.slane %v639_v14, 2  ;;  %v4088_v8 = vadd.f32 %v4058_v26, %v487_v12  ;;  %v632_v7 = vmax.f32 %v630_v0, %v631_v58  ;;  %v488_v30 = vsel %vm456_vm11, %v440_v61, %v472_v18  ;;  %5216 = vst [vmem:[#allocation17_spill] sm:$0xff] %v4097_v17  ;;  %v4106_v61 = vpop.permute.xlu1 %533 }
 0x14a   :  { %v693_v57 = vsub.f32 %v4030_v27, %v629_v2  ;;  %v4090_v16 = vpop.eup %3228  ;;  %v5162_v6 = vrot.slane %v4084_v50, 4  ;;  %v441_v1 = vadd.f32 %v4003_v49, %v4084_v50  ;;  %v740_v27 = vadd.f32 %v739_v22, %v738_v32  ;;  %5217 = vst [vmem:[#allocation18_spill] sm:$0xff] %v4106_v61 }
 0x14b   :  { %v769_v15 = vsel %vm573_vm14, %v4090_v16, 0.0  ;;  %v641_v33 = vmax.f32 %v639_v14, %v640_v55  ;;  %v4099_v2 = vadd.f32 %v756_v28, %v755_v43  ;;  %v4101_v12 = vmax.f32 %v618_v35, %v619_v5 }
 0x14c   :  { %v716_v45 = vmul.f32 1.442695, %v693_v57  ;;  %v4104_v0 = vadd.f32 %v3898_v39, %v488_v30  ;;  %v442_v49 = vadd.f32 %v4007_v62, %v5162_v6  ;;  %v644_v55 = vsel %vm573_vm14, %v4088_v8, -inf }
 0x14d   :  { %v642_v58 = vrot.slane %v641_v33, 1  ;;  %vm457_vm12 = vcmp.gt.f32.partialorder %v441_v1, 0.0  ;;  %v745_v32 = vadd.f32 %v744_v54, %v743_v59  ;;  %v770_v57 = vrot.slane %v769_v15, 4 }
 0x14e   :  { %3230 = vpow2.f32 %v716_v45  ;;  %vm458_vm13 = vcmp.gt.f32.partialorder %v442_v49, 0.0  ;;  %v473_v35 = vmul.f32 0.01, %v441_v1  ;;  %v633_v5 = vrot.slane %v632_v7, 2 }
 0x14f   :  { %v340_v43 = vpop.f32.mrf.mxu2  ;;  %v643_v14 = vmax.f32 %v641_v33, %v642_v58  ;;  %v474_v22 = vmul.f32 0.01, %v442_v49  ;;  %3232 = vrcp.f32 %v740_v27  ;;  %v645_v28 = vrot.slane %v644_v55, 4 }
 0x150   :  { %v651_v18 = vsel %vm573_vm14, %v4104_v0, -inf  ;;  %v489_v62 = vsel %vm457_vm12, %v441_v1, %v473_v35  ;;  %v4116_v30 = vadd.f32 %v3916_v46, %v340_v43  ;;  %v758_v45 = vrot.slane %v4099_v2, 2 }
 0x151   :  { %v695_v54 = vsub.f32 %v4069_v31, %v643_v14  ;;  %v490_v59 = vsel %vm458_vm13, %v442_v49, %v474_v22  ;;  %v4121_v6 = vadd.f32 %v4106_v61, %v489_v62  ;;  %v771_v39 = vadd.f32 %v770_v57, %v769_v15 }
 0x152   :  { %v4124_v33 = vadd.f32 %v4097_v17, %v490_v59  ;;  %v5164_v27 = vrot.slane %v4116_v30, 4  ;;  %v443_v1 = vadd.f32 %v4038_v47, %v4116_v30  ;;  %v652_v35 = vrot.slane %v651_v18, 4 }
 0x153   :  { %v720_v46 = vmul.f32 1.442695, %v695_v54  ;;  %v658_v31 = vsel %vm573_vm14, %v4121_v6, -inf  ;;  %v4135_v43 = vmax.f32 %v632_v7, %v633_v5  ;;  %v646_v15 = vmax.f32 %v644_v55, %v645_v28  ;;  %v4142_v54 = vpop.permute.xlu2 %894  ;;  %v4144_v5 = vpop.permute.xlu1 %539 }
 0x154   :  { %v4129_v58 = vpop.eup %3230  ;;  %v444_v57 = vadd.f32 %v4053_v20, %v5164_v27  ;;  %v3527_v14 = vmov 32   ;;  %v659_v22 = vrot.slane %v658_v31, 4  ;;  %v665_v62 = vsel %vm573_vm14, %v4124_v33, -inf  ;;  %5218 = vst [vmem:[#allocation19_spill] sm:$0xff] %v4144_v5 }
 0x155   :  { %v783_v49 = vsel %vm573_vm14, %v4129_v58, 0.0  ;;  %3200 = vset.pattern.permute.xlu0 %v3527_v14  ;;  %3201 = vset.pattern.permute.xlu1 %v3527_v14  ;;  %v3233_v47 = vpop.eup %3232  ;;  %3234 = vpow2.f32 %v720_v46  ;;  %vm459_vm15 = vcmp.gt.f32.partialorder %v443_v1, 0.0  ;;  %v475_v20 = vmul.f32 0.01, %v443_v1 }
 0x156   :  { %3202 = vset.pattern.permute.xlu2 %v3527_v14  ;;  %v784_v7 = vrot.slane %v783_v49, 4  ;;  %v862_v55 = vmul.f32 %v3233_v47, %v4010_v4  ;;  %vm460_vm1 = vcmp.gt.f32.partialorder %v444_v57, 0.0  ;;  %v772_v28 = vrot.slane %v771_v39, 2 }
 0x157   :  { %v4147_v59 = vmax.f32 %v651_v18, %v652_v35  ;;  %v476_v27 = vmul.f32 0.01, %v444_v57  ;;  %v746_v46 = vrot.slane %v745_v32, 1  ;;  %v666_v17 = vrot.slane %v665_v62, 4 }
 0x158   :  { %v942_v61 = vmul.f32 %v4142_v54, %v862_v55  ;;  %v491_v26 = vsel %vm459_vm15, %v443_v1, %v475_v20  ;;  %v5219_v11 = vsub.f32 %v3954_v29, %v4040_v53  ;;  %v647_v9 = vrot.slane %v646_v15, 2 }
 0x159   :  { %v660_v10 = vmax.f32 %v658_v31, %v659_v22  ;;  %v492_v36 = vsel %vm460_vm1, %v444_v57, %v476_v27  ;;  %v4154_v4 = vadd.f32 %v3900_v40, %v491_v26  ;;  %v785_v47 = vadd.f32 %v784_v7, %v783_v49 }
 0x15a   :  { %v706_v14 = vmul.f32 1.442695, %v5219_v11  ;;  %v4157_v18 = vadd.f32 %v4144_v5, %v492_v36  ;;  %960 = vperm.xlu0 %3200, %v942_v61   ;;  %v747_v35 = vadd.f32 %v746_v46, %v745_v32  ;;  %v759_v29 = vadd.f32 %v758_v45, %v4099_v2 }
 0x15b   :  { %v4159_v21 = vpop.eup %3234  ;;  %v672_v1 = vsel %vm573_vm14, %v4154_v4, -inf  ;;  %v607_v11 = vrot.slane %v4066_v41, 1  ;;  %v773_v53 = vadd.f32 %v772_v28, %v771_v39  ;;  %v667_v27 = vmax.f32 %v665_v62, %v666_v17  ;;  %v4175_v46 = vpop.permute.xlu1 %898 }
 0x15c   :  { %3236 = vpow2.f32 %v706_v14  ;;  %v797_v26 = vsel %vm573_vm14, %v4159_v21, 0.0  ;;  %v673_v31 = vrot.slane %v672_v1, 4  ;;  %v654_v36 = vrot.slane %v4147_v59, 2 }
 0x15d   :  { %3238 = vrcp.f32 %v747_v35  ;;  %v661_v61 = vrot.slane %v660_v10, 2  ;;  %v760_v32 = vrot.slane %v759_v29, 1  ;;  %v608_v49 = vmax.f32 %v4066_v41, %v607_v11 }
 0x15e   :  { %v798_v57 = vrot.slane %v797_v26, 4  ;;  %v679_v22 = vsel %vm573_vm14, %v4157_v18, -inf  ;;  %v774_v2 = vrot.slane %v773_v53, 1  ;;  %v621_v45 = vrot.slane %v4101_v12, 1 }
 0x15f   :  { %v648_v39 = vmax.f32 %v646_v15, %v647_v9  ;;  %v674_v7 = vmax.f32 %v672_v1, %v673_v31  ;;  %v761_v55 = vadd.f32 %v760_v32, %v759_v29  ;;  %v690_v17 = vsub.f32 %v3985_v23, %v608_v49 }
 0x160   :  { %v786_v20 = vrot.slane %v785_v47, 2  ;;  %v668_v28 = vrot.slane %v667_v27, 2  ;;  %v775_v14 = vadd.f32 %v774_v2, %v773_v53  ;;  %v622_v41 = vmax.f32 %v4101_v12, %v621_v45 }
 0x161   :  { %v662_v35 = vmax.f32 %v660_v10, %v661_v61  ;;  %v680_v11 = vrot.slane %v679_v22, 4  ;;  %3240 = vrcp.f32 %v761_v55  ;;  %v799_v15 = vadd.f32 %v798_v57, %v797_v26 }
 0x162   :  { %v4173_v62 = vpop.eup %3236  ;;  %v710_v29 = vmul.f32 1.442695, %v690_v17  ;;  %3242 = vrcp.f32 %v775_v14  ;;  %v675_v23 = vrot.slane %v674_v7, 2  ;;  %v692_v32 = vsub.f32 %v4023_v19, %v622_v41  ;;  %v4188_v41 = vpop.permute.xlu2 %900 }
 0x163   :  { %v748_v5 = vsel %vm573_vm14, %v4173_v62, 0.0  ;;  %v3239_v9 = vpop.eup %3238  ;;  %v635_v53 = vrot.slane %v4135_v43, 1  ;;  %v4183_v10 = vadd.f32 %v786_v20, %v785_v47  ;;  %v649_v12 = vrot.slane %v648_v39, 1 }
 0x164   :  { %v749_v1 = vrot.slane %v748_v5, 4  ;;  %v863_v31 = vmul.f32 %v3239_v9, %v4027_v24  ;;  %3244 = vpow2.f32 %v710_v29  ;;  %v681_v61 = vmax.f32 %v679_v22, %v680_v11  ;;  %v4192_v9 = vpop.permute.xlu1 %904 }
 0x165   :  { %v714_v45 = vmul.f32 1.442695, %v692_v32  ;;  %v636_v26 = vmax.f32 %v4135_v43, %v635_v53  ;;  %v800_v57 = vrot.slane %v799_v15, 2  ;;  %v650_v17 = vmax.f32 %v648_v39, %v649_v12 }
 0x166   :  { %v750_v49 = vadd.f32 %v749_v1, %v748_v5  ;;  %v943_v2 = vmul.f32 %v3905_v42, %v863_v31  ;;  %v655_v24 = vmax.f32 %v4147_v59, %v654_v36  ;;  %v676_v19 = vmax.f32 %v674_v7, %v675_v23 }
 0x167   :  { %v3241_v14 = vpop.eup %3240  ;;  %3246 = vpow2.f32 %v714_v45  ;;  %v694_v5 = vsub.f32 %v4056_v44, %v636_v26  ;;  %v663_v47 = vrot.slane %v662_v35, 1  ;;  %v696_v43 = vsub.f32 %v4088_v8, %v650_v17 }
 0x168   :  { %v751_v55 = vrot.slane %v750_v49, 2  ;;  %965 = vperm.xlu1 %3201, %v943_v2   ;;  %v3243_v22 = vpop.eup %3242  ;;  %v865_v11 = vmul.f32 %v3241_v14, %v4064_v60  ;;  %v669_v39 = vmax.f32 %v667_v27, %v668_v28  ;;  %v656_v7 = vrot.slane %v655_v24, 1 }
 0x169   :  { %v867_v59 = vmul.f32 %v3243_v22, %v4090_v16  ;;  %v718_v36 = vmul.f32 1.442695, %v694_v5  ;;  %v664_v1 = vmax.f32 %v662_v35, %v663_v47  ;;  %v682_v23 = vrot.slane %v681_v61, 2 }
 0x16a   :  { %v752_v20 = vadd.f32 %v751_v55, %v750_v49  ;;  %v4196_v29 = vpop.eup %3244  ;;  %v945_v44 = vmul.f32 %v4188_v41, %v865_v11  ;;  %v722_v32 = vmul.f32 1.442695, %v696_v43  ;;  %v657_v8 = vmax.f32 %v655_v24, %v656_v7 }
 0x16b   :  { %v762_v60 = vsel %vm573_vm14, %v4196_v29, 0.0  ;;  %v947_v53 = vmul.f32 %v4192_v9, %v867_v59  ;;  %3248 = vpow2.f32 %v718_v36  ;;  %v801_v16 = vadd.f32 %v800_v57, %v799_v15 }
 0x16c   :  { %v753_v31 = vrot.slane %v752_v20, 1  ;;  %v763_v28 = vrot.slane %v762_v60, 4  ;;  %3250 = vpow2.f32 %v722_v32  ;;  %v697_v35 = vsub.f32 %v4104_v0, %v657_v8 }
 0x16d   :  { %v4202_v49 = vpop.eup %3246  ;;  %985 = vperm.xlu0 %3200, %v947_v53   ;;  %v698_v12 = vsub.f32 %v4121_v6, %v664_v1  ;;  %v670_v2 = vrot.slane %v669_v39, 1  ;;  %v677_v45 = vrot.slane %v676_v19, 1  ;;  %v788_v17 = vrot.slane %v4183_v10, 1 }
 0x16e   :  { %v754_v27 = vadd.f32 %v753_v31, %v752_v20  ;;  %v764_v26 = vadd.f32 %v763_v28, %v762_v60  ;;  %v776_v55 = vsel %vm573_vm14, %v4202_v49, 0.0  ;;  %v724_v15 = vmul.f32 1.442695, %v697_v35 }
 0x16f   :  { %v777_v24 = vrot.slane %v776_v55, 4  ;;  %v726_v57 = vmul.f32 1.442695, %v698_v12  ;;  %v671_v14 = vmax.f32 %v669_v39, %v670_v2  ;;  %v802_v47 = vrot.slane %v801_v16, 1 }
 0x170   :  { %3252 = vrcp.f32 %v754_v27  ;;  %975 = vperm.xlu1 %3201, %v945_v44   ;;  %v765_v5 = vrot.slane %v764_v26, 2  ;;  %v678_v22 = vmax.f32 %v676_v19, %v677_v45  ;;  %v683_v11 = vmax.f32 %v681_v61, %v682_v23 }
 0x171   :  { %v4209_v0 = vpop.eup %3248  ;;  %v778_v6 = vadd.f32 %v777_v24, %v776_v55  ;;  %3254 = vpow2.f32 %v724_v15  ;;  %v699_v20 = vsub.f32 %v4124_v33, %v671_v14  ;;  %v789_v1 = vadd.f32 %v788_v17, %v4183_v10 }
 0x172   :  { %v4212_v43 = vpop.eup %3250  ;;  %v766_v59 = vadd.f32 %v765_v5, %v764_v26  ;;  %v790_v36 = vsel %vm573_vm14, %v4209_v0, 0.0  ;;  %3256 = vpow2.f32 %v726_v57  ;;  %v700_v7 = vsub.f32 %v4154_v4, %v678_v22 }
 0x173   :  { %v779_v39 = vrot.slane %v778_v6, 2  ;;  %v791_v19 = vrot.slane %v790_v36, 4  ;;  %v804_v31 = vsel %vm573_vm14, %v4212_v43, 0.0  ;;  %v728_v61 = vmul.f32 1.442695, %v699_v20 }
 0x174   :  { %v767_v32 = vrot.slane %v766_v59, 1  ;;  %v805_v33 = vrot.slane %v804_v31, 4  ;;  %v730_v23 = vmul.f32 1.442695, %v700_v7  ;;  %v684_v27 = vrot.slane %v683_v11, 1 }
 0x175   :  { %v780_v53 = vadd.f32 %v779_v39, %v778_v6  ;;  %v792_v8 = vadd.f32 %v791_v19, %v790_v36  ;;  %v803_v35 = vadd.f32 %v802_v47, %v801_v16  ;;  %3258 = vpow2.f32 %v728_v61 }
 0x176   :  { %v3253_v44 = vpop.eup %3252  ;;  %v768_v28 = vadd.f32 %v767_v32, %v766_v59  ;;  %v806_v4 = vadd.f32 %v805_v33, %v804_v31  ;;  %3260 = vpow2.f32 %v730_v23  ;;  %v685_v17 = vmax.f32 %v683_v11, %v684_v27  ;;  %v4233_v59 = vpop.permute.xlu0 %902 }
 0x177   :  { %v864_v60 = vmul.f32 %v3253_v44, %v4173_v62  ;;  %v4221_v12 = vpop.eup %3254  ;;  %v781_v2 = vrot.slane %v780_v53, 1  ;;  %v793_v45 = vrot.slane %v792_v8, 2  ;;  %vm1276_vm6 = vcmask 1041409  }
 0x178   :  { %v4224_v26 = vpop.eup %3256  ;;  %3262 = vrcp.f32 %v768_v28  ;;  %v807_v55 = vrot.slane %v806_v4, 2  ;;  %v811_v62 = vsel %vm573_vm14, %v4221_v12, 0.0  ;;  %v701_v47 = vsub.f32 %v4157_v18, %v685_v17 }
 0x179   :  { %v944_v10 = vmul.f32 %v4175_v46, %v864_v60  ;;  %v782_v24 = vadd.f32 %v781_v2, %v780_v53  ;;  %v794_v16 = vadd.f32 %v793_v45, %v792_v8  ;;  %v812_v15 = vrot.slane %v811_v62, 4  ;;  %v4242_v60 = vpop.permute.xlu2 %906 }
 0x17a   :  { %v818_v57 = vsel %vm573_vm14, %v4224_v26, 0.0  ;;  %3264 = vrcp.f32 %v789_v1  ;;  %v808_v14 = vadd.f32 %v807_v55, %v806_v4  ;;  %v732_v31 = vmul.f32 1.442695, %v701_v47 }
 0x17b   :  { %970 = vperm.xlu2 %3202, %v944_v10   ;;  %v819_v5 = vrot.slane %v818_v57, 4  ;;  %3266 = vrcp.f32 %v782_v24  ;;  %v795_v22 = vrot.slane %v794_v16, 1  ;;  %v813_v6 = vadd.f32 %v812_v15, %v811_v62  ;;  %v4231_v20 = vpop.eup %3258 }
 0x17c   :  { %3268 = vrcp.f32 %v803_v35  ;;  %v809_v11 = vrot.slane %v808_v14, 1  ;;  %v4235_v7 = vpop.eup %3260  ;;  %v825_v1 = vsel %vm573_vm14, %v4231_v20, 0.0  ;;  %vm1278_vm7 = vcmask 1042434  }
 0x17d   :  { %v820_v36 = vadd.f32 %v819_v5, %v818_v57  ;;  %v796_v39 = vadd.f32 %v795_v22, %v794_v16  ;;  %v814_v19 = vrot.slane %v813_v6, 2  ;;  %v826_v33 = vrot.slane %v825_v1, 4  ;;  %v4247_v16 = vpop.permute.xlu1 %910 }
 0x17e   :  { %v3263_v44 = vpop.eup %3262  ;;  %v810_v18 = vadd.f32 %v809_v11, %v808_v14  ;;  %v832_v61 = vsel %vm573_vm14, %v4235_v7, 0.0  ;;  %v4250_v5 = vpop.permute.xlu0 %908  ;;  %vm1280_vm9 = vcmask 1043459   ;;  %vm1282_vm11 = vcmask 1044484  }
 0x17f   :  { %v821_v32 = vrot.slane %v820_v36, 2  ;;  %v866_v23 = vmul.f32 %v3263_v44, %v4196_v29  ;;  %3270 = vrcp.f32 %v796_v39  ;;  %v815_v53 = vadd.f32 %v814_v19, %v813_v6 }
 0x180   :  { %v833_v8 = vrot.slane %v832_v61, 4  ;;  %v3265_v27 = vpop.eup %3264  ;;  %v827_v35 = vadd.f32 %v826_v33, %v825_v1  ;;  %3272 = vpow2.f32 %v732_v31  ;;  %vm1284_vm15 = vcmask 1045509  }
 0x181   :  { %v822_v28 = vadd.f32 %v821_v32, %v820_v36  ;;  %v3267_v4 = vpop.eup %3266  ;;  %v946_v10 = vmul.f32 %v4233_v59, %v866_v23  ;;  %v816_v2 = vrot.slane %v815_v53, 1  ;;  %3274 = vrcp.f32 %v810_v18  ;;  %v4255_v1 = vpop.permute.xlu2 %912 }
 0x182   :  { %v834_v45 = vadd.f32 %v833_v8, %v832_v61  ;;  %v3269_v55 = vpop.eup %3268  ;;  %v868_v62 = vmul.f32 %v3267_v4, %v4202_v49  ;;  %v828_v29 = vrot.slane %v827_v35, 2  ;;  %v869_v24 = vmul.f32 %v3265_v27, %v4129_v58  ;;  %5220 = vst [vmem:[#allocation20_spill] sm:$0xff] %v4255_v1 }
 0x183   :  { %v823_v17 = vrot.slane %v822_v28, 1  ;;  %980 = vperm.xlu2 %3202, %v946_v10   ;;  %v817_v15 = vadd.f32 %v816_v2, %v815_v53  ;;  %v871_v36 = vmul.f32 %v3269_v55, %v4159_v21 }
 0x184   :  { %v835_v57 = vrot.slane %v834_v45, 2  ;;  %v948_v14 = vmul.f32 %v4242_v60, %v868_v62  ;;  %v829_v22 = vadd.f32 %v828_v29, %v827_v35  ;;  %v949_v19 = vmul.f32 %v4250_v5, %v869_v24 }
 0x185   :  { %v824_v47 = vadd.f32 %v823_v17, %v822_v28  ;;  %v3271_v6 = vpop.eup %3270  ;;  %3276 = vrcp.f32 %v817_v15  ;;  %v4261_v8 = vpop.permute.xlu1 %916 }
 0x186   :  { %v836_v11 = vadd.f32 %v835_v57, %v834_v45  ;;  %990 = vperm.xlu1 %3201, %v948_v14   ;;  %v870_v49 = vmul.f32 %v3271_v6, %v4209_v0  ;;  %v830_v58 = vrot.slane %v829_v22, 1  ;;  %v3273_v39 = vpop.eup %3272  ;;  %v951_v0 = vmul.f32 %v4255_v1, %v871_v36  ;;  %v4263_v35 = vpop.permute.xlu0 %914  ;;  %v5245_v1 = vld [vmem:[#allocation15_spill] sm:$0xff] }
 0x187   :  { %3278 = vrcp.f32 %v824_v47  ;;  %v3275_v44 = vpop.eup %3274  ;;  %v839_v33 = vsel %vm573_vm14, %v3273_v39, 0.0 }
 0x188   :  { %v837_v31 = vrot.slane %v836_v11, 1  ;;  %v950_v18 = vmul.f32 %v4247_v16, %v870_v49  ;;  %v831_v32 = vadd.f32 %v830_v58, %v829_v22  ;;  %v840_v23 = vrot.slane %v839_v33, 4  ;;  %v1350_v22 = vpop.f32.mrf.mxu0 }
 0x189   :  { %v872_v53 = vmul.f32 %v3275_v44, %v4212_v43  ;;  %v4269_v62 = vpop.permute.xlu2 %918 }
 0x18a   :  { %v838_v61 = vadd.f32 %v837_v31, %v836_v11  ;;  %1000 = vperm.xlu0 %3200, %v950_v18   ;;  %3280 = vrcp.f32 %v831_v32  ;;  %v841_v27 = vadd.f32 %v840_v23, %v839_v33  ;;  %5221 = vst [vmem:[#allocation21_spill] sm:$0xff] %v4269_v62 }
 0x18b   :  { %v3277_v21 = vpop.eup %3276  ;;  %995 = vperm.xlu2 %3202, %v949_v19   ;;  %v952_v55 = vmul.f32 %v4263_v35, %v872_v53 }
 0x18c   :  { %3282 = vrcp.f32 %v838_v61  ;;  %v873_v4 = vmul.f32 %v3277_v21, %v4221_v12  ;;  %v842_v10 = vrot.slane %v841_v27, 2 }
 0x18d   :  { %v3279_v28 = vpop.eup %3278  ;;  %v4274_v14 = vpop.permute.xlu1 %922 }
 0x18e   :  { %1005 = vperm.xlu1 %3201, %v951_v0   ;;  %v953_v2 = vmul.f32 %v4261_v8, %v873_v4  ;;  %v874_v45 = vmul.f32 %v3279_v28, %v4224_v26  ;;  %v843_v43 = vadd.f32 %v842_v10, %v841_v27  ;;  %v4276_v26 = vpop.permute.xlu0 %920  ;;  %v5223_v28 = vrot.slane %v3921_v52, 4 }
 0x190   :  { %v3281_v17 = vpop.eup %3280  ;;  %v844_v24 = vrot.slane %v843_v43, 1  ;;  %v954_v15 = vmul.f32 %v4269_v62, %v874_v45  ;;  %v1353_v58 = vpop.f32.mrf.mxu0 }
 0x191   :  { %v875_v12 = vmul.f32 %v3281_v17, %v4231_v20  ;;  %v4280_v36 = vpop.permute.xlu2 %924  ;;  %v3212_v20 = vld [vmem:[%s5139_s16 + $0x1] ss:$0 sm:$0xff] }
 0x192   :  { %v3283_v29 = vpop.eup %3282  ;;  %1015 = vperm.xlu0 %3200, %v953_v2   ;;  %v845_v47 = vadd.f32 %v844_v24, %v843_v43  ;;  %5222 = vst [vmem:[#allocation22_spill] sm:$0xff] %v4280_v36  ;;  %v4286_v31 = vadd.f32 %v3212_v20, %v1350_v22  ;;  %v4288_v44 = vadd.f32 %v3212_v20, %v1353_v58 }
 0x193   :  { %v876_v57 = vmul.f32 %v3283_v29, %v4235_v7  ;;  %1010 = vperm.xlu2 %3202, %v952_v55   ;;  %v955_v11 = vmul.f32 %v4276_v26, %v875_v12  ;;  %v5224_v12 = vrot.slane %v3958_v34, 4 }
 0x194   :  { %3284 = vrcp.f32 %v845_v47 }
 0x195   :  { %v956_v6 = vmul.f32 %v4274_v14, %v876_v57 }
 0x196   :  { %1020 = vperm.xlu1 %3201, %v954_v15  }
 0x19a   :  { %1030 = vperm.xlu0 %3200, %v956_v6   ;;  %v3285_v49 = vpop.eup %3284 }
 0x19b   :  { %1025 = vperm.xlu2 %3202, %v955_v11   ;;  %v877_v7 = vmul.f32 %v3285_v49, %v3273_v39  ;;  %v5225_v49 = vrot.slane %v3935_v3, 4 }
 0x19d   :  { %v957_v19 = vmul.f32 %v4280_v36, %v877_v7 }
 0x19f   :  { %1035 = vperm.xlu1 %3201, %v957_v19  }
 0x1a2   :  { %1398 = vrot.lane.b32.xlu0 %v4286_v31, %s3528_s3 }
 0x1a3   :  { %1400 = vrot.lane.b32.xlu2 %v4288_v44, %s3528_s3 }
 0x1cc   :  { %v961_v18 = vpop.permute.xlu0 %960 }
 0x1cd   :  { %v1038_v32 = vmul.f32 %v961_v18, %v3921_v52 }
 0x1cf   :  { %v1055_v33 = vsel %vm1054_vm2, %v1038_v32, 0.0 }
 0x1d0   :  { %v1056_v0 = vrot.slane %v1055_v33, 4 }
 0x1d2   :  { %v1057_v27 = vadd.f32 %v1056_v0, %v1055_v33 }
 0x1d4   :  { %v1058_v17 = vrot.slane %v1057_v27, 2 }
 0x1d5   :  { %v971_v39 = vpop.permute.xlu2 %970 }
 0x1d6   :  { %v1040_v61 = vmul.f32 %v971_v39, %v3935_v3  ;;  %v1059_v11 = vadd.f32 %v1058_v17, %v1057_v27 }
 0x1d8   :  { %v1069_v23 = vsel %vm1054_vm2, %v1040_v61, 0.0  ;;  %v1060_v61 = vrot.slane %v1059_v11, 1 }
 0x1d9   :  { %v1070_v21 = vrot.slane %v1069_v23, 4 }
 0x1da   :  { %v966_v53 = vpop.permute.xlu1 %965 }
 0x1db   :  { %v1039_v4 = vmul.f32 %v966_v53, %v5223_v28  ;;  %v1071_v10 = vadd.f32 %v1070_v21, %v1069_v23 }
 0x1dd   :  { %v1062_v2 = vsel %vm1054_vm2, %v1039_v4, 0.0  ;;  %v981_v45 = vpop.permute.xlu2 %980  ;;  %v1072_v15 = vrot.slane %v1071_v10, 2 }
 0x1de   :  { %v1063_v55 = vrot.slane %v1062_v2, 4  ;;  %v1042_v43 = vmul.f32 %v981_v45, %v3958_v34  ;;  %v5226_v34 = vrot.slane %v3989_v25, 4 }
 0x1df   :  { %v986_v24 = vpop.permute.xlu0 %985  ;;  %v1073_v58 = vadd.f32 %v1072_v15, %v1071_v10  ;;  %v4312_v10 = vadd.f32 %v1060_v61, %v1059_v11  ;;  %v1249_v61 = vld [vmem:[%s5138_s15 + $0x10] sm:$0xff] }
 0x1e0   :  { %v1064_v29 = vadd.f32 %v1063_v55, %v1062_v2  ;;  %v1083_v57 = vsel %vm1054_vm2, %v1042_v43, 0.0  ;;  %v1043_v47 = vmul.f32 %v986_v24, %v5224_v12 }
 0x1e1   :  { %v1084_v22 = vrot.slane %v1083_v57, 4  ;;  %v1074_v21 = vrot.slane %v1073_v58, 1  ;;  %v1183_v12 = vmul.f32 1.442695, %v4312_v10  ;;  %vm1167_vm5 = vcmp.gt.f32.partialorder %v4312_v10, 0.0 }
 0x1e2   :  { %v1065_v6 = vrot.slane %v1064_v29, 2  ;;  %v976_v52 = vpop.permute.xlu1 %975  ;;  %v1090_v7 = vsel %vm1054_vm2, %v1043_v47, 0.0 }
 0x1e3   :  { %v1041_v20 = vmul.f32 %v976_v52, %v5225_v49  ;;  %v1085_v19 = vadd.f32 %v1084_v22, %v1083_v57  ;;  %v1091_v33 = vrot.slane %v1090_v7, 4  ;;  %v4314_v55 = vadd.f32 %v1074_v21, %v1073_v58  ;;  %v1250_v58 = vld [vmem:[%s5138_s15 + $0x18] sm:$0xff] }
 0x1e4   :  { %v1066_v32 = vadd.f32 %v1065_v6, %v1064_v29  ;;  %3286 = vpow2.f32 %v1183_v12  ;;  %1313 = vmatpush.msra.mxu3 %v1250_v58 }
 0x1e5   :  { %v1076_v18 = vsel %vm1054_vm2, %v1041_v20, 0.0  ;;  %v996_v39 = vpop.permute.xlu2 %995  ;;  %v1086_v53 = vrot.slane %v1085_v19, 2  ;;  %v1092_v2 = vadd.f32 %v1091_v33, %v1090_v7  ;;  %v1187_v22 = vmul.f32 1.442695, %v4314_v55 }
 0x1e6   :  { %v1045_v23 = vmul.f32 %v996_v39, %v5226_v34  ;;  %v1077_v0 = vrot.slane %v1076_v18, 4  ;;  %v1067_v28 = vrot.slane %v1066_v32, 1  ;;  %1314 = vmatpush.msra.mxu3 %v1249_v61  ;;  %vm1169_vm3 = vcmp.gt.f32.partialorder %v4314_v55, 0.0 }
 0x1e7   :  { %v1087_v43 = vadd.f32 %v1086_v53, %v1085_v19  ;;  %v1093_v57 = vrot.slane %v1092_v2, 2  ;;  %3288 = vpow2.f32 %v1187_v22 }
 0x1e8   :  { %v1104_v27 = vsel %vm1054_vm2, %v1045_v23, 0.0  ;;  %v1078_v3 = vadd.f32 %v1077_v0, %v1076_v18  ;;  %v4316_v24 = vadd.f32 %v1067_v28, %v1066_v32  ;;  %v1248_v0 = vld [vmem:[%s5138_s15 + $0x8] sm:$0xff]  ;;  %v5227_v28 = vrot.slane %v4084_v50, 4 }
 0x1e9   :  { %v1105_v4 = vrot.slane %v1104_v27, 4  ;;  %v1088_v6 = vrot.slane %v1087_v43, 1  ;;  %v1094_v20 = vadd.f32 %v1093_v57, %v1092_v2  ;;  %1315 = vmatpush.msra.mxu3 %v1248_v0 }
 0x1ea   :  { %v1079_v45 = vrot.slane %v1078_v3, 2  ;;  %v1185_v49 = vmul.f32 1.442695, %v4316_v24  ;;  %v3287_v21 = vpop.eup %3286  ;;  %vm1168_vm8 = vcmp.gt.f32.partialorder %v4316_v24, 0.0 }
 0x1eb   :  { %v1106_v17 = vadd.f32 %v1105_v4, %v1104_v27  ;;  %v4327_v19 = vadd.f32 %v1088_v6, %v1087_v43  ;;  %v1095_v39 = vrot.slane %v1094_v20, 1  ;;  %v1247_v43 = vld [vmem:[%s5138_s15] sm:$0xff] }
 0x1ec   :  { %v1080_v29 = vadd.f32 %v1079_v45, %v1078_v3  ;;  %3290 = vpow2.f32 %v1185_v49  ;;  %1316 = vmatpush.msra.mxu3 %v1247_v43 }
 0x1ed   :  { %v1011_v15 = vpop.permute.xlu2 %1010  ;;  %v1107_v52 = vrot.slane %v1106_v17, 2  ;;  %v1191_v53 = vmul.f32 1.442695, %v4327_v19  ;;  %v4340_v2 = vadd.f32 %v1095_v39, %v1094_v20  ;;  %vm1171_vm10 = vcmp.gt.f32.partialorder %v4327_v19, 0.0 }
 0x1ee   :  { %v1081_v47 = vrot.slane %v1080_v29, 1  ;;  %v1048_v11 = vmul.f32 %v1011_v15, %v4050_v13  ;;  %v3109_v15 = vadd.f32 -1.0, %v3287_v21 }
 0x1ef   :  { %v1108_v18 = vadd.f32 %v1107_v52, %v1106_v17  ;;  %v3289_v17 = vpop.eup %3288  ;;  %vm1172_vm13 = vcmp.gt.f32.partialorder %v4340_v2, 0.0 }
 0x1f0   :  { %v4322_v7 = vadd.f32 %v1081_v47, %v1080_v29  ;;  %v1125_v32 = vsel %vm1054_vm2, %v1048_v11, 0.0  ;;  %v3111_v11 = vadd.f32 -1.0, %v3289_v17 }
 0x1f1   :  { %v1126_v23 = vrot.slane %v1125_v32, 4  ;;  %v1109_v27 = vrot.slane %v1108_v18, 1 }
 0x1f2   :  { %v1189_v34 = vmul.f32 1.442695, %v4322_v7  ;;  %v3291_v29 = vpop.eup %3290  ;;  %vm1170_vm12 = vcmp.gt.f32.partialorder %v4322_v7, 0.0 }
 0x1f3   :  { %v1127_v57 = vadd.f32 %v1126_v23, %v1125_v32  ;;  %v4347_v47 = vadd.f32 %v1109_v27, %v1108_v18  ;;  %v3110_v49 = vadd.f32 -1.0, %v3291_v29  ;;  %v1231_v32 = vsel %vm1167_vm5, %v4312_v10, %v3109_v15 }
 0x1f4   :  { %3292 = vpow2.f32 %v1189_v34  ;;  %v1233_v10 = vsel %vm1169_vm3, %v4314_v55, %v3111_v11  ;;  %vm1286_vm3 = vcmask 1046534   ;;  %vm1288_vm5 = vcmask 1047559  }
 0x1f5   :  { %v1026_v33 = vpop.permute.xlu2 %1025  ;;  %3294 = vpow2.f32 %v1191_v53  ;;  %v1128_v18 = vrot.slane %v1127_v57, 2  ;;  %v1197_v23 = vmul.f32 1.442695, %v4347_v47  ;;  %v5228_v53 = vrot.slane %v4018_v37, 4 }
 0x1f6   :  { %v1051_v4 = vmul.f32 %v1026_v33, %v5227_v28  ;;  %v1232_v28 = vsel %vm1168_vm8, %v4316_v24, %v3110_v49  ;;  %vm1174_vm1 = vcmp.gt.f32.partialorder %v4347_v47, 0.0 }
 0x1f7   :  { %v1277_v24 = vsel %vm1276_vm6, %v1232_v28, %v1231_v32 }
 0x1f8   :  { %v991_v3 = vpop.permute.xlu1 %990  ;;  %v1146_v6 = vsel %vm1054_vm2, %v1051_v4, 0.0 }
 0x1f9   :  { %v1044_v45 = vmul.f32 %v991_v3, %v3989_v25  ;;  %v1193_v25 = vmul.f32 1.442695, %v4340_v2  ;;  %v1147_v39 = vrot.slane %v1146_v6, 4 }
 0x1fa   :  { %v3293_v0 = vpop.eup %3292 }
 0x1fb   :  { %v1097_v12 = vsel %vm1054_vm2, %v1044_v45, 0.0  ;;  %3296 = vpow2.f32 %v1193_v25  ;;  %v3295_v3 = vpop.eup %3294  ;;  %v1129_v45 = vadd.f32 %v1128_v18, %v1127_v57  ;;  %v1148_v43 = vadd.f32 %v1147_v39, %v1146_v6 }
 0x1fc   :  { %v1098_v22 = vrot.slane %v1097_v12, 4  ;;  %v1001_v52 = vpop.permute.xlu0 %1000  ;;  %v3112_v15 = vadd.f32 -1.0, %v3293_v0  ;;  %3298 = vpow2.f32 %v1197_v23  ;;  %v5229_v25 = vrot.slane %v4050_v13, 4 }
 0x1fd   :  { %v1046_v58 = vmul.f32 %v1001_v52, %v4018_v37  ;;  %v3113_v52 = vadd.f32 -1.0, %v3295_v3 }
 0x1fe   :  { %v1099_v20 = vadd.f32 %v1098_v22, %v1097_v12 }
 0x1ff   :  { %v1111_v61 = vsel %vm1054_vm2, %v1046_v58, 0.0  ;;  %v1149_v58 = vrot.slane %v1148_v43, 2 }
 0x200   :  { %v1100_v33 = vrot.slane %v1099_v20, 2  ;;  %v1006_v34 = vpop.permute.xlu1 %1005  ;;  %v1112_v21 = vrot.slane %v1111_v61, 4 }
 0x201   :  { %v1047_v27 = vmul.f32 %v1006_v34, %v5228_v53  ;;  %v3297_v49 = vpop.eup %3296  ;;  %v1279_v53 = vsel %vm1278_vm7, %v1233_v10, %v1277_v24 }
 0x202   :  { %v1101_v4 = vadd.f32 %v1100_v33, %v1099_v20  ;;  %v1113_v17 = vadd.f32 %v1112_v21, %v1111_v61  ;;  %v1130_v20 = vrot.slane %v1129_v45, 1  ;;  %v1234_v33 = vsel %vm1170_vm12, %v4322_v7, %v3112_v15 }
 0x203   :  { %v1118_v29 = vsel %vm1054_vm2, %v1047_v27, 0.0  ;;  %v1235_v21 = vsel %vm1171_vm10, %v4327_v19, %v3113_v52  ;;  %v3299_v27 = vpop.eup %3298  ;;  %v3114_v7 = vadd.f32 -1.0, %v3297_v49  ;;  %v1281_v15 = vsel %vm1280_vm9, %v1234_v33, %v1279_v53 }
 0x204   :  { %v1102_v12 = vrot.slane %v1101_v4, 1  ;;  %v1119_v37 = vrot.slane %v1118_v29, 4  ;;  %v1016_v22 = vpop.permute.xlu0 %1015  ;;  %v1114_v55 = vrot.slane %v1113_v17, 2  ;;  %v3116_v52 = vadd.f32 -1.0, %v3299_v27 }
 0x205   :  { %v1049_v11 = vmul.f32 %v1016_v22, %v5229_v25 }
 0x206   :  { %v1103_v57 = vadd.f32 %v1102_v12, %v1101_v4  ;;  %v1120_v6 = vadd.f32 %v1119_v37, %v1118_v29  ;;  %v1115_v18 = vadd.f32 %v1114_v55, %v1113_v17  ;;  %v4379_v4 = vadd.f32 %v1130_v20, %v1129_v45 }
 0x207   :  { %v1132_v39 = vsel %vm1054_vm2, %v1049_v11, 0.0  ;;  %v1150_v17 = vadd.f32 %v1149_v58, %v1148_v43  ;;  %v1236_v43 = vsel %vm1172_vm13, %v4340_v2, %v3114_v7 }
 0x208   :  { %v1195_v61 = vmul.f32 1.442695, %v1103_v57  ;;  %v1121_v34 = vrot.slane %v1120_v6, 2  ;;  %v1133_v23 = vrot.slane %v1132_v39, 4  ;;  %v1021_v13 = vpop.permute.xlu1 %1020  ;;  %v1116_v0 = vrot.slane %v1115_v18, 1 }
 0x209   :  { %v1050_v32 = vmul.f32 %v1021_v13, %v4084_v50  ;;  %v1203_v11 = vmul.f32 1.442695, %v4379_v4  ;;  %v1151_v24 = vrot.slane %v1150_v17, 1  ;;  %vm1173_vm8 = vcmp.gt.f32.partialorder %v1103_v57, 0.0 }
 0x20a   :  { %v1122_v3 = vadd.f32 %v1121_v34, %v1120_v6  ;;  %v1134_v28 = vadd.f32 %v1133_v23, %v1132_v39  ;;  %3300 = vpow2.f32 %v1195_v61  ;;  %v4383_v12 = vadd.f32 %v1116_v0, %v1115_v18 }
 0x20b   :  { %v1139_v29 = vsel %vm1054_vm2, %v1050_v32, 0.0  ;;  %v1283_v6 = vsel %vm1282_vm11, %v1235_v21, %v1281_v15  ;;  %v1238_v34 = vsel %vm1174_vm1, %v4347_v47, %v3116_v52  ;;  %v4397_v21 = vadd.f32 %v1151_v24, %v1150_v17 }
 0x20c   :  { %v1123_v50 = vrot.slane %v1122_v3, 1  ;;  %v1135_v37 = vrot.slane %v1134_v28, 2  ;;  %v1140_v22 = vrot.slane %v1139_v29, 4  ;;  %v1031_v19 = vpop.permute.xlu0 %1030  ;;  %v1199_v58 = vmul.f32 1.442695, %v4383_v12 }
 0x20d   :  { %v1052_v10 = vmul.f32 %v1031_v19, %v4116_v30  ;;  %v1285_v2 = vsel %vm1284_vm15, %v1236_v43, %v1283_v6  ;;  %vm1175_vm12 = vcmp.gt.f32.partialorder %v4383_v12, 0.0  ;;  %vm1177_vm1 = vcmp.gt.f32.partialorder %v4379_v4, 0.0 }
 0x20e   :  { %v1124_v55 = vadd.f32 %v1123_v50, %v1122_v3  ;;  %v1136_v25 = vadd.f32 %v1135_v37, %v1134_v28  ;;  %v1141_v45 = vadd.f32 %v1140_v22, %v1139_v29  ;;  %v5230_v3 = vrot.slane %v4116_v30, 4 }
 0x20f   :  { %v1153_v49 = vsel %vm1054_vm2, %v1052_v10, 0.0  ;;  %v1209_v30 = vmul.f32 1.442695, %v4397_v21 }
 0x210   :  { %v3301_v20 = vpop.eup %3300  ;;  %v1201_v18 = vmul.f32 1.442695, %v1124_v55  ;;  %v1137_v39 = vrot.slane %v1136_v25, 1  ;;  %v1142_v33 = vrot.slane %v1141_v45, 2  ;;  %v1154_v23 = vrot.slane %v1153_v49, 4 }
 0x211   :  { %v3115_v61 = vadd.f32 -1.0, %v3301_v20  ;;  %v1036_v32 = vpop.permute.xlu1 %1035  ;;  %vm1176_vm10 = vcmp.gt.f32.partialorder %v1124_v55, 0.0 }
 0x212   :  { %3302 = vpow2.f32 %v1201_v18  ;;  %v1138_v13 = vadd.f32 %v1137_v39, %v1136_v25  ;;  %v1143_v0 = vadd.f32 %v1142_v33, %v1141_v45  ;;  %v1155_v27 = vadd.f32 %v1154_v23, %v1153_v49 }
 0x213   :  { %v1237_v53 = vsel %vm1173_vm8, %v1103_v57, %v3115_v61  ;;  %v1053_v28 = vmul.f32 %v1036_v32, %v5230_v3  ;;  %3304 = vpow2.f32 %v1199_v58 }
 0x214   :  { %v1205_v7 = vmul.f32 1.442695, %v1138_v13  ;;  %v1144_v29 = vrot.slane %v1143_v0, 1  ;;  %v1287_v47 = vsel %vm1286_vm3, %v1237_v53, %v1285_v2  ;;  %v1156_v50 = vrot.slane %v1155_v27, 2 }
 0x215   :  { %v1289_v15 = vsel %vm1288_vm5, %v1238_v34, %v1287_v47  ;;  %v1160_v37 = vsel %vm1054_vm2, %v1053_v28, 0.0  ;;  %vm1178_vm13 = vcmp.gt.f32.partialorder %v1138_v13, 0.0 }
 0x216   :  { %3306 = vpow2.f32 %v1205_v7  ;;  %v1145_v22 = vadd.f32 %v1144_v29, %v1143_v0  ;;  %3125 = vmatmul.msk.f32.vlgmr.msra.gmra.mxu3 %vm277_vm4, %v1289_v15  ;;  %v1161_v17 = vrot.slane %v1160_v37, 4  ;;  %v1157_v57 = vadd.f32 %v1156_v50, %v1155_v27 }
 0x217   :  { %3308 = vpow2.f32 %v1203_v11 }
 0x218   :  { %v3303_v19 = vpop.eup %3302  ;;  %v1207_v52 = vmul.f32 1.442695, %v1145_v22  ;;  %v1162_v10 = vadd.f32 %v1161_v17, %v1160_v37  ;;  %v1158_v25 = vrot.slane %v1157_v57, 1  ;;  %vm1179_vm8 = vcmp.gt.f32.partialorder %v1145_v22, 0.0 }
 0x219   :  { %v3305_v45 = vpop.eup %3304  ;;  %v3118_v24 = vadd.f32 -1.0, %v3303_v19 }
 0x21a   :  { %3310 = vpow2.f32 %v1207_v52  ;;  %v1163_v43 = vrot.slane %v1162_v10, 2  ;;  %v1159_v6 = vadd.f32 %v1158_v25, %v1157_v57  ;;  %v3117_v18 = vadd.f32 -1.0, %v3305_v45 }
 0x21b   :  { %3312 = vpow2.f32 %v1209_v30  ;;  %v1240_v33 = vsel %vm1176_vm10, %v1124_v55, %v3118_v24 }
 0x21c   :  { %v3307_v49 = vpop.eup %3306  ;;  %v1164_v20 = vadd.f32 %v1163_v43, %v1162_v10  ;;  %v1211_v39 = vmul.f32 1.442695, %v1159_v6  ;;  %v1239_v0 = vsel %vm1175_vm12, %v4383_v12, %v3117_v18  ;;  %vm1181_vm10 = vcmp.gt.f32.partialorder %v1159_v6, 0.0  ;;  %v3213_v10 = vld [vmem:[%s5139_s16] ss:$0 sm:$0xff] }
 0x21d   :  { %v3309_v58 = vpop.eup %3308  ;;  %v3120_v61 = vadd.f32 -1.0, %v3307_v49  ;;  %v1290_v27 = vsel %vm1276_vm6, %v1240_v33, %v1239_v0  ;;  %vm1180_vm12 = vcmp.gt.f32.partialorder %v4397_v21, 0.0 }
 0x21e   :  { %v1165_v11 = vrot.slane %v1164_v20, 1  ;;  %3314 = vpow2.f32 %v1211_v39  ;;  %v3119_v2 = vadd.f32 -1.0, %v3309_v58 }
 0x21f   :  { %v1242_v28 = vsel %vm1178_vm13, %v1138_v13, %v3120_v61 }
 0x220   :  { %v3311_v34 = vpop.eup %3310  ;;  %v1166_v23 = vadd.f32 %v1165_v11, %v1164_v20  ;;  %v1241_v55 = vsel %vm1177_vm1, %v4379_v4, %v3119_v2 }
 0x221   :  { %v3121_v32 = vadd.f32 -1.0, %v3311_v34  ;;  %v3313_v53 = vpop.eup %3312  ;;  %v1291_v15 = vsel %vm1278_vm7, %v1241_v55, %v1290_v27  ;;  %v1399_v27 = vpop.permute.xlu0 %1398 }
 0x222   :  { %v1213_v3 = vmul.f32 1.442695, %v1166_v23  ;;  %v3122_v47 = vadd.f32 -1.0, %v3313_v53  ;;  %v1292_v12 = vsel %vm1280_vm9, %v1242_v28, %v1291_v15  ;;  %vm1182_vm13 = vcmp.gt.f32.partialorder %v1166_v23, 0.0 }
 0x223   :  { %v1243_v7 = vsel %vm1179_vm8, %v1145_v22, %v3121_v32 }
 0x224   :  { %3316 = vpow2.f32 %v1213_v3  ;;  %v3315_v29 = vpop.eup %3314  ;;  %v1293_v37 = vsel %vm1282_vm11, %v1243_v7, %v1292_v12  ;;  %v1244_v13 = vsel %vm1180_vm12, %v4397_v21, %v3122_v47 }
 0x225   :  { %v3123_v50 = vadd.f32 -1.0, %v3315_v29  ;;  %v1294_v4 = vsel %vm1284_vm15, %v1244_v13, %v1293_v37 }
 0x227   :  { %v1245_v17 = vsel %vm1181_vm10, %v1159_v6, %v3123_v50 }
 0x228   :  { %v1295_v22 = vsel %vm1286_vm3, %v1245_v17, %v1294_v4 }
 0x22a   :  { %v3317_v57 = vpop.eup %3316 }
 0x22b   :  { %v3124_v19 = vadd.f32 -1.0, %v3317_v57  ;;  %v1401_v57 = vpop.permute.xlu2 %1400 }
 0x22d   :  { %v1246_v30 = vsel %vm1182_vm13, %v1166_v23, %v3124_v19 }
 0x22e   :  { %v1296_v52 = vsel %vm1288_vm5, %v1246_v30, %v1295_v22 }
 0x22f   :  { %3126 = vmatmul.msk.f32.gmra.mxu3 %vm277_vm4, %v1296_v52 }
 0x299   :  { %v1318_v25 = vpop.f32.mrf.mxu3 }
 0x29a   :  { %v1319_v45 = vadd.f32 %v3213_v10, %v1318_v25 }
 0x29c   :  { %v1356_v21 = vadd.f32 %v4286_v31, %v1319_v45 }
 0x29e   :  { %v1358_v43 = vsub.f32 0.0, %v1356_v21 }
 0x2a0   :  { %v1360_v24 = vmul.f32 1.442695, %v1358_v43 }
 0x2a2   :  { %3318 = vpow2.f32 %v1360_v24 }
 0x2a8   :  { %v3319_v6 = vpop.eup %3318 }
 0x2a9   :  { %v1364_v49 = vadd.f32 1.0, %v3319_v6 }
 0x2ab   :  { %3320 = vrcp.f32 %v1364_v49  ;;  %v1377_v61 = vand.u32 2147483648, %v1364_v49  ;;  %v1375_v2 = vand.u32 2147483647, %v1364_v49  ;;  %vm1371_vm8 = vweird.f32 %v1364_v49 }
 0x2ad   :  { %v1378_v32 = vor.u32 1.1754944e-38, %v1377_v61  ;;  %vm1376_vm12 = vcmp.eq.f32.partialorder %v1375_v2, 8.507059e+37 }
 0x2b1   :  { %v3321_v20 = vpop.eup %3320 }
 0x2b2   :  { %v1321_v58 = vpop.f32.mrf.mxu3  ;;  %v1367_v18 = vmul.f32 %v3321_v20, %v1364_v49  ;;  %vm1372_vm1 = vweird.f32 %v3321_v20 }
 0x2b3   :  { %v1322_v39 = vadd.f32 %v3213_v10, %v1321_v58  ;;  %vm1373_vm10 = vmor %vm1371_vm8, %vm1372_vm1  ;;  %v4433_v10 = vld [vmem:[%s5137_s14 + $0x1] ss:$0 sm:$0xff] }
 0x2b4   :  { %v1368_v11 = vsub.f32 1.0, %v1367_v18 }
 0x2b5   :  { %v1357_v33 = vadd.f32 %v4288_v44, %v1322_v39 }
 0x2b6   :  { %v1369_v34 = vmul.f32 %v3321_v20, %v1368_v11 }
 0x2b7   :  { %v1359_v23 = vsub.f32 0.0, %v1357_v33 }
 0x2b8   :  { %v1370_v0 = vadd.f32 %v3321_v20, %v1369_v34 }
 0x2b9   :  { %v1362_v31 = vmul.f32 1.442695, %v1359_v23 }
 0x2ba   :  { %v1374_v53 = vsel %vm1373_vm10, %v3321_v20, %v1370_v0 }
 0x2bb   :  { %3322 = vpow2.f32 %v1362_v31  ;;  %v1379_v3 = vsel %vm1376_vm12, %v1378_v32, %v1374_v53 }
 0x2bc   :  { %v1404_v28 = vmul.f32 %v1399_v27, %v1379_v3  ;;  %v1418_v58 = vsub.f32 1.0, %v1379_v3 }
 0x2be   :  { %1408 = vrot.lane.b32.xlu2 %v1404_v28, %s3528_s3 }
 0x2c1   :  { %v3323_v55 = vpop.eup %3322 }
 0x2c2   :  { %v1365_v44 = vadd.f32 1.0, %v3323_v55  ;;  %v85_v55 = vld [vmem:[%s5231_s6] sm:$0xff] }
 0x2c4   :  { %3324 = vrcp.f32 %v1365_v44  ;;  %v1392_v15 = vand.u32 2147483648, %v1365_v44  ;;  %v1390_v12 = vand.u32 2147483647, %v1365_v44  ;;  %vm1386_vm1 = vweird.f32 %v1365_v44 }
 0x2c6   :  { %v1393_v17 = vor.u32 1.1754944e-38, %v1392_v15  ;;  %vm1391_vm10 = vcmp.eq.f32.partialorder %v1390_v12, 8.507059e+37  ;;  %v88_v15 = vld [vmem:[%s5231_s6 + $0x18] sm:$0xff]  ;;  %v90_v12 = vld [vmem:[%s5231_s6 + $0x28] sm:$0xff] }
 0x2ca   :  { %v3325_v7 = vpop.eup %3324 }
 0x2cb   :  { %v1382_v29 = vmul.f32 %v3325_v7, %v1365_v44  ;;  %vm1387_vm13 = vweird.f32 %v3325_v7 }
 0x2cc   :  { %vm1388_vm8 = vmor %vm1386_vm1, %vm1387_vm13 }
 0x2cd   :  { %v1383_v47 = vsub.f32 1.0, %v1382_v29  ;;  %v86_v29 = vld [vmem:[%s5231_s6 + $0x8] sm:$0xff] }
 0x2cf   :  { %v1384_v50 = vmul.f32 %v3325_v7, %v1383_v47  ;;  %v87_v47 = vld [vmem:[%s5231_s6 + $0x10] sm:$0xff] }
 0x2d1   :  { %v1385_v37 = vadd.f32 %v3325_v7, %v1384_v50  ;;  %v89_v50 = vld [vmem:[%s5231_s6 + $0x20] sm:$0xff] }
 0x2d3   :  { %v1389_v13 = vsel %vm1388_vm8, %v3325_v7, %v1385_v37  ;;  %v91_v37 = vld [vmem:[%s5231_s6 + $0x30] sm:$0xff] }
 0x2d4   :  { %v1394_v4 = vsel %vm1391_vm10, %v1393_v17, %v1389_v13  ;;  %v92_v17 = vld [vmem:[%s5231_s6 + $0x38] sm:$0xff]  ;;  %s3530_s6 = smov [#allocation2]  }
 0x2d5   :  { %v1405_v19 = vmul.f32 %v1401_v57, %v1394_v4  ;;  %v3140_v13 = vld [vmem:[%s5135_s12 + $0x38] sm:$0xff]  ;;  %v3139_v57 = vld [vmem:[%s5135_s12 + $0x30] sm:$0xff] }
 0x2d6   :  { %1561 = vmatpush.msra.mxu0 %v3140_v13 }
 0x2d7   :  { %1410 = vrot.lane.b32.xlu1 %v1405_v19, %s3528_s3  ;;  %v3137_v19 = vld [vmem:[%s5135_s12 + $0x20] sm:$0xff] }
 0x2d8   :  { %1562 = vmatpush.msra.mxu0 %v3139_v57 }
 0x2df   :  { %1432 = vrot.lane.b32.xlu1 %v3785_v51, %s3526_s7 }
 0x318   :  { %v1409_v22 = vpop.permute.xlu2 %1408 }
 0x319   :  { %v1414_v30 = vadd.f32 %v1409_v22, %v1319_v45  ;;  %v1419_v45 = vsub.f32 1.0, %v1394_v4 }
 0x31b   :  { %3326 = vtanh.f32 %v1414_v30 }
 0x321   :  { %v3327_v52 = vpop.eup %3326 }
 0x322   :  { %1422 = vrot.lane.b32.xlu2 %v3327_v52, %s3529_s11 }
 0x32a   :  { %1618 = vrot.lane.b32.xlu2 %v4433_v10, %s3526_s7 }
 0x349   :  { %v1411_v25 = vpop.permute.xlu1 %1410 }
 0x34a   :  { %v1415_v21 = vadd.f32 %v1411_v25, %v1322_v39 }
 0x34c   :  { %3328 = vtanh.f32 %v1415_v21 }
 0x351   :  { %v1433_v24 = vpop.permute.xlu1 %1432 }
 0x352   :  { %v3329_v43 = vpop.eup %3328  ;;  %v1437_v20 = vmul.f32 %v1433_v24, %v1394_v4  ;;  %v3138_v4 = vld [vmem:[%s5135_s12 + $0x28] sm:$0xff]  ;;  %s3063_s12 = sshll.u32 %s5145_s22, 4  ;;  %s3077_s22 = sshll.u32 %s5146_s23, 4  ;;  %s3064_s12 = int_to_ptr.hbm [resolvable:$true] %s3063_s12  ;;  %s3078_s22 = int_to_ptr.hbm [resolvable:$true] %s3077_s22 }
 0x353   :  { %1424 = vrot.lane.b32.xlu0 %v3329_v43, %s3529_s11  ;;  %1563 = vmatpush.msra.mxu0 %v3138_v4 }
 0x355   :  { %1564 = vmatpush.msra.mxu0 %v3137_v19 }
 0x35b   :  { %1430 = vrot.lane.b32.xlu0 %v3771_v38, %s3526_s7 }
 0x37c   :  { %v1423_v49 = vpop.permute.xlu2 %1422 }
 0x37d   :  { %v1428_v11 = vmul.f32 %v1423_v49, %v1418_v58  ;;  %v4507_v49 = vld [vmem:[%s5136_s13 + $0x1] ss:$0 sm:$0xff]  ;;  %s3531_s13 = smov 128  }
 0x384   :  { %v1619_v23 = vpop.permute.xlu2 %1618 }
 0x3c5   :  { %v1425_v51 = vpop.permute.xlu0 %1424 }
 0x3c6   :  { %v1429_v6 = vmul.f32 %v1425_v51, %v1419_v45 }
 0x3c8   :  { %v4440_v33 = vadd.f32 %v1437_v20, %v1429_v6 }
 0x3ca   :  { %v1441_v34 = vmax.f32 %v4440_v33, 0.0 }
 0x3cc   :  { %v1622_v31 = vmul.f32 %v1619_v23, %v1441_v34 }
 0x3cd   :  { %v1431_v18 = vpop.permute.xlu0 %1430 }
 0x3ce   :  { %v1436_v61 = vmul.f32 %v1431_v18, %v1379_v3 }
 0x3d0   :  { %v4442_v39 = vadd.f32 %v1436_v61, %v1428_v11 }
 0x3d2   :  { %v1440_v2 = vmax.f32 %v4442_v39, 0.0 }
 0x3d4   :  { %v3203_v38 = vpack.i.bf16 %v1440_v2, %v1441_v34  ;;  %v1621_v0 = vmul.f32 %v1619_v23, %v1440_v2 }
 0x3d6   :  { %3204 = vrot.lane.b32.xlu1 %v3203_v38, %s3529_s11  ;;  %1625 = vrot.lane.b32.xlu0 %v1621_v0, %s3529_s11 }
 0x3de   :  { %1627 = vrot.lane.b32.xlu1 %v1622_v31, %s3529_s11 }
 0x448   :  { %v3205_v32 = vpop.permute.xlu1 %3204  ;;  %v1626_v53 = vpop.permute.xlu0 %1625 }
 0x449   :  { %v1631_v27 = vsel %vm277_vm4, %v1626_v53, 0.0  ;;  %v3206_v3 = vunpack.i.l.bf16 %v3205_v32  ;;  %v3207_v28 = vunpack.i.h.bf16 %v3205_v32 }
 0x44a   :  { %1632 = vadd.xlane.f32.xlu2 %v1631_v27 }
 0x44b   :  { %1488 = vmatpush.msrb.mxu3 %v3206_v3 }
 0x44d   :  { %1489 = vmatpush.msrb.mxu3 %v3207_v28 }
 0x44e   :  { %3129 = vmatmul.msk.f32.vlgmr.msrb.gmra.mxu3 %vm136_vm0, %v85_v55 }
 0x450   :  { %v1628_v44 = vpop.permute.xlu1 %1627 }
 0x451   :  { %v1634_v7 = vsel %vm277_vm4, %v1628_v44, 0.0 }
 0x452   :  { %1635 = vadd.xlane.f32.xlu0 %v1634_v7 }
 0x456   :  { %3130 = vmatmul.msk.f32.gmra.mxu3 %vm136_vm0, %v86_v29 }
 0x45e   :  { %3131 = vmatmul.msk.f32.gmra.mxu3 %vm136_vm0, %v87_v47 }
 0x466   :  { %3132 = vmatmul.msk.f32.gmra.mxu3 %vm136_vm0, %v88_v15 }
 0x46e   :  { %3133 = vmatmul.msk.f32.gmra.mxu3 %vm136_vm0, %v89_v50 }
 0x476   :  { %3134 = vmatmul.msk.f32.gmra.mxu3 %vm136_vm0, %v90_v12 }
 0x47e   :  { %3135 = vmatmul.msk.f32.gmra.mxu3 %vm136_vm0, %v91_v37 }
 0x486   :  { %3136 = vmatmul.msk.f32.gmra.mxu3 %vm136_vm0, %v92_v17 }
 0x4bd   :  { %v1633_v24 = vpop.xlane.xlu2 %1632 }
 0x4be   :  { %v1638_v6 = vadd.f32 %v4433_v10, %v1633_v24 }
 0x4c0   :  { %v1642_v20 = vrot.slane %v1638_v6, 1  ;;  %v1656_v11 = vperm.slane %v1638_v6, 0  ;;  %v1643_v0 = vrot.slane %v1638_v6, 2  ;;  %v1644_v27 = vrot.slane %v1638_v6, 3 }
 0x4c1   :  { %v1645_v55 = vrot.slane %v1638_v6, 4  ;;  %v1646_v44 = vrot.slane %v1638_v6, 5  ;;  %v1647_v7 = vrot.slane %v1638_v6, 6 }
 0x4c2   :  { %v1657_v34 = vperm.slane %v1642_v20, 0  ;;  %v1658_v15 = vperm.slane %v1643_v0, 0  ;;  %v1659_v57 = vperm.slane %v1644_v27, 0 }
 0x4c5   :  { %v1636_v31 = vpop.xlane.xlu0 %1635 }
 0x4c6   :  { %v4523_v50 = vadd.f32 %v4433_v10, %v1636_v31  ;;  %v4534_v10 = vperm.slane %v1647_v7, 0 }
 0x4d1   :  { %v1491_v22 = vpop.f32.mrf.mxu3 }
 0x4d2   :  { %3142 = vmatmul.msk.f32.vlgmr.msra.gmra.mxu0 %vm277_vm4, %v1491_v22  ;;  %v1660_v22 = vperm.slane %v1645_v55, 0  ;;  %v1653_v55 = vrot.slane %v4523_v50, 5 }
 0x4d9   :  { %v1494_v30 = vpop.f32.mrf.mxu3 }
 0x4da   :  { %3143 = vmatmul.msk.f32.gmra.mxu0 %vm277_vm4, %v1494_v30  ;;  %v1661_v30 = vperm.slane %v1646_v44, 0  ;;  %v1654_v44 = vrot.slane %v4523_v50, 6 }
 0x4e1   :  { %v1497_v52 = vpop.f32.mrf.mxu3 }
 0x4e2   :  { %3144 = vmatmul.msk.f32.gmra.mxu0 %vm277_vm4, %v1497_v52 }
 0x4e9   :  { %v1500_v25 = vpop.f32.mrf.mxu3 }
 0x4ea   :  { %3145 = vmatmul.msk.f32.gmra.mxu0 %vm277_vm4, %v1500_v25 }
 0x4f1   :  { %v1503_v21 = vpop.f32.mrf.mxu3 }
 0x4f2   :  { %3146 = vmatmul.msk.f32.gmra.mxu0 %vm277_vm4, %v1503_v21 }
 0x4f9   :  { %v1506_v43 = vpop.f32.mrf.mxu3 }
 0x4fa   :  { %3147 = vmatmul.msk.f32.gmra.mxu0 %vm277_vm4, %v1506_v43 }
 0x501   :  { %v1509_v51 = vpop.f32.mrf.mxu3 }
 0x502   :  { %3148 = vmatmul.msk.f32.gmra.mxu0 %vm277_vm4, %v1509_v51  ;;  %v1649_v51 = vrot.slane %v4523_v50, 1 }
 0x509   :  { %v1512_v45 = vpop.f32.mrf.mxu3 }
 0x50a   :  { %3149 = vmatmul.msk.f32.gmra.mxu0 %vm277_vm4, %v1512_v45  ;;  %v1664_v45 = vperm.slane %v4523_v50, 0 }
 0x54f   :  { %v1566_v58 = vpop.f32.mrf.mxu0 }
 0x550   :  { %v4510_v18 = vadd.f32 %v4507_v49, %v1566_v58 }
 0x552   :  { %5232 = vst [vmem:[#allocation23_spill] sm:$0xff] %v4510_v18  ;;  %v5177_v61 = vrot.slane %v4510_v18, 4  ;;  %v1688_v2 = vadd.f32 %v1656_v11, %v4510_v18 }
 0x554   :  { %v1689_v23 = vadd.f32 %v1657_v34, %v5177_v61  ;;  %vm1704_vm12 = vcmp.gt.f32.partialorder %v1688_v2, 0.0  ;;  %v1720_v38 = vmul.f32 0.01, %v1688_v2  ;;  %v1650_v34 = vrot.slane %v4523_v50, 2 }
 0x556   :  { %vm1705_vm13 = vcmp.gt.f32.partialorder %v1689_v23, 0.0  ;;  %v1721_v32 = vmul.f32 0.01, %v1689_v23  ;;  %v1736_v53 = vsel %vm1704_vm12, %v1688_v2, %v1720_v38  ;;  %v1651_v2 = vrot.slane %v4523_v50, 3 }
 0x557   :  { %v4517_v3 = vadd.f32 %v1736_v53, %v3918_v48  ;;  %v1569_v28 = vpop.f32.mrf.mxu0  ;;  %v1648_v48 = vrot.slane %v1638_v6, 7  ;;  %v5234_v53 = vld [vmem:[#allocation10_spill] sm:$0xff] }
 0x558   :  { %v1737_v29 = vsel %vm1705_vm13, %v1689_v23, %v1721_v32  ;;  %v4520_v47 = vadd.f32 %v4507_v49, %v1569_v28  ;;  %v1652_v23 = vrot.slane %v4523_v50, 4 }
 0x559   :  { %v4526_v12 = vadd.f32 %v1737_v29, %v3929_v63  ;;  %v1768_v37 = vsel %vm573_vm14, %v4517_v3, -inf  ;;  %v1663_v43 = vperm.slane %v1648_v48, 0 }
 0x55a   :  { %5233 = vst [vmem:[#allocation24_spill] sm:$0xff] %v4520_v47  ;;  %v1769_v17 = vrot.slane %v1768_v37, 4  ;;  %v5174_v13 = vrot.slane %v4520_v47, 4  ;;  %v1690_v4 = vadd.f32 %v1658_v15, %v4520_v47 }
 0x55b   :  { %v1775_v19 = vsel %vm573_vm14, %v4526_v12, -inf }
 0x55c   :  { %v1770_v52 = vmax.f32 %v1768_v37, %v1769_v17  ;;  %v1776_v63 = vrot.slane %v1775_v19, 4  ;;  %v1691_v25 = vadd.f32 %v1659_v57, %v5174_v13  ;;  %vm1706_vm1 = vcmp.gt.f32.partialorder %v1690_v4, 0.0 }
 0x55d   :  { %v1722_v21 = vmul.f32 0.01, %v1690_v4  ;;  %v1655_v37 = vrot.slane %v4523_v50, 7 }
 0x55e   :  { %v1771_v24 = vrot.slane %v1770_v52, 2  ;;  %v1777_v6 = vmax.f32 %v1775_v19, %v1776_v63  ;;  %vm1707_vm8 = vcmp.gt.f32.partialorder %v1691_v25, 0.0  ;;  %v1723_v20 = vmul.f32 0.01, %v1691_v25 }
 0x55f   :  { %v1738_v58 = vsel %vm1706_vm1, %v1690_v4, %v1722_v21  ;;  %v1572_v11 = vpop.f32.mrf.mxu0 }
 0x560   :  { %v1772_v38 = vmax.f32 %v1770_v52, %v1771_v24  ;;  %v1778_v0 = vrot.slane %v1777_v6, 2  ;;  %v1739_v31 = vsel %vm1707_vm8, %v1691_v25, %v1723_v20  ;;  %v4544_v32 = vadd.f32 %v1738_v58, %v3925_v56 }
 0x561   :  { %v4547_v27 = vadd.f32 %v1739_v31, %v5234_v53  ;;  %v4550_v28 = vadd.f32 %v4507_v49, %v1572_v11  ;;  %v4561_v52 = vperm.slane %v1649_v51, 0  ;;  %v4566_v58 = vperm.slane %v1650_v34, 0 }
 0x562   :  { %v1773_v7 = vrot.slane %v1772_v38, 1  ;;  %v1779_v29 = vmax.f32 %v1777_v6, %v1778_v0  ;;  %v1782_v15 = vsel %vm573_vm14, %v4544_v32, -inf }
 0x563   :  { %5235 = vst [vmem:[#allocation10_spill] sm:$0xff] %v4550_v28  ;;  %v1783_v48 = vrot.slane %v1782_v15, 4  ;;  %v1789_v56 = vsel %vm573_vm14, %v4547_v27, -inf  ;;  %v5176_v17 = vrot.slane %v4550_v28, 4  ;;  %v1692_v57 = vadd.f32 %v1660_v22, %v4550_v28 }
 0x564   :  { %v1774_v4 = vmax.f32 %v1772_v38, %v1773_v7  ;;  %v1790_v19 = vrot.slane %v1789_v56, 4  ;;  %v1780_v63 = vrot.slane %v1779_v29, 1  ;;  %v5236_v7 = vld [vmem:[#allocation8_spill] sm:$0xff] }
 0x565   :  { %v1784_v25 = vmax.f32 %v1782_v15, %v1783_v48  ;;  %v1693_v21 = vadd.f32 %v1661_v30, %v5176_v17  ;;  %vm1708_vm10 = vcmp.gt.f32.partialorder %v1692_v57, 0.0  ;;  %v1724_v24 = vmul.f32 0.01, %v1692_v57 }
 0x566   :  { %v1880_v6 = vsub.f32 %v4517_v3, %v1774_v4  ;;  %v1791_v20 = vmax.f32 %v1789_v56, %v1790_v19  ;;  %v1781_v11 = vmax.f32 %v1779_v29, %v1780_v63  ;;  %v4574_v3 = vperm.slane %v1651_v2, 0  ;;  %v5238_v56 = vld [vmem:[#allocation12_spill] sm:$0xff] }
 0x567   :  { %v1785_v0 = vrot.slane %v1784_v25, 2  ;;  %vm1709_vm12 = vcmp.gt.f32.partialorder %v1693_v21, 0.0  ;;  %v1725_v22 = vmul.f32 0.01, %v1693_v21  ;;  %v1740_v38 = vsel %vm1708_vm10, %v1692_v57, %v1724_v24  ;;  %v1575_v31 = vpop.f32.mrf.mxu0 }
 0x568   :  { %v1896_v51 = vmul.f32 1.442695, %v1880_v6  ;;  %v1792_v53 = vrot.slane %v1791_v20, 2  ;;  %v4569_v15 = vadd.f32 %v1740_v38, %v5236_v7  ;;  %v4572_v30 = vadd.f32 %v4507_v49, %v1575_v31 }
 0x569   :  { %v1786_v48 = vmax.f32 %v1784_v25, %v1785_v0  ;;  %v1741_v13 = vsel %vm1709_vm12, %v1693_v21, %v1725_v22  ;;  %v1881_v34 = vsub.f32 %v4526_v12, %v1781_v11  ;;  %v4589_v25 = vperm.slane %v1652_v23, 0 }
 0x56a   :  { %5237 = vst [vmem:[#allocation8_spill] sm:$0xff] %v4572_v30  ;;  %v1793_v29 = vmax.f32 %v1791_v20, %v1792_v53  ;;  %v4578_v4 = vadd.f32 %v1741_v13, %v5238_v56  ;;  %v1796_v57 = vsel %vm573_vm14, %v4569_v15, -inf  ;;  %v5175_v19 = vrot.slane %v4572_v30, 4 }
 0x56b   :  { %v1787_v63 = vrot.slane %v1786_v48, 1  ;;  %v1797_v24 = vrot.slane %v1796_v57, 4  ;;  %v1694_v6 = vadd.f32 %v4534_v10, %v4572_v30  ;;  %3330 = vpow2.f32 %v1896_v51 }
 0x56c   :  { %v1803_v2 = vsel %vm573_vm14, %v4578_v4, -inf  ;;  %v1695_v12 = vadd.f32 %v1663_v43, %v5175_v19  ;;  %v1898_v13 = vmul.f32 1.442695, %v1881_v34  ;;  %v4591_v38 = vperm.slane %v1653_v55, 0 }
 0x56d   :  { %v1788_v21 = vmax.f32 %v1786_v48, %v1787_v63  ;;  %v1798_v20 = vmax.f32 %v1796_v57, %v1797_v24  ;;  %v1804_v11 = vrot.slane %v1803_v2, 4  ;;  %vm1710_vm13 = vcmp.gt.f32.partialorder %v1694_v6, 0.0  ;;  %v5240_v63 = vld [vmem:[#allocation11_spill] sm:$0xff] }
 0x56e   :  { %vm1711_vm1 = vcmp.gt.f32.partialorder %v1695_v12, 0.0  ;;  %v1726_v0 = vmul.f32 0.01, %v1694_v6  ;;  %v1727_v22 = vmul.f32 0.01, %v1695_v12  ;;  %v4593_v51 = vperm.slane %v1654_v44, 0 }
 0x56f   :  { %v1799_v10 = vrot.slane %v1798_v20, 2  ;;  %v1578_v31 = vpop.f32.mrf.mxu0  ;;  %v4595_v53 = vperm.slane %v1655_v37, 0  ;;  %v1794_v7 = vrot.slane %v1793_v29, 1  ;;  %3332 = vpow2.f32 %v1898_v13  ;;  %v5241_v44 = vld [vmem:[#allocation14_spill] sm:$0xff] }
 0x570   :  { %v1742_v43 = vsel %vm1710_vm13, %v1694_v6, %v1726_v0  ;;  %v1743_v23 = vsel %vm1711_vm1, %v1695_v12, %v1727_v22  ;;  %v4598_v34 = vadd.f32 %v4507_v49, %v1578_v31  ;;  %v1882_v56 = vsub.f32 %v4544_v32, %v1788_v21 }
 0x571   :  { %v4600_v48 = vpop.eup %3330  ;;  %v1800_v57 = vmax.f32 %v1798_v20, %v1799_v10  ;;  %v4603_v55 = vmax.f32 %v1803_v2, %v1804_v11  ;;  %v4606_v24 = vadd.f32 %v1742_v43, %v5240_v63  ;;  %v4609_v37 = vadd.f32 %v1743_v23, %v5241_v44 }
 0x572   :  { %5239 = vst [vmem:[#allocation12_spill] sm:$0xff] %v4598_v34  ;;  %v5182_v6 = vrot.slane %v4598_v34, 4  ;;  %v1696_v12 = vadd.f32 %v1664_v45, %v4598_v34  ;;  %v1928_v13 = vsel %vm573_vm14, %v4600_v48, 0.0  ;;  %v4619_v21 = vmax.f32 %v1793_v29, %v1794_v7 }
 0x573   :  { %v1801_v0 = vrot.slane %v1800_v57, 1  ;;  %v1810_v32 = vsel %vm573_vm14, %v4606_v24, -inf  ;;  %v1929_v2 = vrot.slane %v1928_v13, 4  ;;  %v1817_v11 = vsel %vm573_vm14, %v4609_v37, -inf }
 0x574   :  { %v1811_v20 = vrot.slane %v1810_v32, 4  ;;  %v1697_v22 = vadd.f32 %v4561_v52, %v5182_v6  ;;  %vm1712_vm8 = vcmp.gt.f32.partialorder %v1696_v12, 0.0  ;;  %v1818_v45 = vrot.slane %v1817_v11, 4  ;;  %v5242_v52 = vld [vmem:[#allocation13_spill] sm:$0xff] }
 0x575   :  { %v1802_v50 = vmax.f32 %v1800_v57, %v1801_v0  ;;  %v1728_v10 = vmul.f32 0.01, %v1696_v12  ;;  %v1930_v31 = vadd.f32 %v1929_v2, %v1928_v13  ;;  %v4626_v43 = vpop.eup %3332  ;;  %v1900_v23 = vmul.f32 1.442695, %v1882_v56  ;;  %v5244_v56 = vld [vmem:[#allocation16_spill] sm:$0xff] }
 0x576   :  { %v1812_v63 = vmax.f32 %v1810_v32, %v1811_v20  ;;  %vm1713_vm10 = vcmp.gt.f32.partialorder %v1697_v22, 0.0  ;;  %v1729_v29 = vmul.f32 0.01, %v1697_v22  ;;  %v1806_v7 = vrot.slane %v4603_v55, 2 }
 0x577   :  { %v1819_v44 = vmax.f32 %v1817_v11, %v1818_v45  ;;  %v1744_v19 = vsel %vm1712_vm8, %v1696_v12, %v1728_v10  ;;  %v1581_v17 = vpop.f32.mrf.mxu0  ;;  %v1931_v61 = vrot.slane %v1930_v31, 2  ;;  %v1884_v13 = vsub.f32 %v4569_v15, %v1802_v50 }
 0x578   :  { %v1813_v34 = vrot.slane %v1812_v63, 2  ;;  %v1745_v30 = vsel %vm1713_vm10, %v1697_v22, %v1729_v29  ;;  %v4630_v6 = vadd.f32 %v1744_v19, %v5242_v52  ;;  %v4633_v57 = vadd.f32 %v4507_v49, %v1581_v17 }
 0x579   :  { %v4637_v0 = vadd.f32 %v1745_v30, %v5244_v56  ;;  %v1932_v32 = vadd.f32 %v1931_v61, %v1930_v31  ;;  %v1935_v2 = vsel %vm573_vm14, %v4626_v43, 0.0  ;;  %v1820_v17 = vrot.slane %v1819_v44, 2 }
 0x57a   :  { %5243 = vst [vmem:[#allocation11_spill] sm:$0xff] %v4633_v57  ;;  %v1814_v12 = vmax.f32 %v1812_v63, %v1813_v34  ;;  %v1824_v20 = vsel %vm573_vm14, %v4630_v6, -inf  ;;  %v1603_v11 = vrot.slane %v4633_v57, 4  ;;  %v1698_v19 = vadd.f32 %v4566_v58, %v4633_v57 }
 0x57b   :  { %v1825_v22 = vrot.slane %v1824_v20, 4  ;;  %v1831_v15 = vsel %vm573_vm14, %v4637_v0, -inf  ;;  %v1933_v30 = vrot.slane %v1932_v32, 1  ;;  %v1936_v63 = vrot.slane %v1935_v2, 4 }
 0x57c   :  { %v1815_v50 = vrot.slane %v1814_v12, 1  ;;  %v1832_v61 = vrot.slane %v1831_v15, 4  ;;  %v1699_v34 = vadd.f32 %v4574_v3, %v1603_v11  ;;  %vm1714_vm12 = vcmp.gt.f32.partialorder %v1698_v19, 0.0 }
 0x57d   :  { %v1826_v45 = vmax.f32 %v1824_v20, %v1825_v22  ;;  %v1730_v10 = vmul.f32 0.01, %v1698_v19  ;;  %v1934_v31 = vadd.f32 %v1933_v30, %v1932_v32  ;;  %v1937_v18 = vadd.f32 %v1936_v63, %v1935_v2  ;;  %v5246_v22 = vld [vmem:[#allocation9_spill] sm:$0xff] }
 0x57e   :  { %v1816_v29 = vmax.f32 %v1814_v12, %v1815_v50  ;;  %v1833_v52 = vmax.f32 %v1831_v15, %v1832_v61  ;;  %vm1715_vm13 = vcmp.gt.f32.partialorder %v1699_v34, 0.0  ;;  %v1731_v58 = vmul.f32 0.01, %v1699_v34 }
 0x57f   :  { %v1827_v56 = vrot.slane %v1826_v45, 2  ;;  %v1746_v28 = vsel %vm1714_vm12, %v1698_v19, %v1730_v10  ;;  %v1584_v47 = vpop.f32.mrf.mxu0  ;;  %3334 = vrcp.f32 %v1934_v31  ;;  %v1938_v15 = vrot.slane %v1937_v18, 2 }
 0x580   :  { %v1886_v36 = vsub.f32 %v4606_v24, %v1816_v29  ;;  %v1834_v62 = vrot.slane %v1833_v52, 2  ;;  %v1747_v57 = vsel %vm1715_vm13, %v1699_v34, %v1731_v58  ;;  %v4653_v3 = vadd.f32 %v1746_v28, %v5245_v1 }
 0x581   :  { %v1828_v20 = vmax.f32 %v1826_v45, %v1827_v56  ;;  %v4656_v32 = vadd.f32 %v1747_v57, %v5246_v22  ;;  %v4659_v12 = vadd.f32 %v4507_v49, %v1584_v47  ;;  %v4662_v19 = vmax.f32 %v4603_v55, %v1806_v7  ;;  %v5247_v22 = vld [vmem:[#allocation18_spill] sm:$0xff] }
 0x582   :  { %v4664_v30 = vmul.f32 1.442695, %v1884_v13  ;;  %v1838_v24 = vsel %vm573_vm14, %v4653_v3, -inf  ;;  %3336 = vpow2.f32 %v1900_v23  ;;  %v4668_v2 = vmax.f32 %v1819_v44, %v1820_v17 }
 0x583   :  { %v1839_v1 = vrot.slane %v1838_v24, 4  ;;  %v1845_v28 = vsel %vm573_vm14, %v4656_v32, -inf  ;;  %v1604_v57 = vrot.slane %v4659_v12, 4  ;;  %v1908_v47 = vmul.f32 1.442695, %v1886_v36 }
 0x584   :  { %v1829_v50 = vrot.slane %v1828_v20, 1  ;;  %v1846_v61 = vrot.slane %v1845_v28, 4  ;;  %v1700_v55 = vadd.f32 %v4589_v25, %v4659_v12  ;;  %v4675_v13 = vmax.f32 %v1833_v52, %v1834_v62 }
 0x585   :  { %v3335_v7 = vpop.eup %3334  ;;  %v1840_v34 = vmax.f32 %v1838_v24, %v1839_v1  ;;  %v1701_v23 = vadd.f32 %v4591_v38, %v1604_v57  ;;  %v1939_v44 = vadd.f32 %v1938_v15, %v1937_v18  ;;  %v1808_v25 = vrot.slane %v4662_v19, 1  ;;  %v5248_v24 = vld [vmem:[#allocation17_spill] sm:$0xff] }
 0x586   :  { %v1847_v17 = vmax.f32 %v1845_v28, %v1846_v61  ;;  %vm1716_vm1 = vcmp.gt.f32.partialorder %v1700_v55, 0.0  ;;  %v1732_v45 = vmul.f32 0.01, %v1700_v55  ;;  %v2056_v10 = vmul.f32 %v3335_v7, %v4600_v48 }
 0x587   :  { %v1841_v36 = vrot.slane %v1840_v34, 2  ;;  %vm1717_vm8 = vcmp.gt.f32.partialorder %v1701_v23, 0.0  ;;  %v1733_v31 = vmul.f32 0.01, %v1701_v23  ;;  %v1587_v63 = vpop.f32.mrf.mxu0  ;;  %v4684_v62 = vmax.f32 %v1828_v20, %v1829_v50 }
 0x588   :  { %v4682_v29 = vpop.eup %3336  ;;  %v1748_v52 = vsel %vm1716_vm1, %v1700_v55, %v1732_v45  ;;  %v4687_v58 = vadd.f32 %v4507_v49, %v1587_v63  ;;  %v2072_v18 = vmul.f32 %v2056_v10, %v4142_v54  ;;  %3338 = vpow2.f32 %v1908_v47 }
 0x589   :  { %v1842_v38 = vmax.f32 %v1840_v34, %v1841_v36  ;;  %v1749_v56 = vsel %vm1717_vm8, %v1701_v23, %v1733_v31  ;;  %v4691_v48 = vadd.f32 %v1748_v52, %v5247_v22  ;;  %v1848_v15 = vrot.slane %v1847_v17, 2 }
 0x58a   :  { %v4694_v1 = vadd.f32 %v1749_v56, %v5248_v24  ;;  %v5194_v28 = vrot.slane %v4687_v58, 4  ;;  %v1702_v20 = vadd.f32 %v4593_v51, %v4687_v58  ;;  %2090 = vperm.xlu1 %3201, %v2072_v18   ;;  %v1940_v50 = vrot.slane %v1939_v44, 1 }
 0x58b   :  { %v1843_v49 = vrot.slane %v1842_v38, 1  ;;  %v1852_v54 = vsel %vm573_vm14, %v4691_v48, -inf  ;;  %v1942_v61 = vsel %vm573_vm14, %v4682_v29, 0.0 }
 0x58c   :  { %v1853_v55 = vrot.slane %v1852_v54, 4  ;;  %v1859_v47 = vsel %vm573_vm14, %v4694_v1, -inf  ;;  %v1703_v7 = vadd.f32 %v4595_v53, %v5194_v28  ;;  %vm1718_vm10 = vcmp.gt.f32.partialorder %v1702_v20, 0.0 }
 0x58d   :  { %v1844_v34 = vmax.f32 %v1842_v38, %v1843_v49  ;;  %v1860_v51 = vrot.slane %v1859_v47, 4  ;;  %v1734_v23 = vmul.f32 0.01, %v1702_v20  ;;  %v1941_v45 = vadd.f32 %v1940_v50, %v1939_v44 }
 0x58e   :  { %v1854_v10 = vmax.f32 %v1852_v54, %v1853_v55  ;;  %vm1719_vm12 = vcmp.gt.f32.partialorder %v1703_v7, 0.0  ;;  %v1735_v36 = vmul.f32 0.01, %v1703_v7  ;;  %v1943_v31 = vrot.slane %v1942_v61, 4  ;;  %v4708_v63 = vpop.eup %3338  ;;  %v5249_v54 = vld [vmem:[#allocation19_spill] sm:$0xff] }
 0x58f   :  { %v1890_v52 = vsub.f32 %v4653_v3, %v1844_v34  ;;  %v1861_v18 = vmax.f32 %v1859_v47, %v1860_v51  ;;  %v1750_v56 = vsel %vm1718_vm10, %v1702_v20, %v1734_v23  ;;  %3340 = vrcp.f32 %v1941_v45 }
 0x590   :  { %v1855_v22 = vrot.slane %v1854_v10, 2  ;;  %v1751_v24 = vsel %vm1719_vm12, %v1703_v7, %v1735_v36  ;;  %v4712_v53 = vadd.f32 %v1750_v56, %v3900_v40  ;;  %v1944_v38 = vadd.f32 %v1943_v31, %v1942_v61 }
 0x591   :  { %v1888_v44 = vsub.f32 %v4630_v6, %v4684_v62  ;;  %v1849_v49 = vmax.f32 %v1847_v17, %v1848_v15  ;;  %v4717_v50 = vadd.f32 %v1751_v24, %v5249_v54  ;;  %v1809_v55 = vmax.f32 %v4662_v19, %v1808_v25 }
 0x592   :  { %v1856_v28 = vmax.f32 %v1854_v10, %v1855_v22  ;;  %v1866_v3 = vsel %vm573_vm14, %v4712_v53, -inf  ;;  %v1945_v20 = vrot.slane %v1944_v38, 2  ;;  %v1970_v47 = vsel %vm573_vm14, %v4708_v63, 0.0 }
 0x593   :  { %v1916_v40 = vmul.f32 1.442695, %v1890_v52  ;;  %v1867_v7 = vrot.slane %v1866_v3, 4  ;;  %v1873_v61 = vsel %vm573_vm14, %v4717_v50, -inf  ;;  %v1885_v6 = vsub.f32 %v4578_v4, %v1809_v55 }
 0x594   :  { %v1857_v17 = vrot.slane %v1856_v28, 1  ;;  %v1862_v62 = vrot.slane %v1861_v18, 2  ;;  %v1946_v15 = vadd.f32 %v1945_v20, %v1944_v38  ;;  %v1971_v34 = vrot.slane %v1970_v47, 4 }
 0x595   :  { %v3341_v19 = vpop.eup %3340  ;;  %v1868_v25 = vmax.f32 %v1866_v3, %v1867_v7  ;;  %v1906_v51 = vmul.f32 1.442695, %v1885_v6  ;;  %v1883_v23 = vsub.f32 %v4547_v27, %v4619_v21  ;;  %3342 = vpow2.f32 %v4664_v30 }
 0x596   :  { %v4730_v45 = vmax.f32 %v1856_v28, %v1857_v17  ;;  %v1874_v10 = vrot.slane %v1873_v61, 4  ;;  %v2057_v36 = vmul.f32 %v3341_v19, %v4626_v43  ;;  %v1947_v31 = vrot.slane %v1946_v15, 1 }
 0x597   :  { %v1869_v52 = vrot.slane %v1868_v25, 2  ;;  %3344 = vpow2.f32 %v1906_v51  ;;  %v1972_v4 = vadd.f32 %v1971_v34, %v1970_v47  ;;  %v1902_v56 = vmul.f32 1.442695, %v1883_v23 }
 0x598   :  { %v1912_v22 = vmul.f32 1.442695, %v1888_v44  ;;  %v1863_v24 = vmax.f32 %v1861_v18, %v1862_v62  ;;  %v2073_v38 = vmul.f32 %v2057_v36, %v3905_v42  ;;  %v1948_v54 = vadd.f32 %v1947_v31, %v1946_v15 }
 0x599   :  { %v1870_v55 = vmax.f32 %v1868_v25, %v1869_v52  ;;  %v1973_v3 = vrot.slane %v1972_v4, 2  ;;  %3346 = vpow2.f32 %v1902_v56  ;;  %v1822_v27 = vrot.slane %v4668_v2, 1 }
 0x59a   :  { %v1892_v21 = vsub.f32 %v4691_v48, %v4730_v45  ;;  %v1875_v30 = vmax.f32 %v1873_v61, %v1874_v10  ;;  %2095 = vperm.xlu1 %3201, %v2073_v38   ;;  %3348 = vrcp.f32 %v1948_v54  ;;  %v1850_v43 = vrot.slane %v1849_v49, 1 }
 0x59b   :  { %v4737_v28 = vpop.eup %3342  ;;  %v1871_v20 = vrot.slane %v1870_v55, 1  ;;  %v1974_v44 = vadd.f32 %v1973_v3, %v1972_v4  ;;  %v1823_v18 = vmax.f32 %v4668_v2, %v1822_v27  ;;  %3350 = vpow2.f32 %v1916_v40 }
 0x59c   :  { %v1956_v42 = vsel %vm573_vm14, %v4737_v28, 0.0  ;;  %v1851_v47 = vmax.f32 %v1849_v49, %v1850_v43  ;;  %3352 = vpow2.f32 %v1912_v22  ;;  %v1864_v7 = vrot.slane %v1863_v24, 1 }
 0x59d   :  { %v4742_v6 = vpop.eup %3344  ;;  %v1872_v48 = vmax.f32 %v1870_v55, %v1871_v20  ;;  %v1975_v61 = vrot.slane %v1974_v44, 1  ;;  %v1957_v17 = vrot.slane %v1956_v42, 4  ;;  %v1887_v62 = vsub.f32 %v4609_v37, %v1823_v18 }
 0x59e   :  { %v1876_v15 = vrot.slane %v1875_v30, 2  ;;  %v1963_v34 = vsel %vm573_vm14, %v4742_v6, 0.0  ;;  %v1891_v2 = vsub.f32 %v4656_v32, %v1851_v47  ;;  %v1865_v40 = vmax.f32 %v1863_v24, %v1864_v7 }
 0x59f   :  { %v4748_v19 = vpop.eup %3346  ;;  %v1894_v49 = vsub.f32 %v4712_v53, %v1872_v48  ;;  %v1964_v25 = vrot.slane %v1963_v34, 4  ;;  %v1976_v51 = vadd.f32 %v1975_v61, %v1974_v44  ;;  %v1958_v23 = vadd.f32 %v1957_v17, %v1956_v42 }
 0x5a0   :  { %v3349_v45 = vpop.eup %3348  ;;  %v1949_v10 = vsel %vm573_vm14, %v4748_v19, 0.0  ;;  %v1910_v36 = vmul.f32 1.442695, %v1887_v62  ;;  %v1918_v37 = vmul.f32 1.442695, %v1891_v2  ;;  %v1893_v31 = vsub.f32 %v4694_v1, %v1865_v40 }
 0x5a1   :  { %v4754_v52 = vpop.eup %3350  ;;  %v2058_v32 = vmul.f32 %v3349_v45, %v4682_v29  ;;  %v1965_v4 = vadd.f32 %v1964_v25, %v1963_v34  ;;  %3354 = vrcp.f32 %v1976_v51  ;;  %v1836_v56 = vrot.slane %v4675_v13, 1 }
 0x5a2   :  { %v4758_v53 = vpop.eup %3352  ;;  %v1950_v22 = vrot.slane %v1949_v10, 4  ;;  %v1959_v24 = vrot.slane %v1958_v23, 2  ;;  %3356 = vpow2.f32 %v1910_v36  ;;  %v1998_v38 = vsel %vm573_vm14, %v4754_v52, 0.0 }
 0x5a3   :  { %v2074_v54 = vmul.f32 %v2058_v32, %v4175_v46  ;;  %v1966_v55 = vrot.slane %v1965_v4, 2  ;;  %v1999_v1 = vrot.slane %v1998_v38, 4  ;;  %3358 = vpow2.f32 %v1918_v37 }
 0x5a4   :  { %v1924_v3 = vmul.f32 1.442695, %v1894_v49  ;;  %v1951_v27 = vadd.f32 %v1950_v22, %v1949_v10  ;;  %v1922_v29 = vmul.f32 1.442695, %v1893_v31  ;;  %v1960_v20 = vadd.f32 %v1959_v24, %v1958_v23 }
 0x5a5   :  { %2100 = vperm.xlu1 %3201, %v2074_v54   ;;  %v1967_v43 = vadd.f32 %v1966_v55, %v1965_v4  ;;  %v2000_v44 = vadd.f32 %v1999_v1, %v1998_v38  ;;  %v1984_v18 = vsel %vm573_vm14, %v4758_v53, 0.0  ;;  %v1877_v42 = vmax.f32 %v1875_v30, %v1876_v15 }
 0x5a6   :  { %v1952_v47 = vrot.slane %v1951_v27, 2  ;;  %3360 = vpow2.f32 %v1922_v29  ;;  %v1920_v48 = vmul.f32 1.442695, %v1892_v21  ;;  %v1837_v17 = vmax.f32 %v4675_v13, %v1836_v56 }
 0x5a7   :  { %v3355_v7 = vpop.eup %3354  ;;  %v1968_v61 = vrot.slane %v1967_v43, 1  ;;  %v2001_v46 = vrot.slane %v2000_v44, 2  ;;  %v1985_v40 = vrot.slane %v1984_v18, 4  ;;  %3362 = vpow2.f32 %v1924_v3 }
 0x5a8   :  { %v4766_v62 = vpop.eup %3356  ;;  %v2062_v34 = vmul.f32 %v3355_v7, %v4708_v63  ;;  %v1953_v2 = vadd.f32 %v1952_v47, %v1951_v27  ;;  %v1961_v51 = vrot.slane %v1960_v20, 1  ;;  %v1878_v13 = vrot.slane %v1877_v42, 1 }
 0x5a9   :  { %v4769_v49 = vpop.eup %3358  ;;  %v1969_v25 = vadd.f32 %v1968_v61, %v1967_v43  ;;  %v1977_v30 = vsel %vm573_vm14, %v4766_v62, 0.0  ;;  %v2002_v15 = vadd.f32 %v2001_v46, %v2000_v44  ;;  %v1889_v36 = vsub.f32 %v4637_v0, %v1837_v17 }
 0x5aa   :  { %v2078_v21 = vmul.f32 %v2062_v34, %v4242_v60  ;;  %v1954_v23 = vrot.slane %v1953_v2, 1  ;;  %v1978_v45 = vrot.slane %v1977_v30, 4  ;;  %v2005_v63 = vsel %vm573_vm14, %v4769_v49, 0.0 }
 0x5ab   :  { %3364 = vrcp.f32 %v1969_v25  ;;  %v2003_v10 = vrot.slane %v2002_v15, 1  ;;  %v2006_v4 = vrot.slane %v2005_v63, 4  ;;  %v1986_v56 = vadd.f32 %v1985_v40, %v1984_v18 }
 0x5ac   :  { %v4777_v37 = vpop.eup %3360  ;;  %2120 = vperm.xlu0 %3200, %v2078_v21   ;;  %v1955_v31 = vadd.f32 %v1954_v23, %v1953_v2  ;;  %v1979_v32 = vadd.f32 %v1978_v45, %v1977_v30  ;;  %v1962_v22 = vadd.f32 %v1961_v51, %v1960_v20  ;;  %3366 = vpow2.f32 %v1920_v48 }
 0x5ad   :  { %v2004_v24 = vadd.f32 %v2003_v10, %v2002_v15  ;;  %v2019_v60 = vsel %vm573_vm14, %v4777_v37, 0.0  ;;  %v4781_v38 = vpop.eup %3362  ;;  %v2007_v55 = vadd.f32 %v2006_v4, %v2005_v63  ;;  %v1914_v3 = vmul.f32 1.442695, %v1889_v36 }
 0x5ae   :  { %3368 = vrcp.f32 %v1955_v31  ;;  %v1980_v54 = vrot.slane %v1979_v32, 2  ;;  %v2020_v1 = vrot.slane %v2019_v60, 4  ;;  %v2026_v0 = vsel %vm573_vm14, %v4781_v38, 0.0 }
 0x5af   :  { %3370 = vrcp.f32 %v2004_v24  ;;  %v1879_v27 = vmax.f32 %v1877_v42, %v1878_v13  ;;  %v2008_v43 = vrot.slane %v2007_v55, 2  ;;  %v2027_v44 = vrot.slane %v2026_v0, 4 }
 0x5b0   :  { %v1981_v29 = vadd.f32 %v1980_v54, %v1979_v32  ;;  %v2021_v20 = vadd.f32 %v2020_v1, %v2019_v60  ;;  %3372 = vrcp.f32 %v1962_v22  ;;  %v1987_v47 = vrot.slane %v1986_v56, 2 }
 0x5b1   :  { %v3365_v18 = vpop.eup %3364  ;;  %v1895_v7 = vsub.f32 %v4717_v50, %v1879_v27  ;;  %v2009_v46 = vadd.f32 %v2008_v43, %v2007_v55  ;;  %v2028_v2 = vadd.f32 %v2027_v44, %v2026_v0  ;;  %3374 = vpow2.f32 %v1914_v3 }
 0x5b2   :  { %v2061_v48 = vmul.f32 %v3365_v18, %v4742_v6  ;;  %v1982_v61 = vrot.slane %v1981_v29, 1  ;;  %v2022_v17 = vrot.slane %v2021_v20, 2  ;;  %v4787_v34 = vpop.eup %3366  ;;  %v1988_v50 = vadd.f32 %v1987_v47, %v1986_v56 }
 0x5b3   :  { %v1926_v40 = vmul.f32 1.442695, %v1895_v7  ;;  %v2010_v51 = vrot.slane %v2009_v46, 1  ;;  %v2029_v45 = vrot.slane %v2028_v2, 2 }
 0x5b4   :  { %v3369_v42 = vpop.eup %3368  ;;  %v2077_v25 = vmul.f32 %v2061_v48, %v4192_v9  ;;  %v2023_v30 = vadd.f32 %v2022_v17, %v2021_v20  ;;  %v1983_v23 = vadd.f32 %v1982_v61, %v1981_v29  ;;  %v2012_v9 = vsel %vm573_vm14, %v4787_v34, 0.0 }
 0x5b5   :  { %v3371_v15 = vpop.eup %3370  ;;  %v2059_v21 = vmul.f32 %v3369_v42, %v4748_v19  ;;  %v2011_v13 = vadd.f32 %v2010_v51, %v2009_v46  ;;  %3376 = vpow2.f32 %v1926_v40  ;;  %v2030_v31 = vadd.f32 %v2029_v45, %v2028_v2  ;;  %v5250_v45 = vld [vmem:[#allocation20_spill] sm:$0xff] }
 0x5b6   :  { %2115 = vperm.xlu2 %3202, %v2077_v25   ;;  %v2066_v6 = vmul.f32 %v3371_v15, %v4754_v52  ;;  %v2024_v10 = vrot.slane %v2023_v30, 1  ;;  %v3373_v63 = vpop.eup %3372  ;;  %v1989_v19 = vrot.slane %v1988_v50, 1  ;;  %v2013_v24 = vrot.slane %v2012_v9, 4 }
 0x5b7   :  { %v2075_v36 = vmul.f32 %v2059_v21, %v4188_v41  ;;  %3378 = vrcp.f32 %v2011_v13  ;;  %v3375_v4 = vpop.eup %3374  ;;  %v2031_v56 = vrot.slane %v2030_v31, 1  ;;  %v2060_v60 = vmul.f32 %v3373_v63, %v4737_v28 }
 0x5b8   :  { %v2025_v32 = vadd.f32 %v2024_v10, %v2023_v30  ;;  %3380 = vrcp.f32 %v1983_v23  ;;  %v2082_v22 = vmul.f32 %v2066_v6, %v4263_v35  ;;  %v1991_v52 = vsel %vm573_vm14, %v3375_v4, 0.0  ;;  %v5251_v10 = vld [vmem:[#allocation21_spill] sm:$0xff] }
 0x5b9   :  { %2105 = vperm.xlu1 %3201, %v2075_v36   ;;  %v2032_v41 = vadd.f32 %v2031_v56, %v2030_v31  ;;  %v1992_v54 = vrot.slane %v1991_v52, 4  ;;  %v1990_v3 = vadd.f32 %v1989_v19, %v1988_v50  ;;  %v2014_v27 = vadd.f32 %v2013_v24, %v2012_v9  ;;  %v5252_v31 = vld [vmem:[#allocation22_spill] sm:$0xff] }
 0x5ba   :  { %3382 = vrcp.f32 %v2025_v32  ;;  %v2076_v43 = vmul.f32 %v2060_v60, %v4233_v59 }
 0x5bb   :  { %v3377_v55 = vpop.eup %3376  ;;  %3384 = vrcp.f32 %v2032_v41  ;;  %v1993_v1 = vadd.f32 %v1992_v54, %v1991_v52  ;;  %v2015_v48 = vrot.slane %v2014_v27, 2 }
 0x5bc   :  { %v2033_v44 = vsel %vm573_vm14, %v3377_v55, 0.0  ;;  %3386 = vrcp.f32 %v1990_v3 }
 0x5bd   :  { %v3379_v0 = vpop.eup %3378  ;;  %v1994_v20 = vrot.slane %v1993_v1, 2  ;;  %v2034_v61 = vrot.slane %v2033_v44, 4  ;;  %v2016_v42 = vadd.f32 %v2015_v48, %v2014_v27 }
 0x5be   :  { %2140 = vperm.xlu2 %3202, %v2082_v22   ;;  %v3381_v29 = vpop.eup %3380  ;;  %v2067_v35 = vmul.f32 %v3379_v0, %v4769_v49  ;;  %v5253_v22 = vld [vmem:[#allocation23_spill] sm:$0xff] }
 0x5bf   :  { %v1995_v7 = vadd.f32 %v1994_v20, %v1993_v1  ;;  %v2063_v17 = vmul.f32 %v3381_v29, %v4766_v62  ;;  %v2035_v25 = vadd.f32 %v2034_v61, %v2033_v44  ;;  %v2017_v30 = vrot.slane %v2016_v42, 1  ;;  %v5255_v1 = vld [vmem:[#allocation24_spill] sm:$0xff]  ;;  %v5256_v20 = vld [vmem:[#allocation10_spill] sm:$0xff] }
 0x5c0   :  { %v3383_v18 = vpop.eup %3382  ;;  %v2083_v28 = vmul.f32 %v2067_v35, %v4261_v8  ;;  %v5254_v52 = vrot.slane %v5253_v22, 4  ;;  %v5257_v44 = vrot.slane %v5256_v20, 4 }
 0x5c1   :  { %2110 = vperm.xlu1 %3201, %v2076_v43   ;;  %v2069_v47 = vmul.f32 %v3383_v18, %v4777_v37  ;;  %v3385_v46 = vpop.eup %3384  ;;  %v1996_v49 = vrot.slane %v1995_v7, 1  ;;  %v2079_v8 = vmul.f32 %v2063_v17, %v4250_v5  ;;  %v2036_v15 = vrot.slane %v2035_v25, 2 }
 0x5c2   :  { %2145 = vperm.xlu0 %3200, %v2083_v28   ;;  %v2070_v2 = vmul.f32 %v3385_v46, %v4781_v38  ;;  %v3387_v51 = vpop.eup %3386  ;;  %v3172_v28 = vld [vmem:[%s5138_s15 + $0x68] sm:$0xff]  ;;  %v3171_v46 = vld [vmem:[%s5138_s15 + $0x60] sm:$0xff] }
 0x5c3   :  { %v2085_v59 = vmul.f32 %v2069_v47, %v4276_v26  ;;  %v1997_v40 = vadd.f32 %v1996_v49, %v1995_v7  ;;  %v2064_v62 = vmul.f32 %v3387_v51, %v4758_v53  ;;  %v2018_v26 = vadd.f32 %v2017_v30, %v2016_v42 }
 0x5c4   :  { %v2086_v37 = vmul.f32 %v2070_v2, %v4274_v14  ;;  %v2037_v38 = vadd.f32 %v2036_v15, %v2035_v25 }
 0x5c5   :  { %3388 = vrcp.f32 %v1997_v40  ;;  %v2080_v21 = vmul.f32 %v2064_v62, %v4247_v16 }
 0x5c6   :  { %2155 = vperm.xlu2 %3202, %v2085_v59   ;;  %3390 = vrcp.f32 %v2018_v26  ;;  %v2038_v5 = vrot.slane %v2037_v38, 1  ;;  %v5258_v59 = vld [vmem:[#allocation8_spill] sm:$0xff] }
 0x5c8   :  { %v2039_v50 = vadd.f32 %v2038_v5, %v2037_v38  ;;  %v5259_v38 = vrot.slane %v5255_v1, 4 }
 0x5c9   :  { %2125 = vperm.xlu1 %3201, %v2079_v8  }
 0x5ca   :  { %2160 = vperm.xlu0 %3200, %v2086_v37   ;;  %3392 = vrcp.f32 %v2039_v50 }
 0x5cb   :  { %v3389_v23 = vpop.eup %3388 }
 0x5cc   :  { %v2065_v14 = vmul.f32 %v3389_v23, %v3375_v4  ;;  %v3391_v53 = vpop.eup %3390  ;;  %v3174_v4 = vld [vmem:[%s5138_s15 + $0x78] sm:$0xff] }
 0x5cd   :  { %v2068_v13 = vmul.f32 %v3391_v53, %v4787_v34  ;;  %2473 = vmatpush.msrb.mxu2 %v3174_v4  ;;  %v3173_v34 = vld [vmem:[%s5138_s15 + $0x70] sm:$0xff] }
 0x5ce   :  { %2453 = vrot.lane.b32.xlu2 %v4442_v39, %s3529_s11  ;;  %v2081_v6 = vmul.f32 %v2065_v14, %v5250_v45 }
 0x5cf   :  { %v2084_v63 = vmul.f32 %v2068_v13, %v5251_v10  ;;  %2474 = vmatpush.msrb.mxu2 %v3173_v34 }
 0x5d0   :  { %v3393_v36 = vpop.eup %3392 }
 0x5d1   :  { %2130 = vperm.xlu1 %3201, %v2080_v21   ;;  %v2071_v16 = vmul.f32 %v3393_v36, %v3377_v55  ;;  %2475 = vmatpush.msrb.mxu2 %v3172_v28 }
 0x5d2   :  { %2455 = vrot.lane.b32.xlu0 %v4440_v33, %s3529_s11 }
 0x5d3   :  { %v2087_v9 = vmul.f32 %v2071_v16, %v5252_v31  ;;  %2476 = vmatpush.msrb.mxu2 %v3171_v46 }
 0x5d9   :  { %2135 = vperm.xlu1 %3201, %v2081_v6  }
 0x5e1   :  { %2150 = vperm.xlu1 %3201, %v2084_v63  }
 0x5e9   :  { %2165 = vperm.xlu1 %3201, %v2087_v9  }
 0x5fc   :  { %v2091_v32 = vpop.permute.xlu1 %2090 }
 0x5fd   :  { %v2168_v60 = vmul.f32 %v2091_v32, %v5253_v22 }
 0x5ff   :  { %v2184_v3 = vsel %vm1054_vm2, %v2168_v60, 0.0 }
 0x600   :  { %v2185_v29 = vrot.slane %v2184_v3, 4 }
 0x602   :  { %v2186_v61 = vadd.f32 %v2185_v29, %v2184_v3 }
 0x604   :  { %v2187_v42 = vrot.slane %v2186_v61, 2 }
 0x606   :  { %v2188_v15 = vadd.f32 %v2187_v42, %v2186_v61 }
 0x608   :  { %v2189_v45 = vrot.slane %v2188_v15, 1 }
 0x60a   :  { %v4850_v16 = vadd.f32 %v2189_v45, %v2188_v15 }
 0x60c   :  { %v2096_v19 = vpop.permute.xlu1 %2095  ;;  %v2312_v60 = vmul.f32 1.442695, %v4850_v16  ;;  %vm2296_vm14 = vcmp.gt.f32.partialorder %v4850_v16, 0.0 }
 0x60d   :  { %v2169_v24 = vmul.f32 %v2096_v19, %v5254_v52 }
 0x60f   :  { %v2191_v55 = vsel %vm1054_vm2, %v2169_v24, 0.0 }
 0x610   :  { %v2116_v56 = vpop.permute.xlu2 %2115  ;;  %v2192_v27 = vrot.slane %v2191_v55, 4 }
 0x611   :  { %v2173_v18 = vmul.f32 %v2116_v56, %v5257_v44 }
 0x612   :  { %v2193_v47 = vadd.f32 %v2192_v27, %v2191_v55 }
 0x613   :  { %v2219_v17 = vsel %vm1054_vm2, %v2173_v18, 0.0 }
 0x614   :  { %v2194_v2 = vrot.slane %v2193_v47, 2  ;;  %v2220_v25 = vrot.slane %v2219_v17, 4 }
 0x616   :  { %v2195_v51 = vadd.f32 %v2194_v2, %v2193_v47  ;;  %v2221_v26 = vadd.f32 %v2220_v25, %v2219_v17 }
 0x617   :  { %v2101_v41 = vpop.permute.xlu1 %2100 }
 0x618   :  { %v2141_v54 = vpop.permute.xlu2 %2140  ;;  %v2170_v0 = vmul.f32 %v2101_v41, %v5255_v1  ;;  %v2196_v5 = vrot.slane %v2195_v51, 1  ;;  %v2222_v53 = vrot.slane %v2221_v26, 2  ;;  %v5260_v41 = vld [vmem:[#allocation11_spill] sm:$0xff] }
 0x619   :  { %v2178_v55 = vmul.f32 %v2141_v54, %v5260_v41 }
 0x61a   :  { %v2198_v43 = vsel %vm1054_vm2, %v2170_v0, 0.0  ;;  %v4848_v63 = vadd.f32 %v2196_v5, %v2195_v51  ;;  %v2223_v32 = vadd.f32 %v2222_v53, %v2221_v26 }
 0x61b   :  { %v2199_v7 = vrot.slane %v2198_v43, 4  ;;  %v2254_v44 = vsel %vm1054_vm2, %v2178_v55, 0.0 }
 0x61c   :  { %v2314_v22 = vmul.f32 1.442695, %v4848_v63  ;;  %v2224_v3 = vrot.slane %v2223_v32, 1  ;;  %vm2297_vm13 = vcmp.gt.f32.partialorder %v4848_v63, 0.0 }
 0x61d   :  { %v2200_v40 = vadd.f32 %v2199_v7, %v2198_v43 }
 0x61e   :  { %v2121_v48 = vpop.permute.xlu0 %2120  ;;  %3394 = vpow2.f32 %v2314_v22  ;;  %v4864_v7 = vadd.f32 %v2224_v3, %v2223_v32 }
 0x61f   :  { %v2174_v49 = vmul.f32 %v2121_v48, %v5258_v59  ;;  %v2201_v30 = vrot.slane %v2200_v40, 2  ;;  %3396 = vpow2.f32 %v2312_v60  ;;  %v5261_v48 = vrot.slane %v5258_v59, 4  ;;  %v3170_v59 = vld [vmem:[%s5138_s15 + $0x58] sm:$0xff] }
 0x620   :  { %v4831_v35 = vpop.permute.xlu2 %2155  ;;  %v2322_v51 = vmul.f32 1.442695, %v4864_v7  ;;  %2437 = vmatpush.msrb.mxu1 %v3170_v59  ;;  %vm2301_vm12 = vcmp.gt.f32.partialorder %v4864_v7, 0.0 }
 0x621   :  { %v2226_v37 = vsel %vm1054_vm2, %v2174_v49, 0.0  ;;  %v2202_v14 = vadd.f32 %v2201_v30, %v2200_v40  ;;  %v2255_v49 = vrot.slane %v2254_v44, 4  ;;  %v2181_v42 = vmul.f32 %v4831_v35, %v1604_v57  ;;  %v3169_v57 = vld [vmem:[%s5138_s15 + $0x50] sm:$0xff] }
 0x622   :  { %v2227_v23 = vrot.slane %v2226_v37, 4  ;;  %2438 = vmatpush.msrb.mxu1 %v3169_v57 }
 0x623   :  { %v2203_v36 = vrot.slane %v2202_v14, 1  ;;  %v2256_v35 = vadd.f32 %v2255_v49, %v2254_v44 }
 0x624   :  { %v2228_v13 = vadd.f32 %v2227_v23, %v2226_v37  ;;  %v3395_v37 = vpop.eup %3394 }
 0x625   :  { %v4854_v52 = vadd.f32 %v2203_v36, %v2202_v14  ;;  %v3397_v15 = vpop.eup %3396 }
 0x626   :  { %v2229_v4 = vrot.slane %v2228_v13, 2 }
 0x627   :  { %vm2298_vm1 = vcmp.gt.f32.partialorder %v4854_v52, 0.0 }
 0x628   :  { %v2454_v8 = vpop.permute.xlu2 %2453  ;;  %v2230_v27 = vadd.f32 %v2229_v4, %v2228_v13  ;;  %v5262_v13 = vld [vmem:[#allocation12_spill] sm:$0xff] }
 0x629   :  { %3179 = vmatmul.msk.f32.vlgmr.msrb.gmra.mxu2 %vm277_vm4, %v2454_v8  ;;  %v5263_v49 = vrot.slane %v5262_v13, 4 }
 0x62a   :  { %v2231_v54 = vrot.slane %v2230_v27, 1 }
 0x62b   :  { %v2106_v62 = vpop.permute.xlu1 %2105 }
 0x62c   :  { %v2171_v21 = vmul.f32 %v2106_v62, %v5259_v38  ;;  %v4878_v30 = vadd.f32 %v2231_v54, %v2230_v27  ;;  %v3152_v38 = vadd.f32 -1.0, %v3395_v37 }
 0x62e   :  { %v2205_v50 = vsel %vm1054_vm2, %v2171_v21, 0.0  ;;  %v2275_v21 = vsel %vm1054_vm2, %v2181_v42, 0.0  ;;  %v2324_v53 = vmul.f32 1.442695, %v4878_v30 }
 0x62f   :  { %v2206_v6 = vrot.slane %v2205_v50, 4 }
 0x631   :  { %v2207_v10 = vadd.f32 %v2206_v6, %v2205_v50  ;;  %v3168_v50 = vld [vmem:[%s5138_s15 + $0x48] sm:$0xff]  ;;  %v3151_v6 = vadd.f32 -1.0, %v3397_v15 }
 0x632   :  { %2439 = vmatpush.msrb.mxu1 %v3168_v50 }
 0x633   :  { %v2208_v31 = vrot.slane %v2207_v10, 2  ;;  %v2111_v9 = vpop.permute.xlu1 %2110 }
 0x634   :  { %v2172_v19 = vmul.f32 %v2111_v9, %v5256_v20  ;;  %v2146_v34 = vpop.permute.xlu0 %2145  ;;  %v2316_v20 = vmul.f32 1.442695, %v4854_v52 }
 0x635   :  { %v2209_v56 = vadd.f32 %v2208_v31, %v2207_v10  ;;  %v2179_v40 = vmul.f32 %v2146_v34, %v1603_v11  ;;  %v2276_v34 = vrot.slane %v2275_v21, 4 }
 0x636   :  { %v2212_v24 = vsel %vm1054_vm2, %v2172_v19, 0.0  ;;  %3398 = vpow2.f32 %v2316_v20  ;;  %v3167_v19 = vld [vmem:[%s5138_s15 + $0x40] sm:$0xff] }
 0x637   :  { %v2210_v1 = vrot.slane %v2209_v56, 1  ;;  %v2213_v0 = vrot.slane %v2212_v24, 4  ;;  %v2261_v26 = vsel %vm1054_vm2, %v2179_v40, 0.0  ;;  %2440 = vmatpush.msrb.mxu1 %v3167_v19 }
 0x638   :  { %v2262_v9 = vrot.slane %v2261_v26, 4 }
 0x639   :  { %v4859_v29 = vadd.f32 %v2210_v1, %v2209_v56  ;;  %v2214_v43 = vadd.f32 %v2213_v0, %v2212_v24  ;;  %v2257_v56 = vrot.slane %v2256_v35, 2  ;;  %v2361_v24 = vsel %vm2297_vm13, %v4848_v63, %v3152_v38 }
 0x63a   :  { %v2360_v1 = vsel %vm2296_vm14, %v4850_v16, %v3151_v6  ;;  %v2263_v27 = vadd.f32 %v2262_v9, %v2261_v26  ;;  %vm2302_vm14 = vcmp.gt.f32.partialorder %v4878_v30, 0.0 }
 0x63b   :  { %v2318_v18 = vmul.f32 1.442695, %v4859_v29  ;;  %v2215_v28 = vrot.slane %v2214_v43, 2  ;;  %v2126_v47 = vpop.permute.xlu1 %2125  ;;  %v2258_v63 = vadd.f32 %v2257_v56, %v2256_v35  ;;  %vm2299_vm8 = vcmp.gt.f32.partialorder %v4859_v29, 0.0 }
 0x63c   :  { %v2175_v61 = vmul.f32 %v2126_v47, %v5261_v48  ;;  %v2161_v17 = vpop.permute.xlu0 %2160  ;;  %v3399_v45 = vpop.eup %3398  ;;  %v2264_v42 = vrot.slane %v2263_v27, 2 }
 0x63d   :  { %v2216_v46 = vadd.f32 %v2215_v28, %v2214_v43  ;;  %3400 = vpow2.f32 %v2318_v18  ;;  %v2182_v32 = vmul.f32 %v2161_v17, %v4687_v58  ;;  %v3153_v60 = vadd.f32 -1.0, %v3399_v45 }
 0x63e   :  { %v2233_v2 = vsel %vm1054_vm2, %v2175_v61, 0.0  ;;  %3402 = vpow2.f32 %v2322_v51  ;;  %v2407_v18 = vsel %vm1276_vm6, %v2361_v24, %v2360_v1  ;;  %v2277_v28 = vadd.f32 %v2276_v34, %v2275_v21 }
 0x63f   :  { %v2217_v25 = vrot.slane %v2216_v46, 1  ;;  %v2234_v8 = vrot.slane %v2233_v2, 4  ;;  %v2282_v20 = vsel %vm1054_vm2, %v2182_v32, 0.0  ;;  %v2362_v54 = vsel %vm2298_vm1, %v4854_v52, %v3153_v60 }
 0x640   :  { %v2283_v40 = vrot.slane %v2282_v20, 4  ;;  %v2408_v52 = vsel %vm1278_vm7, %v2362_v54, %v2407_v18  ;;  %v2278_v15 = vrot.slane %v2277_v28, 2  ;;  %v2265_v38 = vadd.f32 %v2264_v42, %v2263_v27 }
 0x641   :  { %v4880_v62 = vadd.f32 %v2217_v25, %v2216_v46  ;;  %v2235_v11 = vadd.f32 %v2234_v8, %v2233_v2 }
 0x642   :  { %v2284_v35 = vadd.f32 %v2283_v40, %v2282_v20  ;;  %v2266_v9 = vrot.slane %v2265_v38, 1 }
 0x643   :  { %v2320_v23 = vmul.f32 1.442695, %v4880_v62  ;;  %v2236_v5 = vrot.slane %v2235_v11, 2  ;;  %v2131_v14 = vpop.permute.xlu1 %2130  ;;  %v3401_v36 = vpop.eup %3400  ;;  %vm2300_vm10 = vcmp.gt.f32.partialorder %v4880_v62, 0.0 }
 0x644   :  { %v2176_v10 = vmul.f32 %v2131_v14, %v5262_v13  ;;  %v2456_v4 = vpop.permute.xlu0 %2455  ;;  %v3154_v0 = vadd.f32 -1.0, %v3401_v36  ;;  %v3403_v44 = vpop.eup %3402  ;;  %v2267_v1 = vadd.f32 %v2266_v9, %v2265_v38 }
 0x645   :  { %3404 = vpow2.f32 %v2320_v23  ;;  %v2237_v31 = vadd.f32 %v2236_v5, %v2235_v11  ;;  %3180 = vmatmul.msk.f32.gmra.mxu2 %vm277_vm4, %v2456_v4  ;;  %v3156_v59 = vadd.f32 -1.0, %v3403_v44  ;;  %v2259_v5 = vrot.slane %v2258_v63, 1 }
 0x646   :  { %v2240_v22 = vsel %vm1054_vm2, %v2176_v10, 0.0  ;;  %3406 = vpow2.f32 %v2324_v53  ;;  %v2363_v46 = vsel %vm2299_vm8, %v4859_v29, %v3154_v0  ;;  %v2285_v10 = vrot.slane %v2284_v35, 2 }
 0x647   :  { %v2238_v41 = vrot.slane %v2237_v31, 1  ;;  %v2241_v55 = vrot.slane %v2240_v22, 4  ;;  %v2409_v57 = vsel %vm1280_vm9, %v2363_v46, %v2408_v52  ;;  %v2365_v14 = vsel %vm2301_vm12, %v4864_v7, %v3156_v59 }
 0x648   :  { %v2260_v7 = vadd.f32 %v2259_v5, %v2258_v63  ;;  %v5264_v63 = vrot.slane %v4687_v58, 4 }
 0x649   :  { %v2239_v3 = vadd.f32 %v2238_v41, %v2237_v31  ;;  %v2242_v43 = vadd.f32 %v2241_v55, %v2240_v22  ;;  %v2286_v55 = vadd.f32 %v2285_v10, %v2284_v35 }
 0x64a   :  { %vm2306_vm8 = vcmp.gt.f32.partialorder %v2260_v7, 0.0 }
 0x64b   :  { %v3405_v47 = vpop.eup %3404  ;;  %v2326_v16 = vmul.f32 1.442695, %v2239_v3  ;;  %v2243_v48 = vrot.slane %v2242_v43, 2  ;;  %v2136_v61 = vpop.permute.xlu1 %2135  ;;  %vm2303_vm13 = vcmp.gt.f32.partialorder %v2239_v3, 0.0  ;;  %v2287_v18 = vrot.slane %v2286_v55, 1 }
 0x64c   :  { %v3155_v17 = vadd.f32 -1.0, %v3405_v47  ;;  %v2177_v2 = vmul.f32 %v2136_v61, %v5263_v49  ;;  %v3407_v8 = vpop.eup %3406  ;;  %v2334_v47 = vmul.f32 1.442695, %v2267_v1 }
 0x64d   :  { %v2244_v25 = vadd.f32 %v2243_v48, %v2242_v43  ;;  %3408 = vpow2.f32 %v2326_v16  ;;  %v3157_v23 = vadd.f32 -1.0, %v3407_v8 }
 0x64e   :  { %v2364_v37 = vsel %vm2300_vm10, %v4880_v62, %v3155_v17  ;;  %v2247_v51 = vsel %vm1054_vm2, %v2177_v2, 0.0  ;;  %v2279_v62 = vadd.f32 %v2278_v15, %v2277_v28  ;;  %v2288_v17 = vadd.f32 %v2287_v18, %v2286_v55 }
 0x64f   :  { %v2245_v29 = vrot.slane %v2244_v25, 1  ;;  %v2248_v11 = vrot.slane %v2247_v51, 4  ;;  %v2410_v26 = vsel %vm1282_vm11, %v2364_v37, %v2409_v57  ;;  %v2366_v4 = vsel %vm2302_vm14, %v4878_v30, %v3157_v23 }
 0x650   :  { %v2411_v13 = vsel %vm1284_vm15, %v2365_v14, %v2410_v26  ;;  %v2280_v41 = vrot.slane %v2279_v62, 1  ;;  %v2332_v30 = vmul.f32 1.442695, %v2260_v7  ;;  %v2340_v37 = vmul.f32 1.442695, %v2288_v17 }
 0x651   :  { %v2249_v21 = vadd.f32 %v2248_v11, %v2247_v51  ;;  %v4921_v45 = vadd.f32 %v2245_v29, %v2244_v25  ;;  %v2412_v34 = vsel %vm1286_vm3, %v2366_v4, %v2411_v13  ;;  %vm2307_vm10 = vcmp.gt.f32.partialorder %v2267_v1, 0.0 }
 0x652   :  { %v2281_v44 = vadd.f32 %v2280_v41, %v2279_v62 }
 0x653   :  { %v3409_v50 = vpop.eup %3408  ;;  %v2250_v6 = vrot.slane %v2249_v21, 2  ;;  %v2151_v53 = vpop.permute.xlu1 %2150  ;;  %v2328_v22 = vmul.f32 1.442695, %v4921_v45 }
 0x654   :  { %v2180_v36 = vmul.f32 %v2151_v53, %v4659_v12  ;;  %v3158_v31 = vadd.f32 -1.0, %v3409_v50  ;;  %v2338_v46 = vmul.f32 1.442695, %v2281_v44  ;;  %vm2309_vm14 = vcmp.gt.f32.partialorder %v2281_v44, 0.0 }
 0x655   :  { %v2251_v32 = vadd.f32 %v2250_v6, %v2249_v21  ;;  %3410 = vpow2.f32 %v2328_v22 }
 0x656   :  { %v2268_v19 = vsel %vm1054_vm2, %v2180_v36, 0.0  ;;  %v2367_v56 = vsel %vm2303_vm13, %v2239_v3, %v3158_v31  ;;  %vm2310_vm13 = vcmp.gt.f32.partialorder %v2288_v17, 0.0 }
 0x657   :  { %v2252_v24 = vrot.slane %v2251_v32, 1  ;;  %v2269_v60 = vrot.slane %v2268_v19, 4  ;;  %v2413_v12 = vsel %vm1288_vm5, %v2367_v56, %v2412_v34 }
 0x658   :  { %3177 = vmatmul.msk.f32.vlgmr.msrb.gmra.mxu1 %vm277_vm4, %v2413_v12 }
 0x659   :  { %v2253_v0 = vadd.f32 %v2252_v24, %v2251_v32  ;;  %v2270_v27 = vadd.f32 %v2269_v60, %v2268_v19  ;;  %v3216_v60 = vld [vmem:[%s5139_s16 + $0x3] ss:$0 sm:$0xff] }
 0x65b   :  { %v2330_v43 = vmul.f32 1.442695, %v2253_v0  ;;  %v2271_v20 = vrot.slane %v2270_v27, 2  ;;  %v2166_v3 = vpop.permute.xlu1 %2165  ;;  %v3411_v49 = vpop.eup %3410  ;;  %vm2305_vm1 = vcmp.gt.f32.partialorder %v2253_v0, 0.0 }
 0x65c   :  { %v2183_v28 = vmul.f32 %v2166_v3, %v5264_v63  ;;  %v3159_v58 = vadd.f32 -1.0, %v3411_v49 }
 0x65d   :  { %3412 = vpow2.f32 %v2330_v43  ;;  %v2272_v54 = vadd.f32 %v2271_v20, %v2270_v27 }
 0x65e   :  { %3414 = vpow2.f32 %v2332_v30  ;;  %v2289_v16 = vsel %vm1054_vm2, %v2183_v28, 0.0  ;;  %vm2304_vm2 = vcmp.gt.f32.partialorder %v4921_v45, 0.0 }
 0x65f   :  { %v2273_v48 = vrot.slane %v2272_v54, 1  ;;  %v2290_v61 = vrot.slane %v2289_v16, 4  ;;  %3416 = vpow2.f32 %v2334_v47  ;;  %v2368_v35 = vsel %vm2304_vm2, %v4921_v45, %v3159_v58 }
 0x660   :  { %3418 = vpow2.f32 %v2338_v46 }
 0x661   :  { %v2274_v2 = vadd.f32 %v2273_v48, %v2272_v54  ;;  %v2291_v40 = vadd.f32 %v2290_v61, %v2289_v16 }
 0x663   :  { %v3413_v42 = vpop.eup %3412  ;;  %v2336_v25 = vmul.f32 1.442695, %v2274_v2  ;;  %v2292_v8 = vrot.slane %v2291_v40, 2  ;;  %vm2308_vm12 = vcmp.gt.f32.partialorder %v2274_v2, 0.0 }
 0x664   :  { %v3415_v59 = vpop.eup %3414  ;;  %v3160_v52 = vadd.f32 -1.0, %v3413_v42 }
 0x665   :  { %3420 = vpow2.f32 %v2336_v25  ;;  %v2293_v51 = vadd.f32 %v2292_v8, %v2291_v40  ;;  %v3417_v29 = vpop.eup %3416  ;;  %v3161_v11 = vadd.f32 -1.0, %v3415_v59 }
 0x666   :  { %v2369_v15 = vsel %vm2305_vm1, %v2253_v0, %v3160_v52  ;;  %3422 = vpow2.f32 %v2340_v37  ;;  %v3419_v21 = vpop.eup %3418  ;;  %v3162_v23 = vadd.f32 -1.0, %v3417_v29  ;;  %v3217_v0 = vld [vmem:[%s5139_s16 + $0x2] ss:$0 sm:$0xff]  ;;  %s3061_s16 = sshll.u32 %s3530_s6, 4  ;;  %s3062_s16 = int_to_ptr.vmem [resolvable:$true] %s3061_s16 }
 0x667   :  { %v2294_v57 = vrot.slane %v2293_v51, 1  ;;  %v2414_v26 = vsel %vm1276_vm6, %v2369_v15, %v2368_v35  ;;  %v2370_v14 = vsel %vm2306_vm8, %v2260_v7, %v3161_v11  ;;  %v3164_v10 = vadd.f32 -1.0, %v3419_v21 }
 0x668   :  { %v2415_v6 = vsel %vm1278_vm7, %v2370_v14, %v2414_v26  ;;  %v2371_v13 = vsel %vm2307_vm10, %v2267_v1, %v3162_v23 }
 0x669   :  { %v2295_v38 = vadd.f32 %v2294_v57, %v2293_v51  ;;  %v2416_v36 = vsel %vm1280_vm9, %v2371_v13, %v2415_v6  ;;  %v2373_v32 = vsel %vm2309_vm14, %v2281_v44, %v3164_v10 }
 0x66b   :  { %v3421_v5 = vpop.eup %3420  ;;  %v2342_v50 = vmul.f32 1.442695, %v2295_v38  ;;  %vm2311_vm7 = vcmp.gt.f32.partialorder %v2295_v38, 0.0 }
 0x66c   :  { %v3163_v62 = vadd.f32 -1.0, %v3421_v5  ;;  %v3423_v53 = vpop.eup %3422 }
 0x66d   :  { %3424 = vpow2.f32 %v2342_v50  ;;  %v3165_v9 = vadd.f32 -1.0, %v3423_v53 }
 0x66e   :  { %v2372_v45 = vsel %vm2308_vm12, %v2274_v2, %v3163_v62  ;;  %vm2665_vm12 = vcmask 269568  }
 0x66f   :  { %v2417_v31 = vsel %vm1282_vm11, %v2372_v45, %v2416_v36  ;;  %v2374_v56 = vsel %vm2310_vm13, %v2288_v17, %v3165_v9 }
 0x670   :  { %v2418_v7 = vsel %vm1284_vm15, %v2373_v32, %v2417_v31 }
 0x671   :  { %v2419_v22 = vsel %vm1286_vm3, %v2374_v56, %v2418_v7  ;;  %v2598_v7 = vld [vmem:[%s5140_s17 + $0x10] sm:$0xff]  ;;  %v2597_v56 = vld [vmem:[%s5140_s17 + $0x8] sm:$0xff] }
 0x673   :  { %v3425_v4 = vpop.eup %3424 }
 0x674   :  { %v3166_v19 = vadd.f32 -1.0, %v3425_v4  ;;  %v2599_v4 = vld [vmem:[%s5140_s17 + $0x18] sm:$0xff] }
 0x675   :  { %2620 = vmatpush.msra.mxu2 %v2599_v4 }
 0x676   :  { %v2375_v34 = vsel %vm2311_vm7, %v2295_v38, %v3166_v19 }
 0x677   :  { %v2420_v24 = vsel %vm1288_vm5, %v2375_v34, %v2419_v22  ;;  %2621 = vmatpush.msra.mxu2 %v2598_v7 }
 0x678   :  { %3178 = vmatmul.msk.f32.gmra.mxu1 %vm277_vm4, %v2420_v24 }
 0x679   :  { %2622 = vmatpush.msra.mxu2 %v2597_v56  ;;  %v2753_v56 = vld [vmem:[%s5143_s20 + $0x18] sm:$0xff] }
 0x67a   :  { %2780 = vmatpush.msra.mxu3 %v2753_v56 }
 0x6ac   :  { %v2478_v12 = vpop.f32.mrf.mxu2 }
 0x6ad   :  { %v2479_v41 = vadd.f32 %v3216_v60, %v2478_v12 }
 0x6af   :  { %2526 = vrot.lane.b32.xlu2 %v2479_v41, %s3528_s3 }
 0x6c8   :  { %v2481_v55 = vpop.f32.mrf.mxu2 }
 0x6c9   :  { %v2482_v1 = vadd.f32 %v3216_v60, %v2481_v55 }
 0x6cb   :  { %2528 = vrot.lane.b32.xlu1 %v2482_v1, %s3528_s3 }
 0x6d5   :  { %v2442_v27 = vpop.f32.mrf.mxu1 }
 0x6d6   :  { %v2443_v30 = vadd.f32 %v3217_v0, %v2442_v27  ;;  %v2756_v27 = vld [vmem:[%s5143_s20 + $0x30] sm:$0xff] }
 0x6d8   :  { %v2484_v43 = vadd.f32 %v2479_v41, %v2443_v30 }
 0x6da   :  { %v2486_v20 = vsub.f32 0.0, %v2484_v43  ;;  %v129_v43 = vld [vmem:[%s5266_s8 + $0x8] sm:$0xff] }
 0x6dc   :  { %v2488_v3 = vmul.f32 1.442695, %v2486_v20  ;;  %v2755_v20 = vld [vmem:[%s5143_s20 + $0x28] sm:$0xff] }
 0x6de   :  { %3426 = vpow2.f32 %v2488_v3  ;;  %v2754_v3 = vld [vmem:[%s5143_s20 + $0x20] sm:$0xff] }
 0x6e4   :  { %v3427_v44 = vpop.eup %3426 }
 0x6e5   :  { %v2492_v18 = vadd.f32 1.0, %v3427_v44  ;;  %v126_v44 = vld [vmem:[%s5267_s5] sm:$0xff] }
 0x6e7   :  { %3428 = vrcp.f32 %v2492_v18  ;;  %v2505_v61 = vand.u32 2147483648, %v2492_v18  ;;  %vm2499_vm11 = vweird.f32 %v2492_v18  ;;  %v2503_v46 = vand.u32 2147483647, %v2492_v18 }
 0x6e9   :  { %v2506_v2 = vor.u32 1.1754944e-38, %v2505_v61  ;;  %vm2504_vm3 = vcmp.eq.f32.partialorder %v2503_v46, 8.507059e+37  ;;  %v3218_v61 = vld [vmem:[%s5141_s18] ss:$0 sm:$0xff] }
 0x6ed   :  { %v3429_v63 = vpop.eup %3428 }
 0x6ee   :  { %v2495_v28 = vmul.f32 %v3429_v63, %v2492_v18  ;;  %vm2500_vm9 = vweird.f32 %v3429_v63  ;;  %v127_v18 = vld [vmem:[%s5267_s5 + $0x8] sm:$0xff] }
 0x6ef   :  { %vm2501_vm15 = vmor %vm2499_vm11, %vm2500_vm9 }
 0x6f0   :  { %v2496_v47 = vsub.f32 1.0, %v2495_v28 }
 0x6f2   :  { %v2497_v54 = vmul.f32 %v3429_v63, %v2496_v47 }
 0x6f4   :  { %v2498_v48 = vadd.f32 %v3429_v63, %v2497_v54 }
 0x6f5   :  { %v2445_v16 = vpop.f32.mrf.mxu1 }
 0x6f6   :  { %v2446_v17 = vadd.f32 %v3217_v0, %v2445_v16  ;;  %v2502_v49 = vsel %vm2501_vm15, %v3429_v63, %v2498_v48  ;;  %v2757_v0 = vld [vmem:[%s5143_s20 + $0x38] sm:$0xff]  ;;  %v5012_v63 = vld [vmem:[%s5142_s19] ss:$0 sm:$0xff] }
 0x6f7   :  { %v2507_v25 = vsel %vm2504_vm3, %v2506_v2, %v2502_v49  ;;  %3003 = vmatpush.msrb.mxu0 %v2757_v0 }
 0x6f8   :  { %v2485_v40 = vadd.f32 %v2482_v1, %v2446_v17  ;;  %v2546_v45 = vsub.f32 1.0, %v2507_v25  ;;  %v2558_v31 = vmul.f32 %v2507_v25, %v4442_v39  ;;  %v2596_v39 = vld [vmem:[%s5140_s17] sm:$0xff] }
 0x6f9   :  { %2623 = vmatpush.msra.mxu2 %v2596_v39  ;;  %3004 = vmatpush.msrb.mxu0 %v2756_v27 }
 0x6fa   :  { %v2487_v59 = vsub.f32 0.0, %v2485_v40 }
 0x6fb   :  { %3005 = vmatpush.msrb.mxu0 %v2755_v20 }
 0x6fc   :  { %v2490_v58 = vmul.f32 1.442695, %v2487_v59 }
 0x6fd   :  { %3006 = vmatpush.msrb.mxu0 %v2754_v3 }
 0x6fe   :  { %3430 = vpow2.f32 %v2490_v58 }
 0x704   :  { %v3431_v52 = vpop.eup %3430 }
 0x705   :  { %v2493_v37 = vadd.f32 1.0, %v3431_v52 }
 0x707   :  { %3432 = vrcp.f32 %v2493_v37  ;;  %v2520_v35 = vand.u32 2147483648, %v2493_v37  ;;  %vm2514_vm1 = vweird.f32 %v2493_v37  ;;  %v2518_v26 = vand.u32 2147483647, %v2493_v37 }
 0x709   :  { %v2527_v42 = vpop.permute.xlu2 %2526  ;;  %v2521_v21 = vor.u32 1.1754944e-38, %v2520_v35  ;;  %vm2519_vm8 = vcmp.eq.f32.partialorder %v2518_v26, 8.507059e+37 }
 0x70a   :  { %v2532_v8 = vmul.f32 %v2527_v42, %v2507_v25 }
 0x70c   :  { %2536 = vrot.lane.b32.xlu1 %v2532_v8, %s3528_s3 }
 0x70d   :  { %v3433_v51 = vpop.eup %3432 }
 0x70e   :  { %v2510_v15 = vmul.f32 %v3433_v51, %v2493_v37  ;;  %vm2515_vm5 = vweird.f32 %v3433_v51 }
 0x70f   :  { %vm2516_vm2 = vmor %vm2514_vm1, %vm2515_vm5 }
 0x710   :  { %v2511_v29 = vsub.f32 1.0, %v2510_v15 }
 0x712   :  { %v2512_v11 = vmul.f32 %v3433_v51, %v2511_v29 }
 0x714   :  { %v2513_v57 = vadd.f32 %v3433_v51, %v2512_v11 }
 0x716   :  { %v2517_v38 = vsel %vm2516_vm2, %v3433_v51, %v2513_v57 }
 0x717   :  { %v2522_v5 = vsel %vm2519_vm8, %v2521_v21, %v2517_v38 }
 0x718   :  { %v2547_v34 = vsub.f32 1.0, %v2522_v5  ;;  %v2559_v24 = vmul.f32 %v2522_v5, %v4440_v33  ;;  %v125_v33 = vld [vmem:[%s5265_s27] sm:$0x3] }
 0x73d   :  { %v2529_v23 = vpop.permute.xlu1 %2528 }
 0x73e   :  { %v2533_v14 = vmul.f32 %v2529_v23, %v2522_v5 }
 0x740   :  { %2538 = vrot.lane.b32.xlu0 %v2533_v14, %s3528_s3 }
 0x77e   :  { %v2537_v50 = vpop.permute.xlu1 %2536 }
 0x77f   :  { %v2542_v62 = vadd.f32 %v2537_v50, %v2443_v30  ;;  %v128_v30 = vld [vmem:[%s5266_s8] sm:$0xff] }
 0x781   :  { %3434 = vtanh.f32 %v2542_v62 }
 0x787   :  { %v3435_v6 = vpop.eup %3434 }
 0x788   :  { %2550 = vrot.lane.b32.xlu0 %v3435_v6, %s3529_s11 }
 0x7b2   :  { %v2539_v53 = vpop.permute.xlu0 %2538 }
 0x7b3   :  { %v2543_v13 = vadd.f32 %v2539_v53, %v2446_v17 }
 0x7b5   :  { %3436 = vtanh.f32 %v2543_v13 }
 0x7bb   :  { %v3437_v10 = vpop.eup %3436 }
 0x7bc   :  { %2552 = vrot.lane.b32.xlu2 %v3437_v10, %s3529_s11 }
 0x7fa   :  { %v2551_v36 = vpop.permute.xlu0 %2550 }
 0x7fb   :  { %v2556_v9 = vmul.f32 %v2551_v36, %v2546_v45 }
 0x7fd   :  { %v2560_v32 = vadd.f32 %v2558_v31, %v2556_v9 }
 0x7ff   :  { %v2562_v19 = vmax.f32 %v2560_v32, 0.0 }
 0x801   :  { %2566 = vrot.lane.b32.xlu2 %v2562_v19, %s3529_s11 }
 0x809   :  { %2659 = vrot.lane.b32.xlu2 %v129_v43, %s3526_s7 }
 0x811   :  { %2708 = vrot.lane.b32.xlu2 %v127_v18, %s3526_s7 }
 0x816   :  { %v2553_v22 = vpop.permute.xlu2 %2552 }
 0x817   :  { %v2557_v60 = vmul.f32 %v2553_v22, %v2547_v34 }
 0x819   :  { %v2561_v12 = vadd.f32 %v2559_v24, %v2557_v60 }
 0x81b   :  { %v2563_v41 = vmax.f32 %v2561_v12, 0.0 }
 0x81d   :  { %2568 = vrot.lane.b32.xlu1 %v2563_v41, %s3529_s11 }
 0x825   :  { %2657 = vrot.lane.b32.xlu1 %v128_v30, %s3526_s7 }
 0x82d   :  { %2706 = vrot.lane.b32.xlu1 %v126_v44, %s3526_s7 }
 0x85b   :  { %v2567_v55 = vpop.permute.xlu2 %2566 }
 0x85c   :  { %3050 = vst.msk [vmem:[#allocation2] sm:$0xff] %vm277_vm4, %v2567_v55  ;;  %3182 = vmatmul.msk.f32.vlgmr.msra.gmra.mxu2 %vm277_vm4, %v2567_v55 }
 0x863   :  { %v5035_v29 = vpop.permute.xlu2 %2659 }
 0x88f   :  { %v2569_v1 = vpop.permute.xlu1 %2568 }
 0x890   :  { %3051 = vst.msk [vmem:[#allocation2 + $0x8] sm:$0xff] %vm277_vm4, %v2569_v1  ;;  %2589 = vmatpush.msra.mxu1 %v2569_v1  ;;  %3183 = vmatmul.msk.f32.gmra.mxu2 %vm277_vm4, %v2569_v1 }
 0x891   :  { %3069 = dma.vmem_to_hbm [thread:$0]  %s3062_s16, 256, %s3064_s12, [#allocation3], %s3531_s13, %s3531_s13, %s3532_s24  }
 0x892   :  { %2590 = vmatpush.msra.mxu1 %v2567_v55 }
 0x893   :  { %3181 = vmatmul.msk.f32.vlgmr.msra.gmra.mxu1 %vm136_vm0, %v125_v33  ;;  %vm2636_vm0 = vcmask 254976  }
 0x894   :  { %2806 = vmatpush.msrb.mxu1 %v2757_v0 }
 0x896   :  { %2807 = vmatpush.msrb.mxu1 %v2756_v27 }
 0x897   :  { %v5033_v52 = vpop.permute.xlu1 %2657 }
 0x898   :  { %2808 = vmatpush.msrb.mxu1 %v2755_v20 }
 0x89a   :  { %2809 = vmatpush.msrb.mxu1 %v2754_v3 }
 0x89f   :  { %v5046_v3 = vpop.permute.xlu1 %2706 }
 0x8df   :  { %v2625_v48 = vpop.f32.mrf.mxu2 }
 0x8e0   :  { %v5027_v2 = vadd.f32 %v3218_v61, %v2625_v48 }
 0x910   :  { %v5014_v28 = vpop.f32.mrf.mxu1 }
 0x911   :  { %v2595_v47 = vmax.f32 %v5014_v28, 0.0  ;;  %3187 = vmatmul.msk.f32.vlgmr.msrb.gmra.mxu1 %vm277_vm4, %v5014_v28 }
 0x913   :  { %v2635_v54 = vmul.f32 %v5012_v63, %v2595_v47  ;;  %v2628_v49 = vpop.f32.mrf.mxu2  ;;  %v5048_v47 = vpop.permute.xlu2 %2708 }
 0x914   :  { %v5029_v25 = vadd.f32 %v3218_v61, %v2628_v49  ;;  %v5055_v61 = vld [vmem:[%s5144_s21 + $0x1] ss:$0 sm:$0xff]  ;;  %v2752_v49 = vld [vmem:[%s5143_s20 + $0x10] sm:$0xff] }
 0x915   :  { %v2637_v16 = vsel %vm2636_vm0, %v2635_v54, 0.0  ;;  %2781 = vmatpush.msra.mxu3 %v2752_v49 }
 0x916   :  { %2638 = vadd.xlane.f32.xlu0 %v2637_v16 }
 0x92a   :  { %2857 = vrot.lane.b32.xlu0 %v5012_v63, %s3526_s7 }
 0x989   :  { %v2639_v46 = vpop.xlane.xlu0 %2638 }
 0x98a   :  { %v2640_v17 = vadd.f32 %v5012_v63, %v2639_v46 }
 0x98c   :  { %v2642_v40 = vrot.slane %v2640_v17, 1  ;;  %v2643_v42 = vperm.slane %v2640_v17, 0 }
 0x98e   :  { %v2644_v8 = vperm.slane %v2642_v40, 0  ;;  %v2647_v59 = vadd.f32 %v2643_v42, %v5027_v2  ;;  %v2811_v46 = vpop.f32.mrf.mxu1 }
 0x98f   :  { %v2812_v17 = vadd.f32 %v5055_v61, %v2811_v46 }
 0x990   :  { %v2648_v58 = vadd.f32 %v2644_v8, %v5029_v25  ;;  %vm2649_vm10 = vcmp.gt.f32.partialorder %v2647_v59, 0.0  ;;  %v2651_v37 = vmul.f32 0.01, %v2647_v59 }
 0x992   :  { %v2653_v51 = vsel %vm2649_vm10, %v2647_v59, %v2651_v37  ;;  %vm2650_vm14 = vcmp.gt.f32.partialorder %v2648_v58, 0.0  ;;  %v2652_v15 = vmul.f32 0.01, %v2648_v58  ;;  %v2750_v37 = vld [vmem:[%s5143_s20] sm:$0xff] }
 0x993   :  { %v2663_v11 = vadd.f32 %v5033_v52, %v2653_v51 }
 0x994   :  { %v2654_v57 = vsel %vm2650_vm14, %v2648_v58, %v2652_v15  ;;  %v2751_v58 = vld [vmem:[%s5143_s20 + $0x8] sm:$0xff] }
 0x995   :  { %v2666_v35 = vsel %vm2665_vm12, %v2663_v11, -inf  ;;  %v2664_v26 = vadd.f32 %v5035_v29, %v2654_v57  ;;  %2782 = vmatpush.msra.mxu3 %v2751_v58 }
 0x996   :  { %v2667_v38 = vrot.slane %v2666_v35, 4 }
 0x997   :  { %v2673_v21 = vsel %vm2665_vm12, %v2664_v26, -inf  ;;  %2783 = vmatpush.msra.mxu3 %v2750_v37 }
 0x998   :  { %v2668_v23 = vmax.f32 %v2666_v35, %v2667_v38  ;;  %v2674_v5 = vrot.slane %v2673_v21, 4 }
 0x999   :  { %2978 = vmatpush.msrb.mxu3 %v2753_v56 }
 0x99a   :  { %v2669_v14 = vrot.slane %v2668_v23, 2  ;;  %v2675_v50 = vmax.f32 %v2673_v21, %v2674_v5 }
 0x99b   :  { %2979 = vmatpush.msrb.mxu3 %v2752_v49 }
 0x99c   :  { %v2670_v62 = vmax.f32 %v2668_v23, %v2669_v14  ;;  %v2676_v6 = vrot.slane %v2675_v50, 2 }
 0x99d   :  { %2980 = vmatpush.msrb.mxu3 %v2751_v58 }
 0x99e   :  { %v2671_v53 = vrot.slane %v2670_v62, 1  ;;  %v2677_v13 = vmax.f32 %v2675_v50, %v2676_v6 }
 0x99f   :  { %2981 = vmatpush.msrb.mxu3 %v2750_v37 }
 0x9a0   :  { %v2672_v10 = vmax.f32 %v2670_v62, %v2671_v53  ;;  %v2678_v45 = vrot.slane %v2677_v13, 1 }
 0x9a2   :  { %v2680_v36 = vsub.f32 %v2663_v11, %v2672_v10  ;;  %v2679_v31 = vmax.f32 %v2677_v13, %v2678_v45 }
 0x9a4   :  { %v2682_v9 = vmul.f32 1.442695, %v2680_v36  ;;  %v2681_v32 = vsub.f32 %v2664_v26, %v2679_v31 }
 0x9a6   :  { %3438 = vpow2.f32 %v2682_v9  ;;  %v2684_v4 = vmul.f32 1.442695, %v2681_v32 }
 0x9a8   :  { %3440 = vpow2.f32 %v2684_v4 }
 0x9ac   :  { %v3439_v7 = vpop.eup %3438 }
 0x9ad   :  { %v2686_v19 = vsel %vm2665_vm12, %v3439_v7, 0.0 }
 0x9ae   :  { %v3441_v39 = vpop.eup %3440  ;;  %v2687_v34 = vrot.slane %v2686_v19, 4 }
 0x9af   :  { %v2693_v22 = vsel %vm2665_vm12, %v3441_v39, 0.0 }
 0x9b0   :  { %v2688_v24 = vadd.f32 %v2687_v34, %v2686_v19  ;;  %v2694_v60 = vrot.slane %v2693_v22, 4 }
 0x9b2   :  { %v2689_v12 = vrot.slane %v2688_v24, 2  ;;  %v2695_v41 = vadd.f32 %v2694_v60, %v2693_v22 }
 0x9b4   :  { %v2696_v55 = vrot.slane %v2695_v41, 2  ;;  %v2690_v1 = vadd.f32 %v2689_v12, %v2688_v24 }
 0x9b6   :  { %v2691_v33 = vrot.slane %v2690_v1, 1  ;;  %v2697_v0 = vadd.f32 %v2696_v55, %v2695_v41 }
 0x9b8   :  { %v2692_v27 = vadd.f32 %v2691_v33, %v2690_v1  ;;  %v2698_v30 = vrot.slane %v2697_v0, 1 }
 0x9ba   :  { %3442 = vrcp.f32 %v2692_v27  ;;  %v2699_v43 = vadd.f32 %v2698_v30, %v2697_v0 }
 0x9bc   :  { %3444 = vrcp.f32 %v2699_v43 }
 0x9c0   :  { %v3443_v20 = vpop.eup %3442 }
 0x9c1   :  { %v2702_v44 = vmul.f32 %v3443_v20, %v3439_v7  ;;  %v5077_v7 = vld [vmem:[%s5144_s21] ss:$0 sm:$0xff] }
 0x9c2   :  { %v3445_v18 = vpop.eup %3444 }
 0x9c3   :  { %v2712_v54 = vmul.f32 %v5046_v3, %v2702_v44  ;;  %v2703_v16 = vmul.f32 %v3445_v18, %v3441_v39 }
 0x9c5   :  { %v2713_v48 = vmul.f32 %v5048_v47, %v2703_v16  ;;  %2716 = vperm.xlu1 %3201, %v2712_v54  }
 0x9c7   :  { %2721 = vperm.xlu2 %3202, %v2713_v48  }
 0x9cd   :  { %2835 = vrot.lane.b32.xlu1 %v2812_v17, %s3528_s3 }
 0xa21   :  { %v2722_v40 = vpop.permute.xlu2 %2721 }
 0xa22   :  { %v2725_v42 = vmul.f32 %v2722_v40, %v5029_v25 }
 0xa24   :  { %v2733_v8 = vsel %vm277_vm4, %v2725_v42, 0.0 }
 0xa25   :  { %v2734_v59 = vrot.slane %v2733_v8, 4 }
 0xa27   :  { %v2735_v51 = vadd.f32 %v2734_v59, %v2733_v8  ;;  %v2858_v59 = vpop.permute.xlu0 %2857 }
 0xa29   :  { %v2736_v15 = vrot.slane %v2735_v51, 2 }
 0xa2b   :  { %v2737_v11 = vadd.f32 %v2736_v15, %v2735_v51 }
 0xa2d   :  { %v2738_v26 = vrot.slane %v2737_v11, 1 }
 0xa2f   :  { %v2739_v23 = vadd.f32 %v2738_v26, %v2737_v11 }
 0xa31   :  { %v2744_v50 = vmul.f32 1.442695, %v2739_v23  ;;  %vm2741_vm7 = vcmp.gt.f32.partialorder %v2739_v23, 0.0 }
 0xa33   :  { %3446 = vpow2.f32 %v2744_v50 }
 0xa37   :  { %v2717_v57 = vpop.permute.xlu1 %2716 }
 0xa38   :  { %v2724_v35 = vmul.f32 %v2717_v57, %v5027_v2 }
 0xa39   :  { %v3447_v10 = vpop.eup %3446 }
 0xa3a   :  { %v2726_v38 = vsel %vm277_vm4, %v2724_v35, 0.0  ;;  %v3185_v45 = vadd.f32 -1.0, %v3447_v10 }
 0xa3b   :  { %v2727_v21 = vrot.slane %v2726_v38, 4 }
 0xa3c   :  { %v2749_v32 = vsel %vm2741_vm7, %v2739_v23, %v3185_v45 }
 0xa3d   :  { %v2728_v5 = vadd.f32 %v2727_v21, %v2726_v38 }
 0xa3f   :  { %v2729_v14 = vrot.slane %v2728_v5, 2  ;;  %v2836_v20 = vpop.permute.xlu1 %2835 }
 0xa41   :  { %v2730_v62 = vadd.f32 %v2729_v14, %v2728_v5 }
 0xa43   :  { %v2731_v6 = vrot.slane %v2730_v62, 1 }
 0xa45   :  { %v2732_v53 = vadd.f32 %v2731_v6, %v2730_v62 }
 0xa47   :  { %v2742_v13 = vmul.f32 1.442695, %v2732_v53  ;;  %vm2740_vm13 = vcmp.gt.f32.partialorder %v2732_v53, 0.0 }
 0xa49   :  { %3448 = vpow2.f32 %v2742_v13 }
 0xa4f   :  { %v3449_v36 = vpop.eup %3448 }
 0xa50   :  { %v3184_v31 = vadd.f32 -1.0, %v3449_v36 }
 0xa52   :  { %v2748_v9 = vsel %vm2740_vm13, %v2732_v53, %v3184_v31 }
 0xa53   :  { %v2765_v4 = vsel %vm1276_vm6, %v2749_v32, %v2748_v9 }
 0xa54   :  { %3186 = vmatmul.msk.f32.vlgmr.msra.gmra.mxu3 %vm277_vm4, %v2765_v4 }
 0xad7   :  { %v2785_v19 = vpop.f32.mrf.mxu3 }
 0xad8   :  { %v2786_v56 = vadd.f32 %v5077_v7, %v2785_v19 }
 0xada   :  { %v2814_v39 = vadd.f32 %v2812_v17, %v2786_v56 }
 0xadc   :  { %v2815_v34 = vsub.f32 0.0, %v2814_v39 }
 0xade   :  { %v2816_v22 = vmul.f32 1.442695, %v2815_v34 }
 0xae0   :  { %3450 = vpow2.f32 %v2816_v22 }
 0xae6   :  { %v3451_v24 = vpop.eup %3450 }
 0xae7   :  { %v2818_v60 = vadd.f32 1.0, %v3451_v24 }
 0xae9   :  { %3452 = vrcp.f32 %v2818_v60  ;;  %v2830_v1 = vand.u32 2147483648, %v2818_v60  ;;  %v2828_v0 = vand.u32 2147483647, %v2818_v60  ;;  %vm2824_vm11 = vweird.f32 %v2818_v60 }
 0xaeb   :  { %v2831_v30 = vor.u32 1.1754944e-38, %v2830_v1  ;;  %vm2829_vm3 = vcmp.eq.f32.partialorder %v2828_v0, 8.507059e+37 }
 0xaef   :  { %v3453_v12 = vpop.eup %3452 }
 0xaf0   :  { %v2820_v41 = vmul.f32 %v3453_v12, %v2818_v60  ;;  %vm2825_vm9 = vweird.f32 %v3453_v12 }
 0xaf1   :  { %vm2826_vm15 = vmor %vm2824_vm11, %vm2825_vm9 }
 0xaf2   :  { %v2821_v55 = vsub.f32 1.0, %v2820_v41 }
 0xaf4   :  { %v2822_v33 = vmul.f32 %v3453_v12, %v2821_v55 }
 0xaf6   :  { %v2823_v27 = vadd.f32 %v3453_v12, %v2822_v33 }
 0xaf8   :  { %v2827_v43 = vsel %vm2826_vm15, %v3453_v12, %v2823_v27 }
 0xaf9   :  { %v2832_v44 = vsel %vm2829_vm3, %v2831_v30, %v2827_v43 }
 0xafa   :  { %v2838_v18 = vmul.f32 %v2836_v20, %v2832_v44  ;;  %v2845_v17 = vsub.f32 1.0, %v2832_v44 }
 0xafc   :  { %2840 = vrot.lane.b32.xlu2 %v2838_v18, %s3528_s3 }
 0xb04   :  { %2851 = vrot.lane.b32.xlu2 %v5014_v28, %s3526_s7 }
 0xb56   :  { %v2841_v54 = vpop.permute.xlu2 %2840 }
 0xb57   :  { %v2843_v16 = vadd.f32 %v2841_v54, %v2786_v56 }
 0xb59   :  { %3454 = vtanh.f32 %v2843_v16 }
 0xb5e   :  { %v2852_v46 = vpop.permute.xlu2 %2851 }
 0xb5f   :  { %v3455_v48 = vpop.eup %3454  ;;  %v2854_v40 = vmul.f32 %v2852_v46, %v2832_v44 }
 0xb60   :  { %2847 = vrot.lane.b32.xlu1 %v3455_v48, %s3529_s11 }
 0xbd2   :  { %v2848_v49 = vpop.permute.xlu1 %2847 }
 0xbd3   :  { %v2850_v42 = vmul.f32 %v2848_v49, %v2845_v17 }
 0xbd5   :  { %v5084_v8 = vadd.f32 %v2854_v40, %v2850_v42 }
 0xbd7   :  { %v2856_v58 = vmax.f32 %v5084_v8, 0.0 }
 0xbd9   :  { %v2860_v37 = vmul.f32 %v2858_v59, %v2856_v58 }
 0xbdb   :  { %2862 = vrot.lane.b32.xlu1 %v2860_v37, %s3529_s11 }
 0xc4d   :  { %v2863_v28 = vpop.permute.xlu1 %2862 }
 0xc4e   :  { %v2865_v51 = vsel %vm2636_vm0, %v2863_v28, 0.0 }
 0xc4f   :  { %2866 = vadd.xlane.f32.xlu2 %v2865_v51 }
 0xcc2   :  { %v2867_v15 = vpop.xlane.xlu2 %2866 }
 0xcc3   :  { %v2868_v11 = vadd.f32 %v5012_v63, %v2867_v15 }
 0xcc5   :  { %v2870_v57 = vrot.slane %v2868_v11, 1  ;;  %v2871_v35 = vperm.slane %v2868_v11, 0 }
 0xcc7   :  { %v2872_v26 = vperm.slane %v2870_v57, 0  ;;  %v2875_v38 = vadd.f32 %v2871_v35, %v5027_v2 }
 0xcc9   :  { %v2876_v21 = vadd.f32 %v2872_v26, %v5029_v25  ;;  %vm2877_vm5 = vcmp.gt.f32.partialorder %v2875_v38, 0.0  ;;  %v2879_v23 = vmul.f32 0.01, %v2875_v38 }
 0xccb   :  { %vm2878_vm1 = vcmp.gt.f32.partialorder %v2876_v21, 0.0  ;;  %v2880_v5 = vmul.f32 0.01, %v2876_v21  ;;  %v2881_v14 = vsel %vm2877_vm5, %v2875_v38, %v2879_v23 }
 0xccc   :  { %v2883_v50 = vadd.f32 %v2881_v14, %v5033_v52 }
 0xccd   :  { %v2882_v62 = vsel %vm2878_vm1, %v2876_v21, %v2880_v5 }
 0xcce   :  { %v2884_v6 = vadd.f32 %v2882_v62, %v5035_v29  ;;  %v2885_v53 = vsel %vm2665_vm12, %v2883_v50, -inf }
 0xccf   :  { %v2886_v63 = vrot.slane %v2885_v53, 4 }
 0xcd0   :  { %v2892_v13 = vsel %vm2665_vm12, %v2884_v6, -inf }
 0xcd1   :  { %v2887_v10 = vmax.f32 %v2885_v53, %v2886_v63  ;;  %v2893_v45 = vrot.slane %v2892_v13, 4 }
 0xcd3   :  { %v2888_v36 = vrot.slane %v2887_v10, 2  ;;  %v2894_v31 = vmax.f32 %v2892_v13, %v2893_v45 }
 0xcd5   :  { %v2889_v9 = vmax.f32 %v2887_v10, %v2888_v36  ;;  %v2895_v32 = vrot.slane %v2894_v31, 2 }
 0xcd7   :  { %v2890_v4 = vrot.slane %v2889_v9, 1  ;;  %v2896_v19 = vmax.f32 %v2894_v31, %v2895_v32 }
 0xcd9   :  { %v2891_v56 = vmax.f32 %v2889_v9, %v2890_v4  ;;  %v2897_v39 = vrot.slane %v2896_v19, 1 }
 0xcdb   :  { %v2898_v34 = vmax.f32 %v2896_v19, %v2897_v39  ;;  %v2899_v52 = vsub.f32 %v2883_v50, %v2891_v56 }
 0xcdd   :  { %v2900_v22 = vsub.f32 %v2884_v6, %v2898_v34  ;;  %v2901_v24 = vmul.f32 1.442695, %v2899_v52 }
 0xcdf   :  { %v2903_v29 = vmul.f32 1.442695, %v2900_v22  ;;  %3456 = vpow2.f32 %v2901_v24 }
 0xce1   :  { %3458 = vpow2.f32 %v2903_v29 }
 0xce5   :  { %v3457_v60 = vpop.eup %3456 }
 0xce6   :  { %v2905_v12 = vsel %vm2665_vm12, %v3457_v60, 0.0 }
 0xce7   :  { %v3459_v41 = vpop.eup %3458  ;;  %v2906_v55 = vrot.slane %v2905_v12, 4 }
 0xce8   :  { %v2912_v1 = vsel %vm2665_vm12, %v3459_v41, 0.0 }
 0xce9   :  { %v2907_v33 = vadd.f32 %v2906_v55, %v2905_v12  ;;  %v2913_v0 = vrot.slane %v2912_v1, 4 }
 0xceb   :  { %v2908_v27 = vrot.slane %v2907_v33, 2  ;;  %v2914_v30 = vadd.f32 %v2913_v0, %v2912_v1 }
 0xced   :  { %v2909_v43 = vadd.f32 %v2908_v27, %v2907_v33  ;;  %v2915_v20 = vrot.slane %v2914_v30, 2 }
 0xcef   :  { %v2910_v44 = vrot.slane %v2909_v43, 1  ;;  %v2916_v18 = vadd.f32 %v2915_v20, %v2914_v30 }
 0xcf1   :  { %v2911_v54 = vadd.f32 %v2910_v44, %v2909_v43  ;;  %v2917_v16 = vrot.slane %v2916_v18, 1 }
 0xcf3   :  { %3460 = vrcp.f32 %v2911_v54  ;;  %v2918_v48 = vadd.f32 %v2917_v16, %v2916_v18 }
 0xcf5   :  { %3462 = vrcp.f32 %v2918_v48 }
 0xcf9   :  { %v3461_v46 = vpop.eup %3460 }
 0xcfa   :  { %v2921_v17 = vmul.f32 %v3461_v46, %v3457_v60 }
 0xcfb   :  { %v3463_v49 = vpop.eup %3462 }
 0xcfc   :  { %v2923_v40 = vmul.f32 %v2921_v17, %v5046_v3  ;;  %v2922_v42 = vmul.f32 %v3463_v49, %v3459_v41 }
 0xcfe   :  { %2927 = vperm.xlu1 %3201, %v2923_v40   ;;  %v2924_v59 = vmul.f32 %v2922_v42, %v5048_v47 }
 0xd00   :  { %2932 = vperm.xlu0 %3200, %v2924_v59  }
 0xd06   :  { %2987 = vrot.lane.b32.xlu1 %v5084_v8, %s3529_s11 }
 0xd70   :  { %v2928_v58 = vpop.permute.xlu1 %2927 }
 0xd71   :  { %v2935_v37 = vmul.f32 %v2928_v58, %v5027_v2 }
 0xd72   :  { %v2933_v28 = vpop.permute.xlu0 %2932 }
 0xd73   :  { %v2937_v51 = vsel %vm277_vm4, %v2935_v37, 0.0  ;;  %v2936_v15 = vmul.f32 %v2933_v28, %v5029_v25 }
 0xd74   :  { %v2938_v11 = vrot.slane %v2937_v51, 4 }
 0xd75   :  { %v2944_v57 = vsel %vm277_vm4, %v2936_v15, 0.0 }
 0xd76   :  { %v2939_v3 = vadd.f32 %v2938_v11, %v2937_v51  ;;  %v2945_v35 = vrot.slane %v2944_v57, 4 }
 0xd78   :  { %v2940_v26 = vrot.slane %v2939_v3, 2  ;;  %v2946_v38 = vadd.f32 %v2945_v35, %v2944_v57  ;;  %v2988_v47 = vpop.permute.xlu1 %2987 }
 0xd79   :  { %3191 = vmatmul.msk.f32.vlgmr.msrb.gmra.mxu0 %vm277_vm4, %v2988_v47 }
 0xd7a   :  { %v2941_v21 = vadd.f32 %v2940_v26, %v2939_v3  ;;  %v2947_v23 = vrot.slane %v2946_v38, 2 }
 0xd7c   :  { %v2942_v5 = vrot.slane %v2941_v21, 1  ;;  %v2948_v14 = vadd.f32 %v2947_v23, %v2946_v38 }
 0xd7e   :  { %v2943_v2 = vadd.f32 %v2942_v5, %v2941_v21  ;;  %v2949_v50 = vrot.slane %v2948_v14, 1 }
 0xd80   :  { %v2953_v62 = vmul.f32 1.442695, %v2943_v2  ;;  %v2950_v6 = vadd.f32 %v2949_v50, %v2948_v14  ;;  %vm2951_vm2 = vcmp.gt.f32.partialorder %v2943_v2, 0.0 }
 0xd82   :  { %3464 = vpow2.f32 %v2953_v62  ;;  %v2955_v25 = vmul.f32 1.442695, %v2950_v6  ;;  %vm2952_vm8 = vcmp.gt.f32.partialorder %v2950_v6, 0.0 }
 0xd84   :  { %3466 = vpow2.f32 %v2955_v25 }
 0xd88   :  { %v3465_v53 = vpop.eup %3464 }
 0xd89   :  { %v3188_v63 = vadd.f32 -1.0, %v3465_v53 }
 0xd8a   :  { %v3467_v13 = vpop.eup %3466 }
 0xd8b   :  { %v3189_v10 = vadd.f32 -1.0, %v3467_v13  ;;  %v2959_v45 = vsel %vm2951_vm2, %v2943_v2, %v3188_v63 }
 0xd8d   :  { %v2960_v36 = vsel %vm2952_vm8, %v2950_v6, %v3189_v10 }
 0xd8e   :  { %v2963_v31 = vsel %vm1276_vm6, %v2960_v36, %v2959_v45 }
 0xd8f   :  { %3190 = vmatmul.msk.f32.vlgmr.msrb.gmra.mxu3 %vm277_vm4, %v2963_v31 }
 0xdf6   :  { %v3008_v9 = vpop.f32.mrf.mxu0 }
 0xdf7   :  { %v3009_v32 = vadd.f32 %v5055_v61, %v3008_v9 }
 0xdf9   :  { %3032 = vrot.lane.b32.xlu0 %v3009_v32, %s3528_s3 }
 0xe12   :  { %v2983_v4 = vpop.f32.mrf.mxu3 }
 0xe13   :  { %v2984_v19 = vadd.f32 %v5077_v7, %v2983_v4 }
 0xe15   :  { %v3011_v56 = vadd.f32 %v3009_v32, %v2984_v19 }
 0xe17   :  { %v3012_v39 = vsub.f32 0.0, %v3011_v56 }
 0xe19   :  { %v3013_v34 = vmul.f32 1.442695, %v3012_v39 }
 0xe1b   :  { %3468 = vpow2.f32 %v3013_v34 }
 0xe21   :  { %v3469_v52 = vpop.eup %3468 }
 0xe22   :  { %v3015_v22 = vadd.f32 1.0, %v3469_v52 }
 0xe24   :  { %3470 = vrcp.f32 %v3015_v22  ;;  %v3027_v55 = vand.u32 2147483648, %v3015_v22  ;;  %vm3021_vm6 = vweird.f32 %v3015_v22  ;;  %v3025_v61 = vand.u32 2147483647, %v3015_v22 }
 0xe26   :  { %v3028_v33 = vor.u32 1.1754944e-38, %v3027_v55  ;;  %vm3026_vm12 = vcmp.eq.f32.partialorder %v3025_v61, 8.507059e+37 }
 0xe2a   :  { %v3471_v24 = vpop.eup %3470 }
 0xe2b   :  { %v3017_v29 = vmul.f32 %v3471_v24, %v3015_v22  ;;  %vm3022_vm4 = vweird.f32 %v3471_v24 }
 0xe2c   :  { %vm3023_vm10 = vmor %vm3021_vm6, %vm3022_vm4 }
 0xe2d   :  { %v3018_v60 = vsub.f32 1.0, %v3017_v29 }
 0xe2f   :  { %v3019_v12 = vmul.f32 %v3471_v24, %v3018_v60 }
 0xe31   :  { %v3020_v41 = vadd.f32 %v3471_v24, %v3019_v12 }
 0xe33   :  { %v3024_v1 = vsel %vm3023_vm10, %v3471_v24, %v3020_v41 }
 0xe34   :  { %v3029_v7 = vsel %vm3026_vm12, %v3028_v33, %v3024_v1 }
 0xe35   :  { %v3042_v44 = vsub.f32 1.0, %v3029_v7  ;;  %v3048_v54 = vmul.f32 %v3029_v7, %v5084_v8 }
 0xe6b   :  { %v3033_v0 = vpop.permute.xlu0 %3032 }
 0xe6c   :  { %v3035_v27 = vmul.f32 %v3033_v0, %v3029_v7 }
 0xe6e   :  { %3037 = vrot.lane.b32.xlu1 %v3035_v27, %s3528_s3  ;;  %s3533_s3 = smov [#allocation4]  }
 0xe6f   :  { %s3075_s25 = sshll.u32 %s3533_s3, 4  ;;  %s3076_s25 = int_to_ptr.vmem [resolvable:$true] %s3075_s25 }
 0xee0   :  { %v3038_v30 = vpop.permute.xlu1 %3037 }
 0xee1   :  { %v3040_v43 = vadd.f32 %v3038_v30, %v2984_v19 }
 0xee3   :  { %3472 = vtanh.f32 %v3040_v43 }
 0xee9   :  { %v3473_v20 = vpop.eup %3472 }
 0xeea   :  { %3044 = vrot.lane.b32.xlu0 %v3473_v20, %s3529_s11 }
 0xf5c   :  { %v3045_v18 = vpop.permute.xlu0 %3044 }
 0xf5d   :  { %v3047_v16 = vmul.f32 %v3045_v18, %v3042_v44 }
 0xf5f   :  { %v3049_v48 = vadd.f32 %v3048_v54, %v3047_v16 }
 0xf61   :  { %3053 = vrot.lane.b32.xlu1 %v3049_v48, %s3529_s11 }
 0xfd3   :  { %v3054_v46 = vpop.permute.xlu1 %3053 }
 0xfd4   :  { %3056 = vst.msk [vmem:[#allocation4] sm:$0x3] %vm2636_vm0, %v3054_v46 }
 0xfd5   :  { %3080 = dma.vmem_to_hbm [thread:$0]  %s3076_s25, 32, %s3078_s22, [#allocation5]  }
 0xfd6   :  { %3522 = dma.done.wait [#allocation3], 256  }
 0xfd7   :  { %3523 = vsyncadd [#allocation3], 4294967040 }
 0xfd8   :  { %3524 = dma.done.wait [#allocation5], 32  }
 0xfd9   :  { %3525 = vsyncadd [#allocation5], 4294967264 }
 0xfda   :  { %3089 = vsyncpa [#allocation3], 1 }
 0xfdb   :  { %3090 = vsyncpa [#allocation5], 1 }

</bundles_post_ra>
